<compile_context>
chip_gen: v5e
topology: v5e:2x2
jax: 0.10.0
libtpu: 0.0.40
codegen_flags: <defaults>
</compile_context>

<pallas_src>
import math
from functools import partial

import jax
import jax.numpy as jnp
from jax.experimental import pallas as pl
from jax.experimental.pallas import tpu as pltpu

# ----------------------------- small config --------------------------------
# (bert-base uses hidden=768, 12 layers, 12 heads; scaled down per task spec.
#  hidden=128 is chosen so every tensor is lane-dense.)
BATCH = 2
SEQ = 16
HIDDEN = 128
N_HEADS = 4
HEAD_DIM = HIDDEN // N_HEADS
INTERMEDIATE = 4 * HIDDEN
N_LAYERS = 2
VOCAB = 128
MAX_POS = 64
TYPE_VOCAB = 2
LN_EPS = 1e-12
DTYPE = jnp.float32          # activation / accumulation dtype
WDTYPE = jnp.bfloat16        # MXU operand dtype for weight matrices
ATTN_SCALE = 1.0 / math.sqrt(HEAD_DIM)

# Whole-array-in-VMEM spec (no grid; total footprint is ~1.5 MiB).
_VMEM = pl.BlockSpec(memory_space=pltpu.MemorySpace.VMEM)


# ----------------------------- kernel helpers --------------------------------
def _gelu(x):
    # TODO(synk): HF bert-base uses exact erf-GELU; tanh approximation used here.
    c = math.sqrt(2.0 / math.pi)
    return 0.5 * x * (1.0 + jnp.tanh(c * (x + 0.044715 * x * x * x)))


def _layernorm_rows(h, g, b):
    mu = jnp.mean(h, axis=-1, keepdims=True)
    d = h - mu
    var = jnp.mean(d * d, axis=-1, keepdims=True)
    return d * jax.lax.rsqrt(var + LN_EPS) * g + b


# ----------------------------- the fused kernel ------------------------------
def _bert_forward_kernel(emb_ref, mask_ref,
                         emb_ln_g_ref, emb_ln_b_ref,
                         wqkv_ref, bqkv_ref, wo_ref, bo_ref,
                         ln1g_ref, ln1b_ref,
                         wi_ref, bi_ref, wf_ref, bf_ref,
                         ln2g_ref, ln2b_ref,
                         pool_w_ref, pool_b_ref, out_w_ref, out_b_ref,
                         o_ref,
                         *, batch, seq, n_heads, head_dim, n_layers, scale):
    hdim = n_heads * head_dim

    # ---- embedding LayerNorm -------------------------------------------------
    x = _layernorm_rows(emb_ref[...].astype(jnp.float32),
                        emb_ln_g_ref[...].astype(jnp.float32),
                        emb_ln_b_ref[...].astype(jnp.float32))          # (M, H)

    # ---- additive attention bias (HF convention): (1 - mask) * -10000 ---------
    bias = (1.0 - mask_ref[...].astype(jnp.float32)) * -10000.0          # (B, S)
    bias_rows = jnp.concatenate(
        [jnp.broadcast_to(bias[b:b + 1, :], (n_heads * seq, seq))
         for b in range(batch)],
        axis=0)                                                           # (B*NH*S, S)

    # ---- encoder layers (unrolled Python loop; weights indexed statically) ----
    for l in range(n_layers):
        # fused Q|K|V projection: one lane-dense (M, 3H) bf16 matmul, f32 acc
        qkv = (jnp.dot(x.astype(WDTYPE), wqkv_ref[l],
                       preferred_element_type=jnp.float32)
               + bqkv_ref[l].astype(jnp.float32))                        # (M, 3H)
        qkv_bf = qkv.astype(WDTYPE)

        # scores for every (batch, head), stacked along sublanes -> one softmax
        score_tiles = []
        for b in range(batch):
            r0 = b * seq
            for h in range(n_heads):
                c0 = h * head_dim
                q = qkv_bf[r0:r0 + seq, c0:c0 + head_dim]                 # (S, D)
                k = qkv_bf[r0:r0 + seq, hdim + c0:hdim + c0 + head_dim]   # (S, D)
                score_tiles.append(
                    jax.lax.dot_general(q, k, (((1,), (1,)), ((), ())),
                                        preferred_element_type=jnp.float32))
        s = jnp.concatenate(score_tiles, axis=0) * scale + bias_rows     # (B*NH*S, S)
        s = s - jnp.max(s, axis=-1, keepdims=True)
        p = jnp.exp(s)
        p = p * pl.reciprocal(jnp.sum(p, axis=-1, keepdims=True), approx=True)
        p_bf = p.astype(WDTYPE)

        # context: per-batch full-width (S, H) blocks (head outputs on lane axis)
        ctx_rows = []
        for b in range(batch):
            r0 = b * seq
            head_ctx = []
            for h in range(n_heads):
                c0 = h * head_dim
                t0 = (b * n_heads + h) * seq
                v = qkv_bf[r0:r0 + seq, 2 * hdim + c0:2 * hdim + c0 + head_dim]
                head_ctx.append(jnp.dot(p_bf[t0:t0 + seq, :], v,
                                        preferred_element_type=jnp.float32))
            ctx_rows.append(jnp.concatenate(head_ctx, axis=1))           # (S, H)
        ctx = jnp.concatenate(ctx_rows, axis=0)                          # (M, H)

        # output projection + residual + LayerNorm 1
        attn = (jnp.dot(ctx.astype(WDTYPE), wo_ref[l],
                        preferred_element_type=jnp.float32)
                + bo_ref[l].astype(jnp.float32))
        x1 = _layernorm_rows(attn + x,
                             ln1g_ref[l].astype(jnp.float32),
                             ln1b_ref[l].astype(jnp.float32))

        # FFN (gelu) + residual + LayerNorm 2
        h1 = (jnp.dot(x1.astype(WDTYPE), wi_ref[l],
                      preferred_element_type=jnp.float32)
              + bi_ref[l].astype(jnp.float32))
        h1 = _gelu(h1)
        h2 = (jnp.dot(h1.astype(WDTYPE), wf_ref[l],
                      preferred_element_type=jnp.float32)
              + bf_ref[l].astype(jnp.float32))
        x = _layernorm_rows(h2 + x1,
                            ln2g_ref[l].astype(jnp.float32),
                            ln2b_ref[l].astype(jnp.float32))

    # ---- pooler (tanh Linear on CLS rows) + out_layer Linear(hidden, 1) -------
    cls = jnp.concatenate([x[b * seq:b * seq + 1, :] for b in range(batch)],
                          axis=0)                                        # (B, H)
    feat = jnp.tanh(jnp.dot(cls.astype(WDTYPE), pool_w_ref[...],
                            preferred_element_type=jnp.float32)
                    + pool_b_ref[...].astype(jnp.float32))               # (B, H)
    # Linear(H, 1) as multiply + lane reduce (avoids an N=1 MXU matmul).
    out = (jnp.sum(feat * out_w_ref[...].astype(jnp.float32),
                   axis=-1, keepdims=True)
           + out_b_ref[...].astype(jnp.float32))                         # (B, 1)
    o_ref[...] = out.astype(o_ref.dtype)


# ----------------------------- parameters ------------------------------------
def init_params(key):
    keys = iter(jax.random.split(key, 32))

    def w(shape, dtype=WDTYPE):
        return (jax.random.normal(next(keys), shape, jnp.float32) * 0.02).astype(dtype)

    def zeros(shape, dtype=DTYPE):
        return jnp.zeros(shape, dtype)

    def ones(shape, dtype=DTYPE):
        return jnp.ones(shape, dtype)

    return {
        "word_emb": w((VOCAB, HIDDEN), DTYPE),
        "pos_emb": w((MAX_POS, HIDDEN), DTYPE),
        "type_emb": w((TYPE_VOCAB, HIDDEN), DTYPE),
        "emb_ln_g": ones((1, HIDDEN)),
        "emb_ln_b": zeros((1, HIDDEN)),
        # Per-layer weights stacked on a leading layer axis (one fused kernel).
        "wqkv": w((N_LAYERS, HIDDEN, 3 * HIDDEN)),       # Q|K|V fused
        "bqkv": zeros((N_LAYERS, 1, 3 * HIDDEN)),
        "wo": w((N_LAYERS, HIDDEN, HIDDEN)),
        "bo": zeros((N_LAYERS, 1, HIDDEN)),
        "ln1_g": ones((N_LAYERS, 1, HIDDEN)),
        "ln1_b": zeros((N_LAYERS, 1, HIDDEN)),
        "wi": w((N_LAYERS, HIDDEN, INTERMEDIATE)),
        "bi": zeros((N_LAYERS, 1, INTERMEDIATE)),
        "wf": w((N_LAYERS, INTERMEDIATE, HIDDEN)),
        "bf": zeros((N_LAYERS, 1, HIDDEN)),
        "ln2_g": ones((N_LAYERS, 1, HIDDEN)),
        "ln2_b": zeros((N_LAYERS, 1, HIDDEN)),
        "pool_w": w((HIDDEN, HIDDEN)),
        "pool_b": zeros((1, HIDDEN)),
        "out_w": w((1, HIDDEN), DTYPE),                  # Linear(hidden, 1) as a row
        "out_b": zeros((1, 1)),
    }


# ----------------------------- forward ---------------------------------------
def bert_finetune_forward(params, ids, mask, token_type_ids):
    B, S = ids.shape

    # Embedding-table gathers stay in JAX glue; everything else is one kernel.
    pos = jnp.arange(S, dtype=jnp.int32)
    emb = (params["word_emb"][ids]
           + params["pos_emb"][pos][None, :, :]
           + params["type_emb"][token_type_ids])
    emb = emb.reshape(B * S, HIDDEN).astype(DTYPE)
    mask_f = mask.astype(DTYPE)

    kernel = partial(_bert_forward_kernel, batch=BATCH, seq=SEQ, n_heads=N_HEADS,
                     head_dim=HEAD_DIM, n_layers=N_LAYERS, scale=ATTN_SCALE)
    return pl.pallas_call(
        kernel,
        out_shape=jax.ShapeDtypeStruct((B, 1), DTYPE),
        in_specs=[_VMEM] * 20,
        out_specs=_VMEM,
    )(emb, mask_f,
      params["emb_ln_g"], params["emb_ln_b"],
      params["wqkv"], params["bqkv"], params["wo"], params["bo"],
      params["ln1_g"], params["ln1_b"],
      params["wi"], params["bi"], params["wf"], params["bf"],
      params["ln2_g"], params["ln2_b"],
      params["pool_w"], params["pool_b"], params["out_w"], params["out_b"])


# ----------------------------- main ------------------------------------------
if __name__ == "__main__":
    root = jax.random.PRNGKey(0)
    kp, kid, ktt = jax.random.split(root, 3)
    params = init_params(kp)

    ids = jax.random.randint(kid, (BATCH, SEQ), 0, VOCAB, dtype=jnp.int32)
    token_type_ids = jax.random.randint(ktt, (BATCH, SEQ), 0, TYPE_VOCAB,
                                        dtype=jnp.int32)
    # Attention mask: last 4 tokens of each sequence are padding.
    mask = jnp.ones((BATCH, SEQ), dtype=jnp.int32).at[:, SEQ - 4:].set(0)

    out = jax.jit(bert_finetune_forward)(params, ids, mask, token_type_ids)
    jax.block_until_ready(out)
    assert out.shape == (BATCH, 1) and out.dtype == DTYPE
    print("KERNEL_OK")
</pallas_src>

<mosaic_0001>
module attributes {stable_mosaic.version = 11 : i64} {
  func.func @_bert_forward_kernel(%arg0: memref<32x128xf32, #tpu.memory_space<vmem>>, %arg1: memref<2x16xf32, #tpu.memory_space<vmem>>, %arg2: memref<1x128xf32, #tpu.memory_space<vmem>>, %arg3: memref<1x128xf32, #tpu.memory_space<vmem>>, %arg4: memref<2x128x384xbf16, #tpu.memory_space<vmem>>, %arg5: memref<2x1x384xf32, #tpu.memory_space<vmem>>, %arg6: memref<2x128x128xbf16, #tpu.memory_space<vmem>>, %arg7: memref<2x1x128xf32, #tpu.memory_space<vmem>>, %arg8: memref<2x1x128xf32, #tpu.memory_space<vmem>>, %arg9: memref<2x1x128xf32, #tpu.memory_space<vmem>>, %arg10: memref<2x128x512xbf16, #tpu.memory_space<vmem>>, %arg11: memref<2x1x512xf32, #tpu.memory_space<vmem>>, %arg12: memref<2x512x128xbf16, #tpu.memory_space<vmem>>, %arg13: memref<2x1x128xf32, #tpu.memory_space<vmem>>, %arg14: memref<2x1x128xf32, #tpu.memory_space<vmem>>, %arg15: memref<2x1x128xf32, #tpu.memory_space<vmem>>, %arg16: memref<128x128xbf16, #tpu.memory_space<vmem>>, %arg17: memref<1x128xf32, #tpu.memory_space<vmem>>, %arg18: memref<1x128xf32, #tpu.memory_space<vmem>>, %arg19: memref<1x1xf32, #tpu.memory_space<vmem>>, %arg20: memref<2x1xf32, #tpu.memory_space<vmem>>) attributes {dimension_semantics = [], scalar_prefetch = 0 : i64, scratch_operands = 0 : i64, tpu.core_type = #tpu.core_type<tc>} {
    %c0 = arith.constant 0 : index
    %c0_0 = arith.constant 0 : index
    %0 = vector.load %arg0[%c0, %c0_0] : memref<32x128xf32, #tpu.memory_space<vmem>>, vector<32x128xf32>
    %c0_1 = arith.constant 0 : index
    %c0_2 = arith.constant 0 : index
    %1 = vector.load %arg2[%c0_1, %c0_2] : memref<1x128xf32, #tpu.memory_space<vmem>>, vector<1x128xf32>
    %c0_3 = arith.constant 0 : index
    %c0_4 = arith.constant 0 : index
    %2 = vector.load %arg3[%c0_3, %c0_4] : memref<1x128xf32, #tpu.memory_space<vmem>>, vector<1x128xf32>
    %cst = arith.constant dense<0.000000e+00> : vector<32xf32>
    %3 = vector.multi_reduction <add>, %0, %cst [1] : vector<32x128xf32> to vector<32xf32>
    %4 = vector.shape_cast %3 : vector<32xf32> to vector<32x1xf32>
    %cst_5 = arith.constant 1.280000e+02 : f32
    %5 = vector.broadcast %cst_5 : f32 to vector<32x1xf32>
    %6 = arith.divf %4, %5 : vector<32x1xf32>
    %7 = vector.broadcast %6 : vector<32x1xf32> to vector<32x128xf32>
    %8 = arith.subf %0, %7 : vector<32x128xf32>
    %9 = arith.mulf %8, %8 : vector<32x128xf32>
    %cst_6 = arith.constant dense<0.000000e+00> : vector<32xf32>
    %10 = vector.multi_reduction <add>, %9, %cst_6 [1] : vector<32x128xf32> to vector<32xf32>
    %11 = vector.shape_cast %10 : vector<32xf32> to vector<32x1xf32>
    %cst_7 = arith.constant 1.280000e+02 : f32
    %12 = vector.broadcast %cst_7 : f32 to vector<32x1xf32>
    %13 = arith.divf %11, %12 : vector<32x1xf32>
    %cst_8 = arith.constant 9.99999996E-13 : f32
    %14 = vector.broadcast %cst_8 : f32 to vector<32x1xf32>
    %15 = arith.addf %13, %14 : vector<32x1xf32>
    %16 = math.rsqrt %15 : vector<32x1xf32>
    %17 = vector.broadcast %16 : vector<32x1xf32> to vector<32x128xf32>
    %18 = arith.mulf %8, %17 : vector<32x128xf32>
    %19 = vector.broadcast %1 : vector<1x128xf32> to vector<32x128xf32>
    %20 = arith.mulf %18, %19 : vector<32x128xf32>
    %21 = vector.broadcast %2 : vector<1x128xf32> to vector<32x128xf32>
    %22 = arith.addf %20, %21 : vector<32x128xf32>
    %c0_9 = arith.constant 0 : index
    %c0_10 = arith.constant 0 : index
    %23 = vector.load %arg1[%c0_9, %c0_10] : memref<2x16xf32, #tpu.memory_space<vmem>>, vector<2x16xf32>
    %cst_11 = arith.constant 1.000000e+00 : f32
    %24 = vector.broadcast %cst_11 : f32 to vector<2x16xf32>
    %25 = arith.subf %24, %23 : vector<2x16xf32>
    %cst_12 = arith.constant -1.000000e+04 : f32
    %26 = vector.broadcast %cst_12 : f32 to vector<2x16xf32>
    %27 = arith.mulf %25, %26 : vector<2x16xf32>
    %28 = vector.extract_strided_slice %27 {offsets = [0, 0], sizes = [1, 16], strides = [1, 1]} : vector<2x16xf32> to vector<1x16xf32>
    %29 = vector.shape_cast %28 : vector<1x16xf32> to vector<1x16xf32>
    %30 = vector.broadcast %29 : vector<1x16xf32> to vector<64x16xf32>
    %31 = vector.extract_strided_slice %27 {offsets = [1, 0], sizes = [1, 16], strides = [1, 1]} : vector<2x16xf32> to vector<1x16xf32>
    %32 = vector.shape_cast %31 : vector<1x16xf32> to vector<1x16xf32>
    %33 = vector.broadcast %32 : vector<1x16xf32> to vector<64x16xf32>
    %34 = tpu.concatenate %30, %33 in 0 : vector<64x16xf32>, vector<64x16xf32> -> vector<128x16xf32>
    %35 = arith.truncf %22 : vector<32x128xf32> to vector<32x128xbf16>
    %c0_13 = arith.constant 0 : index
    %c0_14 = arith.constant 0 : index
    %c0_15 = arith.constant 0 : index
    %36 = vector.load %arg4[%c0_13, %c0_14, %c0_15] : memref<2x128x384xbf16, #tpu.memory_space<vmem>>, vector<1x128x384xbf16>
    %37 = vector.shape_cast %36 : vector<1x128x384xbf16> to vector<128x384xbf16>
    %cst_16 = arith.constant dense<0.000000e+00> : vector<32x384xf32>
    %38 = tpu.matmul %35, %37, %cst_16 {dimension_numbers = #tpu.dot_dimension_numbers<[1], [0], [0], [1], [0, 0, 1, 1], [], []>} : vector<32x128xbf16>, vector<128x384xbf16>, vector<32x384xf32> -> vector<32x384xf32>
    %c0_17 = arith.constant 0 : index
    %c0_18 = arith.constant 0 : index
    %c0_19 = arith.constant 0 : index
    %39 = vector.load %arg5[%c0_17, %c0_18, %c0_19] : memref<2x1x384xf32, #tpu.memory_space<vmem>>, vector<1x1x384xf32>
    %40 = vector.shape_cast %39 : vector<1x1x384xf32> to vector<1x384xf32>
    %41 = vector.broadcast %40 : vector<1x384xf32> to vector<32x384xf32>
    %42 = arith.addf %38, %41 : vector<32x384xf32>
    %43 = arith.truncf %42 : vector<32x384xf32> to vector<32x384xbf16>
    %44 = vector.extract_strided_slice %43 {offsets = [0, 0], sizes = [16, 32], strides = [1, 1]} : vector<32x384xbf16> to vector<16x32xbf16>
    %45 = vector.extract_strided_slice %43 {offsets = [0, 128], sizes = [16, 32], strides = [1, 1]} : vector<32x384xbf16> to vector<16x32xbf16>
    %cst_20 = arith.constant dense<0.000000e+00> : vector<16x16xf32>
    %46 = tpu.matmul %44, %45, %cst_20 {dimension_numbers = #tpu.dot_dimension_numbers<[1], [1], [0], [0], [0, 0, 1, 0], [], []>} : vector<16x32xbf16>, vector<16x32xbf16>, vector<16x16xf32> -> vector<16x16xf32>
    %47 = vector.extract_strided_slice %43 {offsets = [0, 32], sizes = [16, 32], strides = [1, 1]} : vector<32x384xbf16> to vector<16x32xbf16>
    %48 = vector.extract_strided_slice %43 {offsets = [0, 160], sizes = [16, 32], strides = [1, 1]} : vector<32x384xbf16> to vector<16x32xbf16>
    %cst_21 = arith.constant dense<0.000000e+00> : vector<16x16xf32>
    %49 = tpu.matmul %47, %48, %cst_21 {dimension_numbers = #tpu.dot_dimension_numbers<[1], [1], [0], [0], [0, 0, 1, 0], [], []>} : vector<16x32xbf16>, vector<16x32xbf16>, vector<16x16xf32> -> vector<16x16xf32>
    %50 = vector.extract_strided_slice %43 {offsets = [0, 64], sizes = [16, 32], strides = [1, 1]} : vector<32x384xbf16> to vector<16x32xbf16>
    %51 = vector.extract_strided_slice %43 {offsets = [0, 192], sizes = [16, 32], strides = [1, 1]} : vector<32x384xbf16> to vector<16x32xbf16>
    %cst_22 = arith.constant dense<0.000000e+00> : vector<16x16xf32>
    %52 = tpu.matmul %50, %51, %cst_22 {dimension_numbers = #tpu.dot_dimension_numbers<[1], [1], [0], [0], [0, 0, 1, 0], [], []>} : vector<16x32xbf16>, vector<16x32xbf16>, vector<16x16xf32> -> vector<16x16xf32>
    %53 = vector.extract_strided_slice %43 {offsets = [0, 96], sizes = [16, 32], strides = [1, 1]} : vector<32x384xbf16> to vector<16x32xbf16>
    %54 = vector.extract_strided_slice %43 {offsets = [0, 224], sizes = [16, 32], strides = [1, 1]} : vector<32x384xbf16> to vector<16x32xbf16>
    %cst_23 = arith.constant dense<0.000000e+00> : vector<16x16xf32>
    %55 = tpu.matmul %53, %54, %cst_23 {dimension_numbers = #tpu.dot_dimension_numbers<[1], [1], [0], [0], [0, 0, 1, 0], [], []>} : vector<16x32xbf16>, vector<16x32xbf16>, vector<16x16xf32> -> vector<16x16xf32>
    %56 = vector.extract_strided_slice %43 {offsets = [16, 0], sizes = [16, 32], strides = [1, 1]} : vector<32x384xbf16> to vector<16x32xbf16>
    %57 = vector.extract_strided_slice %43 {offsets = [16, 128], sizes = [16, 32], strides = [1, 1]} : vector<32x384xbf16> to vector<16x32xbf16>
    %cst_24 = arith.constant dense<0.000000e+00> : vector<16x16xf32>
    %58 = tpu.matmul %56, %57, %cst_24 {dimension_numbers = #tpu.dot_dimension_numbers<[1], [1], [0], [0], [0, 0, 1, 0], [], []>} : vector<16x32xbf16>, vector<16x32xbf16>, vector<16x16xf32> -> vector<16x16xf32>
    %59 = vector.extract_strided_slice %43 {offsets = [16, 32], sizes = [16, 32], strides = [1, 1]} : vector<32x384xbf16> to vector<16x32xbf16>
    %60 = vector.extract_strided_slice %43 {offsets = [16, 160], sizes = [16, 32], strides = [1, 1]} : vector<32x384xbf16> to vector<16x32xbf16>
    %cst_25 = arith.constant dense<0.000000e+00> : vector<16x16xf32>
    %61 = tpu.matmul %59, %60, %cst_25 {dimension_numbers = #tpu.dot_dimension_numbers<[1], [1], [0], [0], [0, 0, 1, 0], [], []>} : vector<16x32xbf16>, vector<16x32xbf16>, vector<16x16xf32> -> vector<16x16xf32>
    %62 = vector.extract_strided_slice %43 {offsets = [16, 64], sizes = [16, 32], strides = [1, 1]} : vector<32x384xbf16> to vector<16x32xbf16>
    %63 = vector.extract_strided_slice %43 {offsets = [16, 192], sizes = [16, 32], strides = [1, 1]} : vector<32x384xbf16> to vector<16x32xbf16>
    %cst_26 = arith.constant dense<0.000000e+00> : vector<16x16xf32>
    %64 = tpu.matmul %62, %63, %cst_26 {dimension_numbers = #tpu.dot_dimension_numbers<[1], [1], [0], [0], [0, 0, 1, 0], [], []>} : vector<16x32xbf16>, vector<16x32xbf16>, vector<16x16xf32> -> vector<16x16xf32>
    %65 = vector.extract_strided_slice %43 {offsets = [16, 96], sizes = [16, 32], strides = [1, 1]} : vector<32x384xbf16> to vector<16x32xbf16>
    %66 = vector.extract_strided_slice %43 {offsets = [16, 224], sizes = [16, 32], strides = [1, 1]} : vector<32x384xbf16> to vector<16x32xbf16>
    %cst_27 = arith.constant dense<0.000000e+00> : vector<16x16xf32>
    %67 = tpu.matmul %65, %66, %cst_27 {dimension_numbers = #tpu.dot_dimension_numbers<[1], [1], [0], [0], [0, 0, 1, 0], [], []>} : vector<16x32xbf16>, vector<16x32xbf16>, vector<16x16xf32> -> vector<16x16xf32>
    %68 = tpu.concatenate %46, %49, %52, %55, %58, %61, %64, %67 in 0 : vector<16x16xf32>, vector<16x16xf32>, vector<16x16xf32>, vector<16x16xf32>, vector<16x16xf32>, vector<16x16xf32>, vector<16x16xf32>, vector<16x16xf32> -> vector<128x16xf32>
    %cst_28 = arith.constant 0.176776692 : f32
    %69 = vector.broadcast %cst_28 : f32 to vector<128x16xf32>
    %70 = arith.mulf %68, %69 : vector<128x16xf32>
    %71 = arith.addf %70, %34 : vector<128x16xf32>
    %cst_29 = arith.constant dense<0xFF800000> : vector<128xf32>
    %72 = vector.multi_reduction <maximumf>, %71, %cst_29 [1] : vector<128x16xf32> to vector<128xf32>
    %73 = vector.shape_cast %72 : vector<128xf32> to vector<128x1xf32>
    %74 = vector.broadcast %73 : vector<128x1xf32> to vector<128x16xf32>
    %75 = arith.subf %71, %74 : vector<128x16xf32>
    %76 = math.exp %75 : vector<128x16xf32>
    %cst_30 = arith.constant dense<0.000000e+00> : vector<128xf32>
    %77 = vector.multi_reduction <add>, %76, %cst_30 [1] : vector<128x16xf32> to vector<128xf32>
    %78 = vector.shape_cast %77 : vector<128xf32> to vector<128x1xf32>
    %79 = tpu.reciprocal %78 {approx = true} : vector<128x1xf32> -> vector<128x1xf32>
    %80 = vector.broadcast %79 : vector<128x1xf32> to vector<128x16xf32>
    %81 = arith.mulf %76, %80 : vector<128x16xf32>
    %82 = arith.truncf %81 : vector<128x16xf32> to vector<128x16xbf16>
    %83 = vector.extract_strided_slice %43 {offsets = [0, 256], sizes = [16, 32], strides = [1, 1]} : vector<32x384xbf16> to vector<16x32xbf16>
    %84 = vector.extract_strided_slice %82 {offsets = [0, 0], sizes = [16, 16], strides = [1, 1]} : vector<128x16xbf16> to vector<16x16xbf16>
    %cst_31 = arith.constant dense<0.000000e+00> : vector<16x32xf32>
    %85 = tpu.matmul %84, %83, %cst_31 {dimension_numbers = #tpu.dot_dimension_numbers<[1], [0], [0], [1], [0, 0, 1, 1], [], []>} : vector<16x16xbf16>, vector<16x32xbf16>, vector<16x32xf32> -> vector<16x32xf32>
    %86 = vector.extract_strided_slice %43 {offsets = [0, 288], sizes = [16, 32], strides = [1, 1]} : vector<32x384xbf16> to vector<16x32xbf16>
    %87 = vector.extract_strided_slice %82 {offsets = [16, 0], sizes = [16, 16], strides = [1, 1]} : vector<128x16xbf16> to vector<16x16xbf16>
    %cst_32 = arith.constant dense<0.000000e+00> : vector<16x32xf32>
    %88 = tpu.matmul %87, %86, %cst_32 {dimension_numbers = #tpu.dot_dimension_numbers<[1], [0], [0], [1], [0, 0, 1, 1], [], []>} : vector<16x16xbf16>, vector<16x32xbf16>, vector<16x32xf32> -> vector<16x32xf32>
    %89 = vector.extract_strided_slice %43 {offsets = [0, 320], sizes = [16, 32], strides = [1, 1]} : vector<32x384xbf16> to vector<16x32xbf16>
    %90 = vector.extract_strided_slice %82 {offsets = [32, 0], sizes = [16, 16], strides = [1, 1]} : vector<128x16xbf16> to vector<16x16xbf16>
    %cst_33 = arith.constant dense<0.000000e+00> : vector<16x32xf32>
    %91 = tpu.matmul %90, %89, %cst_33 {dimension_numbers = #tpu.dot_dimension_numbers<[1], [0], [0], [1], [0, 0, 1, 1], [], []>} : vector<16x16xbf16>, vector<16x32xbf16>, vector<16x32xf32> -> vector<16x32xf32>
    %92 = vector.extract_strided_slice %43 {offsets = [0, 352], sizes = [16, 32], strides = [1, 1]} : vector<32x384xbf16> to vector<16x32xbf16>
    %93 = vector.extract_strided_slice %82 {offsets = [48, 0], sizes = [16, 16], strides = [1, 1]} : vector<128x16xbf16> to vector<16x16xbf16>
    %cst_34 = arith.constant dense<0.000000e+00> : vector<16x32xf32>
    %94 = tpu.matmul %93, %92, %cst_34 {dimension_numbers = #tpu.dot_dimension_numbers<[1], [0], [0], [1], [0, 0, 1, 1], [], []>} : vector<16x16xbf16>, vector<16x32xbf16>, vector<16x32xf32> -> vector<16x32xf32>
    %95 = tpu.concatenate %85, %88, %91, %94 in 1 : vector<16x32xf32>, vector<16x32xf32>, vector<16x32xf32>, vector<16x32xf32> -> vector<16x128xf32>
    %96 = vector.extract_strided_slice %43 {offsets = [16, 256], sizes = [16, 32], strides = [1, 1]} : vector<32x384xbf16> to vector<16x32xbf16>
    %97 = vector.extract_strided_slice %82 {offsets = [64, 0], sizes = [16, 16], strides = [1, 1]} : vector<128x16xbf16> to vector<16x16xbf16>
    %cst_35 = arith.constant dense<0.000000e+00> : vector<16x32xf32>
    %98 = tpu.matmul %97, %96, %cst_35 {dimension_numbers = #tpu.dot_dimension_numbers<[1], [0], [0], [1], [0, 0, 1, 1], [], []>} : vector<16x16xbf16>, vector<16x32xbf16>, vector<16x32xf32> -> vector<16x32xf32>
    %99 = vector.extract_strided_slice %43 {offsets = [16, 288], sizes = [16, 32], strides = [1, 1]} : vector<32x384xbf16> to vector<16x32xbf16>
    %100 = vector.extract_strided_slice %82 {offsets = [80, 0], sizes = [16, 16], strides = [1, 1]} : vector<128x16xbf16> to vector<16x16xbf16>
    %cst_36 = arith.constant dense<0.000000e+00> : vector<16x32xf32>
    %101 = tpu.matmul %100, %99, %cst_36 {dimension_numbers = #tpu.dot_dimension_numbers<[1], [0], [0], [1], [0, 0, 1, 1], [], []>} : vector<16x16xbf16>, vector<16x32xbf16>, vector<16x32xf32> -> vector<16x32xf32>
    %102 = vector.extract_strided_slice %43 {offsets = [16, 320], sizes = [16, 32], strides = [1, 1]} : vector<32x384xbf16> to vector<16x32xbf16>
    %103 = vector.extract_strided_slice %82 {offsets = [96, 0], sizes = [16, 16], strides = [1, 1]} : vector<128x16xbf16> to vector<16x16xbf16>
    %cst_37 = arith.constant dense<0.000000e+00> : vector<16x32xf32>
    %104 = tpu.matmul %103, %102, %cst_37 {dimension_numbers = #tpu.dot_dimension_numbers<[1], [0], [0], [1], [0, 0, 1, 1], [], []>} : vector<16x16xbf16>, vector<16x32xbf16>, vector<16x32xf32> -> vector<16x32xf32>
    %105 = vector.extract_strided_slice %43 {offsets = [16, 352], sizes = [16, 32], strides = [1, 1]} : vector<32x384xbf16> to vector<16x32xbf16>
    %106 = vector.extract_strided_slice %82 {offsets = [112, 0], sizes = [16, 16], strides = [1, 1]} : vector<128x16xbf16> to vector<16x16xbf16>
    %cst_38 = arith.constant dense<0.000000e+00> : vector<16x32xf32>
    %107 = tpu.matmul %106, %105, %cst_38 {dimension_numbers = #tpu.dot_dimension_numbers<[1], [0], [0], [1], [0, 0, 1, 1], [], []>} : vector<16x16xbf16>, vector<16x32xbf16>, vector<16x32xf32> -> vector<16x32xf32>
    %108 = tpu.concatenate %98, %101, %104, %107 in 1 : vector<16x32xf32>, vector<16x32xf32>, vector<16x32xf32>, vector<16x32xf32> -> vector<16x128xf32>
    %109 = tpu.concatenate %95, %108 in 0 : vector<16x128xf32>, vector<16x128xf32> -> vector<32x128xf32>
    %110 = arith.truncf %109 : vector<32x128xf32> to vector<32x128xbf16>
    %c0_39 = arith.constant 0 : index
    %c0_40 = arith.constant 0 : index
    %c0_41 = arith.constant 0 : index
    %111 = vector.load %arg6[%c0_39, %c0_40, %c0_41] : memref<2x128x128xbf16, #tpu.memory_space<vmem>>, vector<1x128x128xbf16>
    %112 = vector.shape_cast %111 : vector<1x128x128xbf16> to vector<128x128xbf16>
    %cst_42 = arith.constant dense<0.000000e+00> : vector<32x128xf32>
    %113 = tpu.matmul %110, %112, %cst_42 {dimension_numbers = #tpu.dot_dimension_numbers<[1], [0], [0], [1], [0, 0, 1, 1], [], []>} : vector<32x128xbf16>, vector<128x128xbf16>, vector<32x128xf32> -> vector<32x128xf32>
    %c0_43 = arith.constant 0 : index
    %c0_44 = arith.constant 0 : index
    %c0_45 = arith.constant 0 : index
    %114 = vector.load %arg7[%c0_43, %c0_44, %c0_45] : memref<2x1x128xf32, #tpu.memory_space<vmem>>, vector<1x1x128xf32>
    %115 = vector.shape_cast %114 : vector<1x1x128xf32> to vector<1x128xf32>
    %116 = vector.broadcast %115 : vector<1x128xf32> to vector<32x128xf32>
    %117 = arith.addf %113, %116 : vector<32x128xf32>
    %118 = arith.addf %117, %22 : vector<32x128xf32>
    %c0_46 = arith.constant 0 : index
    %c0_47 = arith.constant 0 : index
    %c0_48 = arith.constant 0 : index
    %119 = vector.load %arg8[%c0_46, %c0_47, %c0_48] : memref<2x1x128xf32, #tpu.memory_space<vmem>>, vector<1x1x128xf32>
    %120 = vector.shape_cast %119 : vector<1x1x128xf32> to vector<1x128xf32>
    %c0_49 = arith.constant 0 : index
    %c0_50 = arith.constant 0 : index
    %c0_51 = arith.constant 0 : index
    %121 = vector.load %arg9[%c0_49, %c0_50, %c0_51] : memref<2x1x128xf32, #tpu.memory_space<vmem>>, vector<1x1x128xf32>
    %122 = vector.shape_cast %121 : vector<1x1x128xf32> to vector<1x128xf32>
    %cst_52 = arith.constant dense<0.000000e+00> : vector<32xf32>
    %123 = vector.multi_reduction <add>, %118, %cst_52 [1] : vector<32x128xf32> to vector<32xf32>
    %124 = vector.shape_cast %123 : vector<32xf32> to vector<32x1xf32>
    %cst_53 = arith.constant 1.280000e+02 : f32
    %125 = vector.broadcast %cst_53 : f32 to vector<32x1xf32>
    %126 = arith.divf %124, %125 : vector<32x1xf32>
    %127 = vector.broadcast %126 : vector<32x1xf32> to vector<32x128xf32>
    %128 = arith.subf %118, %127 : vector<32x128xf32>
    %129 = arith.mulf %128, %128 : vector<32x128xf32>
    %cst_54 = arith.constant dense<0.000000e+00> : vector<32xf32>
    %130 = vector.multi_reduction <add>, %129, %cst_54 [1] : vector<32x128xf32> to vector<32xf32>
    %131 = vector.shape_cast %130 : vector<32xf32> to vector<32x1xf32>
    %cst_55 = arith.constant 1.280000e+02 : f32
    %132 = vector.broadcast %cst_55 : f32 to vector<32x1xf32>
    %133 = arith.divf %131, %132 : vector<32x1xf32>
    %cst_56 = arith.constant 9.99999996E-13 : f32
    %134 = vector.broadcast %cst_56 : f32 to vector<32x1xf32>
    %135 = arith.addf %133, %134 : vector<32x1xf32>
    %136 = math.rsqrt %135 : vector<32x1xf32>
    %137 = vector.broadcast %136 : vector<32x1xf32> to vector<32x128xf32>
    %138 = arith.mulf %128, %137 : vector<32x128xf32>
    %139 = vector.broadcast %120 : vector<1x128xf32> to vector<32x128xf32>
    %140 = arith.mulf %138, %139 : vector<32x128xf32>
    %141 = vector.broadcast %122 : vector<1x128xf32> to vector<32x128xf32>
    %142 = arith.addf %140, %141 : vector<32x128xf32>
    %143 = arith.truncf %142 : vector<32x128xf32> to vector<32x128xbf16>
    %c0_57 = arith.constant 0 : index
    %c0_58 = arith.constant 0 : index
    %c0_59 = arith.constant 0 : index
    %144 = vector.load %arg10[%c0_57, %c0_58, %c0_59] : memref<2x128x512xbf16, #tpu.memory_space<vmem>>, vector<1x128x512xbf16>
    %145 = vector.shape_cast %144 : vector<1x128x512xbf16> to vector<128x512xbf16>
    %cst_60 = arith.constant dense<0.000000e+00> : vector<32x512xf32>
    %146 = tpu.matmul %143, %145, %cst_60 {dimension_numbers = #tpu.dot_dimension_numbers<[1], [0], [0], [1], [0, 0, 1, 1], [], []>} : vector<32x128xbf16>, vector<128x512xbf16>, vector<32x512xf32> -> vector<32x512xf32>
    %c0_61 = arith.constant 0 : index
    %c0_62 = arith.constant 0 : index
    %c0_63 = arith.constant 0 : index
    %147 = vector.load %arg11[%c0_61, %c0_62, %c0_63] : memref<2x1x512xf32, #tpu.memory_space<vmem>>, vector<1x1x512xf32>
    %148 = vector.shape_cast %147 : vector<1x1x512xf32> to vector<1x512xf32>
    %149 = vector.broadcast %148 : vector<1x512xf32> to vector<32x512xf32>
    %150 = arith.addf %146, %149 : vector<32x512xf32>
    %cst_64 = arith.constant 5.000000e-01 : f32
    %151 = vector.broadcast %cst_64 : f32 to vector<32x512xf32>
    %152 = arith.mulf %151, %150 : vector<32x512xf32>
    %cst_65 = arith.constant 4.471500e-02 : f32
    %153 = vector.broadcast %cst_65 : f32 to vector<32x512xf32>
    %154 = arith.mulf %153, %150 : vector<32x512xf32>
    %155 = arith.mulf %154, %150 : vector<32x512xf32>
    %156 = arith.mulf %155, %150 : vector<32x512xf32>
    %157 = arith.addf %150, %156 : vector<32x512xf32>
    %cst_66 = arith.constant 0.797884583 : f32
    %158 = vector.broadcast %cst_66 : f32 to vector<32x512xf32>
    %159 = arith.mulf %158, %157 : vector<32x512xf32>
    %160 = math.tanh %159 : vector<32x512xf32>
    %cst_67 = arith.constant 1.000000e+00 : f32
    %161 = vector.broadcast %cst_67 : f32 to vector<32x512xf32>
    %162 = arith.addf %161, %160 : vector<32x512xf32>
    %163 = arith.mulf %152, %162 : vector<32x512xf32>
    %164 = arith.truncf %163 : vector<32x512xf32> to vector<32x512xbf16>
    %c0_68 = arith.constant 0 : index
    %c0_69 = arith.constant 0 : index
    %c0_70 = arith.constant 0 : index
    %165 = vector.load %arg12[%c0_68, %c0_69, %c0_70] : memref<2x512x128xbf16, #tpu.memory_space<vmem>>, vector<1x512x128xbf16>
    %166 = vector.shape_cast %165 : vector<1x512x128xbf16> to vector<512x128xbf16>
    %cst_71 = arith.constant dense<0.000000e+00> : vector<32x128xf32>
    %167 = tpu.matmul %164, %166, %cst_71 {dimension_numbers = #tpu.dot_dimension_numbers<[1], [0], [0], [1], [0, 0, 1, 1], [], []>} : vector<32x512xbf16>, vector<512x128xbf16>, vector<32x128xf32> -> vector<32x128xf32>
    %c0_72 = arith.constant 0 : index
    %c0_73 = arith.constant 0 : index
    %c0_74 = arith.constant 0 : index
    %168 = vector.load %arg13[%c0_72, %c0_73, %c0_74] : memref<2x1x128xf32, #tpu.memory_space<vmem>>, vector<1x1x128xf32>
    %169 = vector.shape_cast %168 : vector<1x1x128xf32> to vector<1x128xf32>
    %170 = vector.broadcast %169 : vector<1x128xf32> to vector<32x128xf32>
    %171 = arith.addf %167, %170 : vector<32x128xf32>
    %172 = arith.addf %171, %142 : vector<32x128xf32>
    %c0_75 = arith.constant 0 : index
    %c0_76 = arith.constant 0 : index
    %c0_77 = arith.constant 0 : index
    %173 = vector.load %arg14[%c0_75, %c0_76, %c0_77] : memref<2x1x128xf32, #tpu.memory_space<vmem>>, vector<1x1x128xf32>
    %174 = vector.shape_cast %173 : vector<1x1x128xf32> to vector<1x128xf32>
    %c0_78 = arith.constant 0 : index
    %c0_79 = arith.constant 0 : index
    %c0_80 = arith.constant 0 : index
    %175 = vector.load %arg15[%c0_78, %c0_79, %c0_80] : memref<2x1x128xf32, #tpu.memory_space<vmem>>, vector<1x1x128xf32>
    %176 = vector.shape_cast %175 : vector<1x1x128xf32> to vector<1x128xf32>
    %cst_81 = arith.constant dense<0.000000e+00> : vector<32xf32>
    %177 = vector.multi_reduction <add>, %172, %cst_81 [1] : vector<32x128xf32> to vector<32xf32>
    %178 = vector.shape_cast %177 : vector<32xf32> to vector<32x1xf32>
    %cst_82 = arith.constant 1.280000e+02 : f32
    %179 = vector.broadcast %cst_82 : f32 to vector<32x1xf32>
    %180 = arith.divf %178, %179 : vector<32x1xf32>
    %181 = vector.broadcast %180 : vector<32x1xf32> to vector<32x128xf32>
    %182 = arith.subf %172, %181 : vector<32x128xf32>
    %183 = arith.mulf %182, %182 : vector<32x128xf32>
    %cst_83 = arith.constant dense<0.000000e+00> : vector<32xf32>
    %184 = vector.multi_reduction <add>, %183, %cst_83 [1] : vector<32x128xf32> to vector<32xf32>
    %185 = vector.shape_cast %184 : vector<32xf32> to vector<32x1xf32>
    %cst_84 = arith.constant 1.280000e+02 : f32
    %186 = vector.broadcast %cst_84 : f32 to vector<32x1xf32>
    %187 = arith.divf %185, %186 : vector<32x1xf32>
    %cst_85 = arith.constant 9.99999996E-13 : f32
    %188 = vector.broadcast %cst_85 : f32 to vector<32x1xf32>
    %189 = arith.addf %187, %188 : vector<32x1xf32>
    %190 = math.rsqrt %189 : vector<32x1xf32>
    %191 = vector.broadcast %190 : vector<32x1xf32> to vector<32x128xf32>
    %192 = arith.mulf %182, %191 : vector<32x128xf32>
    %193 = vector.broadcast %174 : vector<1x128xf32> to vector<32x128xf32>
    %194 = arith.mulf %192, %193 : vector<32x128xf32>
    %195 = vector.broadcast %176 : vector<1x128xf32> to vector<32x128xf32>
    %196 = arith.addf %194, %195 : vector<32x128xf32>
    %197 = arith.truncf %196 : vector<32x128xf32> to vector<32x128xbf16>
    %c1 = arith.constant 1 : index
    %c0_86 = arith.constant 0 : index
    %c0_87 = arith.constant 0 : index
    %198 = vector.load %arg4[%c1, %c0_86, %c0_87] : memref<2x128x384xbf16, #tpu.memory_space<vmem>>, vector<1x128x384xbf16>
    %199 = vector.shape_cast %198 : vector<1x128x384xbf16> to vector<128x384xbf16>
    %cst_88 = arith.constant dense<0.000000e+00> : vector<32x384xf32>
    %200 = tpu.matmul %197, %199, %cst_88 {dimension_numbers = #tpu.dot_dimension_numbers<[1], [0], [0], [1], [0, 0, 1, 1], [], []>} : vector<32x128xbf16>, vector<128x384xbf16>, vector<32x384xf32> -> vector<32x384xf32>
    %c1_89 = arith.constant 1 : index
    %c0_90 = arith.constant 0 : index
    %c0_91 = arith.constant 0 : index
    %201 = vector.load %arg5[%c1_89, %c0_90, %c0_91] : memref<2x1x384xf32, #tpu.memory_space<vmem>>, vector<1x1x384xf32>
    %202 = vector.shape_cast %201 : vector<1x1x384xf32> to vector<1x384xf32>
    %203 = vector.broadcast %202 : vector<1x384xf32> to vector<32x384xf32>
    %204 = arith.addf %200, %203 : vector<32x384xf32>
    %205 = arith.truncf %204 : vector<32x384xf32> to vector<32x384xbf16>
    %206 = vector.extract_strided_slice %205 {offsets = [0, 0], sizes = [16, 32], strides = [1, 1]} : vector<32x384xbf16> to vector<16x32xbf16>
    %207 = vector.extract_strided_slice %205 {offsets = [0, 128], sizes = [16, 32], strides = [1, 1]} : vector<32x384xbf16> to vector<16x32xbf16>
    %cst_92 = arith.constant dense<0.000000e+00> : vector<16x16xf32>
    %208 = tpu.matmul %206, %207, %cst_92 {dimension_numbers = #tpu.dot_dimension_numbers<[1], [1], [0], [0], [0, 0, 1, 0], [], []>} : vector<16x32xbf16>, vector<16x32xbf16>, vector<16x16xf32> -> vector<16x16xf32>
    %209 = vector.extract_strided_slice %205 {offsets = [0, 32], sizes = [16, 32], strides = [1, 1]} : vector<32x384xbf16> to vector<16x32xbf16>
    %210 = vector.extract_strided_slice %205 {offsets = [0, 160], sizes = [16, 32], strides = [1, 1]} : vector<32x384xbf16> to vector<16x32xbf16>
    %cst_93 = arith.constant dense<0.000000e+00> : vector<16x16xf32>
    %211 = tpu.matmul %209, %210, %cst_93 {dimension_numbers = #tpu.dot_dimension_numbers<[1], [1], [0], [0], [0, 0, 1, 0], [], []>} : vector<16x32xbf16>, vector<16x32xbf16>, vector<16x16xf32> -> vector<16x16xf32>
    %212 = vector.extract_strided_slice %205 {offsets = [0, 64], sizes = [16, 32], strides = [1, 1]} : vector<32x384xbf16> to vector<16x32xbf16>
    %213 = vector.extract_strided_slice %205 {offsets = [0, 192], sizes = [16, 32], strides = [1, 1]} : vector<32x384xbf16> to vector<16x32xbf16>
    %cst_94 = arith.constant dense<0.000000e+00> : vector<16x16xf32>
    %214 = tpu.matmul %212, %213, %cst_94 {dimension_numbers = #tpu.dot_dimension_numbers<[1], [1], [0], [0], [0, 0, 1, 0], [], []>} : vector<16x32xbf16>, vector<16x32xbf16>, vector<16x16xf32> -> vector<16x16xf32>
    %215 = vector.extract_strided_slice %205 {offsets = [0, 96], sizes = [16, 32], strides = [1, 1]} : vector<32x384xbf16> to vector<16x32xbf16>
    %216 = vector.extract_strided_slice %205 {offsets = [0, 224], sizes = [16, 32], strides = [1, 1]} : vector<32x384xbf16> to vector<16x32xbf16>
    %cst_95 = arith.constant dense<0.000000e+00> : vector<16x16xf32>
    %217 = tpu.matmul %215, %216, %cst_95 {dimension_numbers = #tpu.dot_dimension_numbers<[1], [1], [0], [0], [0, 0, 1, 0], [], []>} : vector<16x32xbf16>, vector<16x32xbf16>, vector<16x16xf32> -> vector<16x16xf32>
    %218 = vector.extract_strided_slice %205 {offsets = [16, 0], sizes = [16, 32], strides = [1, 1]} : vector<32x384xbf16> to vector<16x32xbf16>
    %219 = vector.extract_strided_slice %205 {offsets = [16, 128], sizes = [16, 32], strides = [1, 1]} : vector<32x384xbf16> to vector<16x32xbf16>
    %cst_96 = arith.constant dense<0.000000e+00> : vector<16x16xf32>
    %220 = tpu.matmul %218, %219, %cst_96 {dimension_numbers = #tpu.dot_dimension_numbers<[1], [1], [0], [0], [0, 0, 1, 0], [], []>} : vector<16x32xbf16>, vector<16x32xbf16>, vector<16x16xf32> -> vector<16x16xf32>
    %221 = vector.extract_strided_slice %205 {offsets = [16, 32], sizes = [16, 32], strides = [1, 1]} : vector<32x384xbf16> to vector<16x32xbf16>
    %222 = vector.extract_strided_slice %205 {offsets = [16, 160], sizes = [16, 32], strides = [1, 1]} : vector<32x384xbf16> to vector<16x32xbf16>
    %cst_97 = arith.constant dense<0.000000e+00> : vector<16x16xf32>
    %223 = tpu.matmul %221, %222, %cst_97 {dimension_numbers = #tpu.dot_dimension_numbers<[1], [1], [0], [0], [0, 0, 1, 0], [], []>} : vector<16x32xbf16>, vector<16x32xbf16>, vector<16x16xf32> -> vector<16x16xf32>
    %224 = vector.extract_strided_slice %205 {offsets = [16, 64], sizes = [16, 32], strides = [1, 1]} : vector<32x384xbf16> to vector<16x32xbf16>
    %225 = vector.extract_strided_slice %205 {offsets = [16, 192], sizes = [16, 32], strides = [1, 1]} : vector<32x384xbf16> to vector<16x32xbf16>
    %cst_98 = arith.constant dense<0.000000e+00> : vector<16x16xf32>
    %226 = tpu.matmul %224, %225, %cst_98 {dimension_numbers = #tpu.dot_dimension_numbers<[1], [1], [0], [0], [0, 0, 1, 0], [], []>} : vector<16x32xbf16>, vector<16x32xbf16>, vector<16x16xf32> -> vector<16x16xf32>
    %227 = vector.extract_strided_slice %205 {offsets = [16, 96], sizes = [16, 32], strides = [1, 1]} : vector<32x384xbf16> to vector<16x32xbf16>
    %228 = vector.extract_strided_slice %205 {offsets = [16, 224], sizes = [16, 32], strides = [1, 1]} : vector<32x384xbf16> to vector<16x32xbf16>
    %cst_99 = arith.constant dense<0.000000e+00> : vector<16x16xf32>
    %229 = tpu.matmul %227, %228, %cst_99 {dimension_numbers = #tpu.dot_dimension_numbers<[1], [1], [0], [0], [0, 0, 1, 0], [], []>} : vector<16x32xbf16>, vector<16x32xbf16>, vector<16x16xf32> -> vector<16x16xf32>
    %230 = tpu.concatenate %208, %211, %214, %217, %220, %223, %226, %229 in 0 : vector<16x16xf32>, vector<16x16xf32>, vector<16x16xf32>, vector<16x16xf32>, vector<16x16xf32>, vector<16x16xf32>, vector<16x16xf32>, vector<16x16xf32> -> vector<128x16xf32>
    %cst_100 = arith.constant 0.176776692 : f32
    %231 = vector.broadcast %cst_100 : f32 to vector<128x16xf32>
    %232 = arith.mulf %230, %231 : vector<128x16xf32>
    %233 = arith.addf %232, %34 : vector<128x16xf32>
    %cst_101 = arith.constant dense<0xFF800000> : vector<128xf32>
    %234 = vector.multi_reduction <maximumf>, %233, %cst_101 [1] : vector<128x16xf32> to vector<128xf32>
    %235 = vector.shape_cast %234 : vector<128xf32> to vector<128x1xf32>
    %236 = vector.broadcast %235 : vector<128x1xf32> to vector<128x16xf32>
    %237 = arith.subf %233, %236 : vector<128x16xf32>
    %238 = math.exp %237 : vector<128x16xf32>
    %cst_102 = arith.constant dense<0.000000e+00> : vector<128xf32>
    %239 = vector.multi_reduction <add>, %238, %cst_102 [1] : vector<128x16xf32> to vector<128xf32>
    %240 = vector.shape_cast %239 : vector<128xf32> to vector<128x1xf32>
    %241 = tpu.reciprocal %240 {approx = true} : vector<128x1xf32> -> vector<128x1xf32>
    %242 = vector.broadcast %241 : vector<128x1xf32> to vector<128x16xf32>
    %243 = arith.mulf %238, %242 : vector<128x16xf32>
    %244 = arith.truncf %243 : vector<128x16xf32> to vector<128x16xbf16>
    %245 = vector.extract_strided_slice %205 {offsets = [0, 256], sizes = [16, 32], strides = [1, 1]} : vector<32x384xbf16> to vector<16x32xbf16>
    %246 = vector.extract_strided_slice %244 {offsets = [0, 0], sizes = [16, 16], strides = [1, 1]} : vector<128x16xbf16> to vector<16x16xbf16>
    %cst_103 = arith.constant dense<0.000000e+00> : vector<16x32xf32>
    %247 = tpu.matmul %246, %245, %cst_103 {dimension_numbers = #tpu.dot_dimension_numbers<[1], [0], [0], [1], [0, 0, 1, 1], [], []>} : vector<16x16xbf16>, vector<16x32xbf16>, vector<16x32xf32> -> vector<16x32xf32>
    %248 = vector.extract_strided_slice %205 {offsets = [0, 288], sizes = [16, 32], strides = [1, 1]} : vector<32x384xbf16> to vector<16x32xbf16>
    %249 = vector.extract_strided_slice %244 {offsets = [16, 0], sizes = [16, 16], strides = [1, 1]} : vector<128x16xbf16> to vector<16x16xbf16>
    %cst_104 = arith.constant dense<0.000000e+00> : vector<16x32xf32>
    %250 = tpu.matmul %249, %248, %cst_104 {dimension_numbers = #tpu.dot_dimension_numbers<[1], [0], [0], [1], [0, 0, 1, 1], [], []>} : vector<16x16xbf16>, vector<16x32xbf16>, vector<16x32xf32> -> vector<16x32xf32>
    %251 = vector.extract_strided_slice %205 {offsets = [0, 320], sizes = [16, 32], strides = [1, 1]} : vector<32x384xbf16> to vector<16x32xbf16>
    %252 = vector.extract_strided_slice %244 {offsets = [32, 0], sizes = [16, 16], strides = [1, 1]} : vector<128x16xbf16> to vector<16x16xbf16>
    %cst_105 = arith.constant dense<0.000000e+00> : vector<16x32xf32>
    %253 = tpu.matmul %252, %251, %cst_105 {dimension_numbers = #tpu.dot_dimension_numbers<[1], [0], [0], [1], [0, 0, 1, 1], [], []>} : vector<16x16xbf16>, vector<16x32xbf16>, vector<16x32xf32> -> vector<16x32xf32>
    %254 = vector.extract_strided_slice %205 {offsets = [0, 352], sizes = [16, 32], strides = [1, 1]} : vector<32x384xbf16> to vector<16x32xbf16>
    %255 = vector.extract_strided_slice %244 {offsets = [48, 0], sizes = [16, 16], strides = [1, 1]} : vector<128x16xbf16> to vector<16x16xbf16>
    %cst_106 = arith.constant dense<0.000000e+00> : vector<16x32xf32>
    %256 = tpu.matmul %255, %254, %cst_106 {dimension_numbers = #tpu.dot_dimension_numbers<[1], [0], [0], [1], [0, 0, 1, 1], [], []>} : vector<16x16xbf16>, vector<16x32xbf16>, vector<16x32xf32> -> vector<16x32xf32>
    %257 = tpu.concatenate %247, %250, %253, %256 in 1 : vector<16x32xf32>, vector<16x32xf32>, vector<16x32xf32>, vector<16x32xf32> -> vector<16x128xf32>
    %258 = vector.extract_strided_slice %205 {offsets = [16, 256], sizes = [16, 32], strides = [1, 1]} : vector<32x384xbf16> to vector<16x32xbf16>
    %259 = vector.extract_strided_slice %244 {offsets = [64, 0], sizes = [16, 16], strides = [1, 1]} : vector<128x16xbf16> to vector<16x16xbf16>
    %cst_107 = arith.constant dense<0.000000e+00> : vector<16x32xf32>
    %260 = tpu.matmul %259, %258, %cst_107 {dimension_numbers = #tpu.dot_dimension_numbers<[1], [0], [0], [1], [0, 0, 1, 1], [], []>} : vector<16x16xbf16>, vector<16x32xbf16>, vector<16x32xf32> -> vector<16x32xf32>
    %261 = vector.extract_strided_slice %205 {offsets = [16, 288], sizes = [16, 32], strides = [1, 1]} : vector<32x384xbf16> to vector<16x32xbf16>
    %262 = vector.extract_strided_slice %244 {offsets = [80, 0], sizes = [16, 16], strides = [1, 1]} : vector<128x16xbf16> to vector<16x16xbf16>
    %cst_108 = arith.constant dense<0.000000e+00> : vector<16x32xf32>
    %263 = tpu.matmul %262, %261, %cst_108 {dimension_numbers = #tpu.dot_dimension_numbers<[1], [0], [0], [1], [0, 0, 1, 1], [], []>} : vector<16x16xbf16>, vector<16x32xbf16>, vector<16x32xf32> -> vector<16x32xf32>
    %264 = vector.extract_strided_slice %205 {offsets = [16, 320], sizes = [16, 32], strides = [1, 1]} : vector<32x384xbf16> to vector<16x32xbf16>
    %265 = vector.extract_strided_slice %244 {offsets = [96, 0], sizes = [16, 16], strides = [1, 1]} : vector<128x16xbf16> to vector<16x16xbf16>
    %cst_109 = arith.constant dense<0.000000e+00> : vector<16x32xf32>
    %266 = tpu.matmul %265, %264, %cst_109 {dimension_numbers = #tpu.dot_dimension_numbers<[1], [0], [0], [1], [0, 0, 1, 1], [], []>} : vector<16x16xbf16>, vector<16x32xbf16>, vector<16x32xf32> -> vector<16x32xf32>
    %267 = vector.extract_strided_slice %205 {offsets = [16, 352], sizes = [16, 32], strides = [1, 1]} : vector<32x384xbf16> to vector<16x32xbf16>
    %268 = vector.extract_strided_slice %244 {offsets = [112, 0], sizes = [16, 16], strides = [1, 1]} : vector<128x16xbf16> to vector<16x16xbf16>
    %cst_110 = arith.constant dense<0.000000e+00> : vector<16x32xf32>
    %269 = tpu.matmul %268, %267, %cst_110 {dimension_numbers = #tpu.dot_dimension_numbers<[1], [0], [0], [1], [0, 0, 1, 1], [], []>} : vector<16x16xbf16>, vector<16x32xbf16>, vector<16x32xf32> -> vector<16x32xf32>
    %270 = tpu.concatenate %260, %263, %266, %269 in 1 : vector<16x32xf32>, vector<16x32xf32>, vector<16x32xf32>, vector<16x32xf32> -> vector<16x128xf32>
    %271 = tpu.concatenate %257, %270 in 0 : vector<16x128xf32>, vector<16x128xf32> -> vector<32x128xf32>
    %272 = arith.truncf %271 : vector<32x128xf32> to vector<32x128xbf16>
    %c1_111 = arith.constant 1 : index
    %c0_112 = arith.constant 0 : index
    %c0_113 = arith.constant 0 : index
    %273 = vector.load %arg6[%c1_111, %c0_112, %c0_113] : memref<2x128x128xbf16, #tpu.memory_space<vmem>>, vector<1x128x128xbf16>
    %274 = vector.shape_cast %273 : vector<1x128x128xbf16> to vector<128x128xbf16>
    %cst_114 = arith.constant dense<0.000000e+00> : vector<32x128xf32>
    %275 = tpu.matmul %272, %274, %cst_114 {dimension_numbers = #tpu.dot_dimension_numbers<[1], [0], [0], [1], [0, 0, 1, 1], [], []>} : vector<32x128xbf16>, vector<128x128xbf16>, vector<32x128xf32> -> vector<32x128xf32>
    %c1_115 = arith.constant 1 : index
    %c0_116 = arith.constant 0 : index
    %c0_117 = arith.constant 0 : index
    %276 = vector.load %arg7[%c1_115, %c0_116, %c0_117] : memref<2x1x128xf32, #tpu.memory_space<vmem>>, vector<1x1x128xf32>
    %277 = vector.shape_cast %276 : vector<1x1x128xf32> to vector<1x128xf32>
    %278 = vector.broadcast %277 : vector<1x128xf32> to vector<32x128xf32>
    %279 = arith.addf %275, %278 : vector<32x128xf32>
    %280 = arith.addf %279, %196 : vector<32x128xf32>
    %c1_118 = arith.constant 1 : index
    %c0_119 = arith.constant 0 : index
    %c0_120 = arith.constant 0 : index
    %281 = vector.load %arg8[%c1_118, %c0_119, %c0_120] : memref<2x1x128xf32, #tpu.memory_space<vmem>>, vector<1x1x128xf32>
    %282 = vector.shape_cast %281 : vector<1x1x128xf32> to vector<1x128xf32>
    %c1_121 = arith.constant 1 : index
    %c0_122 = arith.constant 0 : index
    %c0_123 = arith.constant 0 : index
    %283 = vector.load %arg9[%c1_121, %c0_122, %c0_123] : memref<2x1x128xf32, #tpu.memory_space<vmem>>, vector<1x1x128xf32>
    %284 = vector.shape_cast %283 : vector<1x1x128xf32> to vector<1x128xf32>
    %cst_124 = arith.constant dense<0.000000e+00> : vector<32xf32>
    %285 = vector.multi_reduction <add>, %280, %cst_124 [1] : vector<32x128xf32> to vector<32xf32>
    %286 = vector.shape_cast %285 : vector<32xf32> to vector<32x1xf32>
    %cst_125 = arith.constant 1.280000e+02 : f32
    %287 = vector.broadcast %cst_125 : f32 to vector<32x1xf32>
    %288 = arith.divf %286, %287 : vector<32x1xf32>
    %289 = vector.broadcast %288 : vector<32x1xf32> to vector<32x128xf32>
    %290 = arith.subf %280, %289 : vector<32x128xf32>
    %291 = arith.mulf %290, %290 : vector<32x128xf32>
    %cst_126 = arith.constant dense<0.000000e+00> : vector<32xf32>
    %292 = vector.multi_reduction <add>, %291, %cst_126 [1] : vector<32x128xf32> to vector<32xf32>
    %293 = vector.shape_cast %292 : vector<32xf32> to vector<32x1xf32>
    %cst_127 = arith.constant 1.280000e+02 : f32
    %294 = vector.broadcast %cst_127 : f32 to vector<32x1xf32>
    %295 = arith.divf %293, %294 : vector<32x1xf32>
    %cst_128 = arith.constant 9.99999996E-13 : f32
    %296 = vector.broadcast %cst_128 : f32 to vector<32x1xf32>
    %297 = arith.addf %295, %296 : vector<32x1xf32>
    %298 = math.rsqrt %297 : vector<32x1xf32>
    %299 = vector.broadcast %298 : vector<32x1xf32> to vector<32x128xf32>
    %300 = arith.mulf %290, %299 : vector<32x128xf32>
    %301 = vector.broadcast %282 : vector<1x128xf32> to vector<32x128xf32>
    %302 = arith.mulf %300, %301 : vector<32x128xf32>
    %303 = vector.broadcast %284 : vector<1x128xf32> to vector<32x128xf32>
    %304 = arith.addf %302, %303 : vector<32x128xf32>
    %305 = arith.truncf %304 : vector<32x128xf32> to vector<32x128xbf16>
    %c1_129 = arith.constant 1 : index
    %c0_130 = arith.constant 0 : index
    %c0_131 = arith.constant 0 : index
    %306 = vector.load %arg10[%c1_129, %c0_130, %c0_131] : memref<2x128x512xbf16, #tpu.memory_space<vmem>>, vector<1x128x512xbf16>
    %307 = vector.shape_cast %306 : vector<1x128x512xbf16> to vector<128x512xbf16>
    %cst_132 = arith.constant dense<0.000000e+00> : vector<32x512xf32>
    %308 = tpu.matmul %305, %307, %cst_132 {dimension_numbers = #tpu.dot_dimension_numbers<[1], [0], [0], [1], [0, 0, 1, 1], [], []>} : vector<32x128xbf16>, vector<128x512xbf16>, vector<32x512xf32> -> vector<32x512xf32>
    %c1_133 = arith.constant 1 : index
    %c0_134 = arith.constant 0 : index
    %c0_135 = arith.constant 0 : index
    %309 = vector.load %arg11[%c1_133, %c0_134, %c0_135] : memref<2x1x512xf32, #tpu.memory_space<vmem>>, vector<1x1x512xf32>
    %310 = vector.shape_cast %309 : vector<1x1x512xf32> to vector<1x512xf32>
    %311 = vector.broadcast %310 : vector<1x512xf32> to vector<32x512xf32>
    %312 = arith.addf %308, %311 : vector<32x512xf32>
    %cst_136 = arith.constant 5.000000e-01 : f32
    %313 = vector.broadcast %cst_136 : f32 to vector<32x512xf32>
    %314 = arith.mulf %313, %312 : vector<32x512xf32>
    %cst_137 = arith.constant 4.471500e-02 : f32
    %315 = vector.broadcast %cst_137 : f32 to vector<32x512xf32>
    %316 = arith.mulf %315, %312 : vector<32x512xf32>
    %317 = arith.mulf %316, %312 : vector<32x512xf32>
    %318 = arith.mulf %317, %312 : vector<32x512xf32>
    %319 = arith.addf %312, %318 : vector<32x512xf32>
    %cst_138 = arith.constant 0.797884583 : f32
    %320 = vector.broadcast %cst_138 : f32 to vector<32x512xf32>
    %321 = arith.mulf %320, %319 : vector<32x512xf32>
    %322 = math.tanh %321 : vector<32x512xf32>
    %cst_139 = arith.constant 1.000000e+00 : f32
    %323 = vector.broadcast %cst_139 : f32 to vector<32x512xf32>
    %324 = arith.addf %323, %322 : vector<32x512xf32>
    %325 = arith.mulf %314, %324 : vector<32x512xf32>
    %326 = arith.truncf %325 : vector<32x512xf32> to vector<32x512xbf16>
    %c1_140 = arith.constant 1 : index
    %c0_141 = arith.constant 0 : index
    %c0_142 = arith.constant 0 : index
    %327 = vector.load %arg12[%c1_140, %c0_141, %c0_142] : memref<2x512x128xbf16, #tpu.memory_space<vmem>>, vector<1x512x128xbf16>
    %328 = vector.shape_cast %327 : vector<1x512x128xbf16> to vector<512x128xbf16>
    %cst_143 = arith.constant dense<0.000000e+00> : vector<32x128xf32>
    %329 = tpu.matmul %326, %328, %cst_143 {dimension_numbers = #tpu.dot_dimension_numbers<[1], [0], [0], [1], [0, 0, 1, 1], [], []>} : vector<32x512xbf16>, vector<512x128xbf16>, vector<32x128xf32> -> vector<32x128xf32>
    %c1_144 = arith.constant 1 : index
    %c0_145 = arith.constant 0 : index
    %c0_146 = arith.constant 0 : index
    %330 = vector.load %arg13[%c1_144, %c0_145, %c0_146] : memref<2x1x128xf32, #tpu.memory_space<vmem>>, vector<1x1x128xf32>
    %331 = vector.shape_cast %330 : vector<1x1x128xf32> to vector<1x128xf32>
    %332 = vector.broadcast %331 : vector<1x128xf32> to vector<32x128xf32>
    %333 = arith.addf %329, %332 : vector<32x128xf32>
    %334 = arith.addf %333, %304 : vector<32x128xf32>
    %c1_147 = arith.constant 1 : index
    %c0_148 = arith.constant 0 : index
    %c0_149 = arith.constant 0 : index
    %335 = vector.load %arg14[%c1_147, %c0_148, %c0_149] : memref<2x1x128xf32, #tpu.memory_space<vmem>>, vector<1x1x128xf32>
    %336 = vector.shape_cast %335 : vector<1x1x128xf32> to vector<1x128xf32>
    %c1_150 = arith.constant 1 : index
    %c0_151 = arith.constant 0 : index
    %c0_152 = arith.constant 0 : index
    %337 = vector.load %arg15[%c1_150, %c0_151, %c0_152] : memref<2x1x128xf32, #tpu.memory_space<vmem>>, vector<1x1x128xf32>
    %338 = vector.shape_cast %337 : vector<1x1x128xf32> to vector<1x128xf32>
    %cst_153 = arith.constant dense<0.000000e+00> : vector<32xf32>
    %339 = vector.multi_reduction <add>, %334, %cst_153 [1] : vector<32x128xf32> to vector<32xf32>
    %340 = vector.shape_cast %339 : vector<32xf32> to vector<32x1xf32>
    %cst_154 = arith.constant 1.280000e+02 : f32
    %341 = vector.broadcast %cst_154 : f32 to vector<32x1xf32>
    %342 = arith.divf %340, %341 : vector<32x1xf32>
    %343 = vector.broadcast %342 : vector<32x1xf32> to vector<32x128xf32>
    %344 = arith.subf %334, %343 : vector<32x128xf32>
    %345 = arith.mulf %344, %344 : vector<32x128xf32>
    %cst_155 = arith.constant dense<0.000000e+00> : vector<32xf32>
    %346 = vector.multi_reduction <add>, %345, %cst_155 [1] : vector<32x128xf32> to vector<32xf32>
    %347 = vector.shape_cast %346 : vector<32xf32> to vector<32x1xf32>
    %cst_156 = arith.constant 1.280000e+02 : f32
    %348 = vector.broadcast %cst_156 : f32 to vector<32x1xf32>
    %349 = arith.divf %347, %348 : vector<32x1xf32>
    %cst_157 = arith.constant 9.99999996E-13 : f32
    %350 = vector.broadcast %cst_157 : f32 to vector<32x1xf32>
    %351 = arith.addf %349, %350 : vector<32x1xf32>
    %352 = math.rsqrt %351 : vector<32x1xf32>
    %353 = vector.broadcast %352 : vector<32x1xf32> to vector<32x128xf32>
    %354 = arith.mulf %344, %353 : vector<32x128xf32>
    %355 = vector.broadcast %336 : vector<1x128xf32> to vector<32x128xf32>
    %356 = arith.mulf %354, %355 : vector<32x128xf32>
    %357 = vector.broadcast %338 : vector<1x128xf32> to vector<32x128xf32>
    %358 = arith.addf %356, %357 : vector<32x128xf32>
    %359 = vector.extract_strided_slice %358 {offsets = [0, 0], sizes = [1, 128], strides = [1, 1]} : vector<32x128xf32> to vector<1x128xf32>
    %360 = vector.extract_strided_slice %358 {offsets = [16, 0], sizes = [1, 128], strides = [1, 1]} : vector<32x128xf32> to vector<1x128xf32>
    %361 = tpu.concatenate %359, %360 in 0 : vector<1x128xf32>, vector<1x128xf32> -> vector<2x128xf32>
    %362 = arith.truncf %361 : vector<2x128xf32> to vector<2x128xbf16>
    %c0_158 = arith.constant 0 : index
    %c0_159 = arith.constant 0 : index
    %363 = vector.load %arg16[%c0_158, %c0_159] : memref<128x128xbf16, #tpu.memory_space<vmem>>, vector<128x128xbf16>
    %cst_160 = arith.constant dense<0.000000e+00> : vector<2x128xf32>
    %364 = tpu.matmul %362, %363, %cst_160 {dimension_numbers = #tpu.dot_dimension_numbers<[1], [0], [0], [1], [0, 0, 1, 1], [], []>} : vector<2x128xbf16>, vector<128x128xbf16>, vector<2x128xf32> -> vector<2x128xf32>
    %c0_161 = arith.constant 0 : index
    %c0_162 = arith.constant 0 : index
    %365 = vector.load %arg17[%c0_161, %c0_162] : memref<1x128xf32, #tpu.memory_space<vmem>>, vector<1x128xf32>
    %366 = vector.broadcast %365 : vector<1x128xf32> to vector<2x128xf32>
    %367 = arith.addf %364, %366 : vector<2x128xf32>
    %368 = math.tanh %367 : vector<2x128xf32>
    %c0_163 = arith.constant 0 : index
    %c0_164 = arith.constant 0 : index
    %369 = vector.load %arg18[%c0_163, %c0_164] : memref<1x128xf32, #tpu.memory_space<vmem>>, vector<1x128xf32>
    %370 = vector.broadcast %369 : vector<1x128xf32> to vector<2x128xf32>
    %371 = arith.mulf %368, %370 : vector<2x128xf32>
    %cst_165 = arith.constant dense<0.000000e+00> : vector<2xf32>
    %372 = vector.multi_reduction <add>, %371, %cst_165 [1] : vector<2x128xf32> to vector<2xf32>
    %373 = vector.shape_cast %372 : vector<2xf32> to vector<2x1xf32>
    %c0_166 = arith.constant 0 : index
    %c0_167 = arith.constant 0 : index
    %374 = vector.load %arg19[%c0_166, %c0_167] : memref<1x1xf32, #tpu.memory_space<vmem>>, vector<1x1xf32>
    %375 = vector.broadcast %374 : vector<1x1xf32> to vector<2x1xf32>
    %376 = arith.addf %373, %375 : vector<2x1xf32>
    %c0_168 = arith.constant 0 : index
    %c0_169 = arith.constant 0 : index
    %377 = vector.load %arg20[%c0_168, %c0_169] : memref<2x1xf32, #tpu.memory_space<vmem>>, vector<2x1xf32>
    tpu.vector_store %arg20[%c0_168, %c0_169], %376 {strides = array<i32>} : memref<2x1xf32, #tpu.memory_space<vmem>>, vector<2x1xf32>,
    return
  }
}

</mosaic_0001>

<bundles_post_ra>
// kernel: bert_finetune_forward.1
= control target key start
LH: loop header
LB: loop body
LE: loop exit
PB: predicated region body
PF: predicated region fallthrough
CT: control target
= control target key end

     0   :  { %s7119_s0 = inlined_call_operand.vmem [shape: f32[32,128], index: 0, kind: input, shape index: {}]   ;;  %s7120_s1 = inlined_call_operand.vmem [shape: f32[2,16], index: 1, kind: input, shape index: {}]   ;;  %s7121_s2 = inlined_call_operand.vmem [shape: f32[1,128], index: 2, kind: input, shape index: {}]   ;;  %s7122_s3 = inlined_call_operand.vmem [shape: f32[1,128], index: 3, kind: input, shape index: {}]   ;;  %s7123_s4 = inlined_call_operand.vmem [shape: bf16[2,128,384], index: 4, kind: input, shape index: {}]   ;;  %s7124_s5 = inlined_call_operand.vmem [shape: f32[2,1,384], index: 5, kind: input, shape index: {}]   ;;  %s7125_s6 = inlined_call_operand.vmem [shape: bf16[2,128,128], index: 6, kind: input, shape index: {}]   ;;  %s7126_s7 = inlined_call_operand.vmem [shape: f32[2,1,128], index: 7, kind: input, shape index: {}]   ;;  %s7127_s8 = inlined_call_operand.vmem [shape: f32[2,1,128], index: 8, kind: input, shape index: {}]   ;;  %s7128_s9 = inlined_call_operand.vmem [shape: f32[2,1,128], index: 9, kind: input, shape index: {}]   ;;  %s7129_s10 = inlined_call_operand.hbm [shape: bf16[2,128,512], index: 10, kind: input, shape index: {}]   ;;  %s7130_s11 = inlined_call_operand.vmem [shape: f32[2,1,512], index: 11, kind: input, shape index: {}]   ;;  %s7131_s12 = inlined_call_operand.hbm [shape: bf16[2,512,128], index: 12, kind: input, shape index: {}]   ;;  %s7132_s13 = inlined_call_operand.vmem [shape: f32[2,1,128], index: 13, kind: input, shape index: {}]   ;;  %s7133_s14 = inlined_call_operand.vmem [shape: f32[2,1,128], index: 14, kind: input, shape index: {}]   ;;  %s7134_s15 = inlined_call_operand.vmem [shape: f32[2,1,128], index: 15, kind: input, shape index: {}]   ;;  %s7135_s16 = inlined_call_operand.vmem [shape: bf16[128,128], index: 16, kind: input, shape index: {}]   ;;  %s7136_s17 = inlined_call_operand.vmem [shape: f32[1,128], index: 17, kind: input, shape index: {}]   ;;  %s7137_s18 = inlined_call_operand.vmem [shape: f32[1,128], index: 18, kind: input, shape index: {}]   ;;  %s7138_s19 = inlined_call_operand.<no memory space> [shape: f32[1,1], index: 19, kind: input, shape index: {}]   ;;  %s7139_s20 = inlined_call_operand.vmem [shape: f32[2,1], index: 20, kind: output, shape index: {}]  }
   0x1   :  { %7142 = sst [smem:[#allocation9_spill]] %s7119_s0  ;;  %v25_v0 = vstv %s7138_s19 }
   0x2   :  { %7143 = sst [smem:[#allocation10_spill]] %s7120_s1  ;;  %26 = vst [vmem:[#allocation2] sm:$0x1] %v25_v0 }
   0x3   :  { %7144 = sst [smem:[#allocation11_spill]] %s7121_s2 }
   0x4   :  { %7145 = sst [smem:[#allocation12_spill]] %s7122_s3 }
   0x5   :  { %7146 = sst [smem:[#allocation13_spill]] %s7123_s4 }
   0x6   :  { %27 = vsyncpa [#allocation4], 0  ;;  %s53_s2 = sshll.u32 %s7129_s10, 4  ;;  %s54_s2 = int_to_ptr.hbm [resolvable:$true] %s53_s2 }
   0x7   :  { %28 = vsyncpa [#allocation6], 0  ;;  %s5706_s25 = smov [#allocation3]   ;;  %s68_s28 = sshll.u32 %s7131_s12, 4  ;;  %s69_s28 = int_to_ptr.hbm [resolvable:$true] %s68_s28 }
   0x8   :  { %s55_s3 = sshll.u32 %s5706_s25, 4  ;;  %s5707_s4 = smov 256   ;;  %s56_s3 = int_to_ptr.vmem [resolvable:$true] %s55_s3 }
   0x9   :  { %s5708_s29 = smov 16   ;;  %s5709_s19 = smov [#allocation5]  }
   0xa   :  { %61 = dma.hbm_to_vmem [thread:$0]  %s54_s2, 8192, %s56_s3, [#allocation4], %s5707_s4, %s5707_s4, %s5708_s29  }
   0xb   :  { %s70_s30 = sshll.u32 %s5709_s19, 4  ;;  %s5710_s0 = smov 64   ;;  %s71_s30 = int_to_ptr.vmem [resolvable:$true] %s70_s30 }
   0xc   :  { %s5711_s21 = smov 4  }
   0xd   :  { %76 = dma.hbm_to_vmem [thread:$0]  %s69_s28, 8192, %s71_s30, [#allocation6], %s5710_s0, %s5710_s0, %s5711_s21  }
   0xe   :  { %5702 = dma.done.wait [#allocation4], 8192  }
   0xf   :  { %5703 = vsyncadd [#allocation4], 4294959104 }
  0x10   :  { %5704 = dma.done.wait [#allocation6], 8192  }
  0x11   :  { %5705 = vsyncadd [#allocation6], 4294959104  ;;  %s7147_s22 = sld [smem:[#allocation9_spill]]  ;;  %v5712_v5 = vmov 128.0   ;;  %vm455_vm13 = vcmask 261120   ;;  %s5713_s1 = smov 96  }
  0x12   :  { %5422 = vrcp.f32 %v5712_v5  ;;  %s7148_s28 = sld [smem:[#allocation13_spill]]  ;;  %vm680_vm14 = vcmask 130048   ;;  %vm1002_vm15 = vcmask 523264  }
  0x13   :  { %s7149_s4 = sld [smem:[#allocation11_spill]] }
  0x14   :  { %s7150_s30 = sld [smem:[#allocation12_spill]] }
  0x15   :  { %s7151_s24 = sld [smem:[#allocation10_spill]] }
  0x17   :  { %v102_v1 = vld [vmem:[%s7147_s22 + $0x10] sm:$0xff]  ;;  %v100_v2 = vld [vmem:[%s7147_s22] sm:$0xff]  ;;  %v101_v3 = vld [vmem:[%s7147_s22 + $0x8] sm:$0xff] }
  0x18   :  { %110 = vadd.xlane.f32.xlu2 %v102_v1  ;;  %106 = vadd.xlane.f32.xlu0 %v100_v2  ;;  %v103_v4 = vld [vmem:[%s7147_s22 + $0x18] sm:$0xff]  ;;  %v5423_v6 = vpop.eup %5422  ;;  %v4334_v28 = vld [vmem:[%s7148_s28 + $0xa8] sm:$0xf]  ;;  %v5158_v29 = vld [vmem:[%s7148_s28 + $0xb0] sm:$0xf0]  ;;  %s5714_s22 = smov 32  }
  0x19   :  { %v115_v7 = vmul.f32 128.0, %v5423_v6  ;;  %vm119_vm0 = vweird.f32 %v5423_v6  ;;  %v5157_v30 = vld [vmem:[%s7148_s28 + $0xac] sm:$0xf]  ;;  %v4335_v31 = vor.u32 %v5158_v29, %v4334_v28  ;;  %v4336_v32 = vld [vmem:[%s7148_s28 + $0xb4] sm:$0xf0] }
  0x1a   :  { %v4342_v33 = vld [vmem:[%s7148_s28 + $0xb0] sm:$0xf]  ;;  %v5159_v34 = vld [vmem:[%s7148_s28 + $0xb8] sm:$0xf0]  ;;  %v4339_v35 = vor.u32 %v5157_v30, %v4336_v32  ;;  %v5154_v39 = vld [vmem:[%s7148_s28 + $0x94] sm:$0xf] }
  0x1b   :  { %v116_v8 = vsub.f32 1.0, %v115_v7  ;;  %v4343_v36 = vor.u32 %v5159_v34, %v4342_v33  ;;  %382 = vmatpush.bf16.msra.mxu0 %v4335_v31  ;;  %v4322_v37 = vld [vmem:[%s7148_s28 + $0x90] sm:$0xf]  ;;  %v5155_v38 = vld [vmem:[%s7148_s28 + $0x98] sm:$0xf0] }
  0x1c   :  { %401 = vmatpush.bf16.msra.mxu1 %v4339_v35  ;;  %v4323_v40 = vor.u32 %v5155_v38, %v4322_v37  ;;  %v4324_v41 = vld [vmem:[%s7148_s28 + $0x9c] sm:$0xf0]  ;;  %v4330_v42 = vld [vmem:[%s7148_s28 + $0x98] sm:$0xf]  ;;  %v5156_v43 = vld [vmem:[%s7148_s28 + $0xa0] sm:$0xf0] }
  0x1d   :  { %v117_v9 = vmul.f32 %v5423_v6, %v116_v8  ;;  %420 = vmatpush.bf16.msra.mxu2 %v4343_v36  ;;  %v4327_v44 = vor.u32 %v5154_v39, %v4324_v41  ;;  %v4331_v45 = vor.u32 %v5156_v43, %v4330_v42  ;;  %v4310_v46 = vld [vmem:[%s7148_s28 + $0x78] sm:$0xf]  ;;  %v5152_v47 = vld [vmem:[%s7148_s28 + $0x80] sm:$0xf0]  ;;  %v5151_v48 = vld [vmem:[%s7148_s28 + $0x7c] sm:$0xf] }
  0x1e   :  { %v4311_v49 = vor.u32 %v5152_v47, %v4310_v46  ;;  %v4312_v50 = vld [vmem:[%s7148_s28 + $0x84] sm:$0xf0]  ;;  %v4318_v51 = vld [vmem:[%s7148_s28 + $0x80] sm:$0xf]  ;;  %v5153_v52 = vld [vmem:[%s7148_s28 + $0x88] sm:$0xf0] }
  0x1f   :  { %v118_v10 = vadd.f32 %v5423_v6, %v117_v9  ;;  %383 = vmatpush.bf16.msra.mxu0 %v4323_v40  ;;  %v4315_v53 = vor.u32 %v5151_v48, %v4312_v50  ;;  %v4319_v54 = vor.u32 %v5153_v52, %v4318_v51  ;;  %v4298_v55 = vld [vmem:[%s7148_s28 + $0x60] sm:$0xf]  ;;  %v5149_v56 = vld [vmem:[%s7148_s28 + $0x68] sm:$0xf0]  ;;  %v5148_v57 = vld [vmem:[%s7148_s28 + $0x64] sm:$0xf] }
  0x20   :  { %108 = vadd.xlane.f32.xlu0 %v101_v3  ;;  %112 = vadd.xlane.f32.xlu2 %v103_v4  ;;  %v4299_v58 = vor.u32 %v5149_v56, %v4298_v55  ;;  %v4300_v59 = vld [vmem:[%s7148_s28 + $0x6c] sm:$0xf0]  ;;  %v4306_v60 = vld [vmem:[%s7148_s28 + $0x68] sm:$0xf]  ;;  %v5150_v61 = vld [vmem:[%s7148_s28 + $0x70] sm:$0xf0] }
  0x21   :  { %v5843_v11 = vsel %vm119_vm0, %v5423_v6, %v118_v10  ;;  %402 = vmatpush.bf16.msra.mxu1 %v4327_v44  ;;  %421 = vmatpush.bf16.msra.mxu2 %v4331_v45  ;;  %v4303_v62 = vor.u32 %v5148_v57, %v4300_v59  ;;  %v4307_v63 = vor.u32 %v5150_v61, %v4306_v60  ;;  %v4286_v0 = vld [vmem:[%s7148_s28 + $0x48] sm:$0xf]  ;;  %v4294_v5 = vld [vmem:[%s7148_s28 + $0x50] sm:$0xf]  ;;  %v5147_v6 = vld [vmem:[%s7148_s28 + $0x58] sm:$0xf0] }
  0x22   :  { %v4295_v8 = vor.u32 %v5147_v6, %v4294_v5  ;;  %v4274_v9 = vld [vmem:[%s7148_s28 + $0x30] sm:$0xf]  ;;  %v5143_v10 = vld [vmem:[%s7148_s28 + $0x38] sm:$0xf0]  ;;  %v4270_v28 = vld [vmem:[%s7148_s28 + $0x20] sm:$0xf] }
  0x23   :  { %384 = vmatpush.bf16.msra.mxu0 %v4311_v49  ;;  %v5141_v29 = vld [vmem:[%s7148_s28 + $0x28] sm:$0xf0]  ;;  %v4250_v35 = vld [vmem:[%s7148_s28] sm:$0xf]  ;;  %v5136_v37 = vld [vmem:[%s7148_s28 + $0x4] sm:$0xf] }
  0x24   :  { %v4271_v33 = vor.u32 %v5141_v29, %v4270_v28  ;;  %v5137_v36 = vld [vmem:[%s7148_s28 + $0x8] sm:$0xf0]  ;;  %v4252_v41 = vld [vmem:[%s7148_s28 + $0xc] sm:$0xf0]  ;;  %v4258_v43 = vld [vmem:[%s7148_s28 + $0x8] sm:$0xf] }
  0x25   :  { %403 = vmatpush.bf16.msra.mxu1 %v4315_v53  ;;  %422 = vmatpush.bf16.msra.mxu2 %v4319_v54  ;;  %v4251_v40 = vor.u32 %v5137_v36, %v4250_v35  ;;  %v4255_v42 = vor.u32 %v5136_v37, %v4252_v41  ;;  %v5138_v44 = vld [vmem:[%s7148_s28 + $0x10] sm:$0xf0]  ;;  %v5405_v6 = vld [vmem:[%s7149_s4] ss:$0 sm:$0xff]  ;;  %vm1005_vm0 = vcmask 785408  }
  0x26   :  { %v4259_v45 = vor.u32 %v5138_v44, %v4258_v43  ;;  %v246_v36 = vld [vmem:[%s7124_s5] sm:$0x7] }
  0x27   :  { %385 = vmatpush.bf16.msra.mxu0 %v4299_v58 }
  0x29   :  { %404 = vmatpush.bf16.msra.mxu1 %v4303_v62  ;;  %423 = vmatpush.bf16.msra.mxu2 %v4307_v63 }
  0x2d   :  { %424 = vmatpush.bf16.msra.mxu2 %v4295_v8 }
  0x8b   :  { %v111_v12 = vpop.xlane.xlu2 %110  ;;  %v107_v13 = vpop.xlane.xlu0 %106 }
  0x8c   :  { %v123_v14 = vmul.f32 %v5843_v11, %v111_v12  ;;  %v121_v15 = vmul.f32 %v5843_v11, %v107_v13  ;;  %v5142_v12 = vld [vmem:[%s7148_s28 + $0x34] sm:$0xf]  ;;  %v4275_v13 = vor.u32 %v5143_v10, %v4274_v9 }
  0x8e   :  { %v5847_v16 = vsub.f32 %v102_v1, %v123_v14  ;;  %v5849_v17 = vsub.f32 %v100_v2, %v121_v15  ;;  %v5146_v1 = vld [vmem:[%s7148_s28 + $0x50] sm:$0xf0]  ;;  %v5145_v2 = vld [vmem:[%s7148_s28 + $0x4c] sm:$0xf]  ;;  %v4276_v14 = vld [vmem:[%s7148_s28 + $0x3c] sm:$0xf0] }
  0x8f   :  { %v4282_v15 = vld [vmem:[%s7148_s28 + $0x38] sm:$0xf] }
  0x90   :  { %v131_v18 = vmul.f32 %v5847_v16, %v5847_v16  ;;  %v129_v19 = vmul.f32 %v5849_v17, %v5849_v17 }
  0x92   :  { %137 = vadd.xlane.f32.xlu0 %v131_v18  ;;  %133 = vadd.xlane.f32.xlu1 %v129_v19  ;;  %v5144_v18 = vld [vmem:[%s7148_s28 + $0x40] sm:$0xf0]  ;;  %v4279_v19 = vor.u32 %v5142_v12, %v4276_v14 }
  0x93   :  { %v109_v20 = vpop.xlane.xlu0 %108  ;;  %v113_v21 = vpop.xlane.xlu2 %112 }
  0x94   :  { %v122_v22 = vmul.f32 %v5843_v11, %v109_v20  ;;  %v124_v24 = vmul.f32 %v5843_v11, %v113_v21  ;;  %v4283_v20 = vor.u32 %v5144_v18, %v4282_v15  ;;  %v4262_v21 = vld [vmem:[%s7148_s28 + $0x18] sm:$0xf]  ;;  %v5406_v15 = vld [vmem:[%s7150_s30] ss:$0 sm:$0xff] }
  0x96   :  { %v5856_v23 = vsub.f32 %v101_v3, %v122_v22  ;;  %v5861_v26 = vsub.f32 %v103_v4, %v124_v24  ;;  %v4287_v3 = vor.u32 %v5146_v1, %v4286_v0  ;;  %v4288_v4 = vld [vmem:[%s7148_s28 + $0x54] sm:$0xf0]  ;;  %425 = vmatpush.bf16.msra.mxu2 %v4283_v20  ;;  %v5140_v22 = vld [vmem:[%s7148_s28 + $0x20] sm:$0xf0]  ;;  %v5139_v24 = vld [vmem:[%s7148_s28 + $0x1c] sm:$0xf] }
  0x97   :  { %v4291_v7 = vor.u32 %v5145_v2, %v4288_v4 }
  0x98   :  { %v130_v25 = vmul.f32 %v5856_v23, %v5856_v23  ;;  %v132_v27 = vmul.f32 %v5861_v26, %v5861_v26  ;;  %386 = vmatpush.bf16.msra.mxu0 %v4287_v3 }
  0x99   :  { %405 = vmatpush.bf16.msra.mxu1 %v4291_v7 }
  0x9a   :  { %135 = vadd.xlane.f32.xlu1 %v130_v25  ;;  %v4263_v25 = vor.u32 %v5140_v22, %v4262_v21  ;;  %426 = vmatpush.bf16.msra.mxu2 %v4271_v33 }
  0x9c   :  { %387 = vmatpush.bf16.msra.mxu0 %v4275_v13 }
  0x9d   :  { %406 = vmatpush.bf16.msra.mxu1 %v4279_v19 }
  0x9e   :  { %427 = vmatpush.bf16.msra.mxu2 %v4259_v45 }
  0xa0   :  { %388 = vmatpush.bf16.msra.mxu0 %v4263_v25 }
  0xa2   :  { %139 = vadd.xlane.f32.xlu1 %v132_v27  ;;  %v4264_v27 = vld [vmem:[%s7148_s28 + $0x24] sm:$0xf0] }
  0xa3   :  { %v4267_v32 = vor.u32 %v5139_v24, %v4264_v27 }
  0xa4   :  { %389 = vmatpush.bf16.msra.mxu0 %v4251_v40 }
  0xa5   :  { %407 = vmatpush.bf16.msra.mxu1 %v4267_v32 }
  0xa9   :  { %408 = vmatpush.bf16.msra.mxu1 %v4255_v42  ;;  %v250_v42 = vperm.slane %v246_v36, 2 }
 0x105   :  { %v134_v30 = vpop.xlane.xlu1 %133  ;;  %v138_v31 = vpop.xlane.xlu0 %137 }
 0x106   :  { %v141_v34 = vmul.f32 %v134_v30, %v5843_v11  ;;  %v143_v39 = vmul.f32 %v138_v31, %v5843_v11 }
 0x108   :  { %v145_v38 = vadd.f32 1e-12, %v141_v34  ;;  %v147_v46 = vadd.f32 1e-12, %v143_v39 }
 0x10a   :  { %5424 = vrsqrt.f32 %v145_v38  ;;  %vm155_vm2 = vweird.f32 %v145_v38  ;;  %vm175_vm7 = vweird.f32 %v147_v46 }
 0x10b   :  { %5426 = vrsqrt.f32 %v147_v46 }
 0x10d   :  { %v136_v47 = vpop.xlane.xlu1 %135 }
 0x10e   :  { %v142_v48 = vmul.f32 %v136_v47, %v5843_v11 }
 0x110   :  { %v5425_v49 = vpop.eup %5424  ;;  %v146_v50 = vadd.f32 1e-12, %v142_v48 }
 0x111   :  { %v150_v51 = vmul.f32 %v5425_v49, %v145_v38  ;;  %v5427_v55 = vpop.eup %5426  ;;  %vm156_vm1 = vweird.f32 %v5425_v49  ;;  %v248_v38 = vperm.slane %v246_v36, 0 }
 0x112   :  { %5428 = vrsqrt.f32 %v146_v50  ;;  %v170_v61 = vmul.f32 %v5427_v55, %v147_v46  ;;  %vm157_vm3 = vmor %vm155_vm2, %vm156_vm1  ;;  %vm165_vm5 = vweird.f32 %v146_v50  ;;  %vm176_vm8 = vweird.f32 %v5427_v55 }
 0x113   :  { %v151_v52 = vmul.f32 %v5425_v49, %v150_v51  ;;  %vm177_vm11 = vmor %vm175_vm7, %vm176_vm8 }
 0x114   :  { %v171_v1 = vmul.f32 %v5427_v55, %v170_v61 }
 0x115   :  { %v152_v53 = vmul.f32 0.5, %v151_v52  ;;  %v140_v54 = vpop.xlane.xlu1 %139 }
 0x116   :  { %v144_v56 = vmul.f32 %v140_v54, %v5843_v11  ;;  %v172_v7 = vmul.f32 0.5, %v171_v1 }
 0x117   :  { %v153_v57 = vsub.f32 1.5, %v152_v53 }
 0x118   :  { %v5429_v58 = vpop.eup %5428  ;;  %v148_v59 = vadd.f32 1e-12, %v144_v56  ;;  %v173_v18 = vsub.f32 1.5, %v172_v7 }
 0x119   :  { %v154_v60 = vmul.f32 %v5425_v49, %v153_v57  ;;  %v160_v62 = vmul.f32 %v5429_v58, %v146_v50  ;;  %vm166_vm4 = vweird.f32 %v5429_v58 }
 0x11a   :  { %5430 = vrsqrt.f32 %v148_v59  ;;  %vm167_vm6 = vmor %vm165_vm5, %vm166_vm4  ;;  %vm185_vm9 = vweird.f32 %v148_v59  ;;  %v174_v24 = vmul.f32 %v5427_v55, %v173_v18 }
 0x11b   :  { %v161_v63 = vmul.f32 %v5429_v58, %v160_v62  ;;  %v158_v0 = vsel %vm157_vm3, %v5425_v49, %v154_v60 }
 0x11c   :  { %v189_v5 = vmul.f32 %v158_v0, %v5849_v17  ;;  %v178_v28 = vsel %vm177_vm11, %v5427_v55, %v174_v24 }
 0x11d   :  { %v162_v2 = vmul.f32 0.5, %v161_v63  ;;  %v191_v30 = vmul.f32 %v178_v28, %v5847_v16  ;;  %v249_v16 = vperm.slane %v246_v36, 1 }
 0x11e   :  { %v196_v14 = vmul.f32 %v5405_v6, %v189_v5 }
 0x11f   :  { %v163_v3 = vsub.f32 1.5, %v162_v2  ;;  %v198_v32 = vmul.f32 %v5405_v6, %v191_v30 }
 0x120   :  { %v5431_v4 = vpop.eup %5430  ;;  %v6021_v21 = vadd.f32 %v5406_v15, %v196_v14 }
 0x121   :  { %v164_v8 = vmul.f32 %v5429_v58, %v163_v3  ;;  %v180_v9 = vmul.f32 %v5431_v4, %v148_v59  ;;  %vm186_vm10 = vweird.f32 %v5431_v4  ;;  %v6031_v34 = vadd.f32 %v5406_v15, %v198_v32 }
 0x122   :  { %vm187_vm12 = vmor %vm185_vm9, %vm186_vm10 }
 0x123   :  { %v168_v10 = vsel %vm167_vm6, %v5429_v58, %v164_v8  ;;  %v181_v12 = vmul.f32 %v5431_v4, %v180_v9 }
 0x124   :  { %v190_v13 = vmul.f32 %v168_v10, %v5856_v23 }
 0x125   :  { %v182_v17 = vmul.f32 0.5, %v181_v12 }
 0x126   :  { %v197_v19 = vmul.f32 %v5405_v6, %v190_v13 }
 0x127   :  { %v183_v20 = vsub.f32 1.5, %v182_v17 }
 0x128   :  { %v6023_v22 = vadd.f32 %v5406_v15, %v197_v19 }
 0x129   :  { %v184_v23 = vmul.f32 %v5431_v4, %v183_v20 }
 0x12a   :  { %v212_v25 = vpack.c.bf16 %v6023_v22, %v6021_v21 }
 0x12b   :  { %v188_v27 = vsel %vm187_vm12, %v5431_v4, %v184_v23 }
 0x12c   :  { %390 = vmatmul.bf16.vlgmr.msra.gmra.mxu0 %v212_v25  ;;  %409 = vmatmul.bf16.vlgmr.msra.gmra.mxu1 %v212_v25  ;;  %v192_v29 = vmul.f32 %v188_v27, %v5861_v26 }
 0x12d   :  { %428 = vmatmul.bf16.vlgmr.msra.gmra.mxu2 %v212_v25 }
 0x12e   :  { %v199_v31 = vmul.f32 %v5405_v6, %v192_v29 }
 0x130   :  { %v6029_v33 = vadd.f32 %v5406_v15, %v199_v31 }
 0x132   :  { %v213_v35 = vpack.c.bf16 %v6029_v33, %v6031_v34 }
 0x13c   :  { %395 = vmatmul.bf16.gmra.mxu0 %v213_v35  ;;  %414 = vmatmul.bf16.gmra.mxu1 %v213_v35 }
 0x13d   :  { %433 = vmatmul.bf16.gmra.mxu2 %v213_v35 }
 0x1a9   :  { %v391_v37 = vpop.f32.mrf.mxu0  ;;  %v410_v26 = vpop.f32.mrf.mxu1 }
 0x1aa   :  { %v392_v39 = vadd.f32 %v391_v37, %v248_v38  ;;  %v411_v40 = vadd.f32 %v410_v26, %v249_v16 }
 0x1ac   :  { %v439_v45 = vpack.c.bf16 %v411_v40, %v392_v39  ;;  %v207_v40 = vld [vmem:[%s7151_s24] sm:$0x3] }
 0x1ae   :  { %v449_v50 = vunpack.c.l.b16 %v439_v45  ;;  %v452_v51 = vunpack.c.h.b16 %v439_v45 }
 0x1b0   :  { %v429_v41 = vpop.f32.mrf.mxu2 }
 0x1b1   :  { %v393_v43 = vpop.f32.mrf.mxu0  ;;  %v412_v44 = vpop.f32.mrf.mxu1  ;;  %v430_v49 = vadd.f32 %v429_v41, %v250_v42 }
 0x1b2   :  { %v394_v46 = vadd.f32 %v393_v43, %v248_v38  ;;  %v413_v47 = vadd.f32 %v412_v44, %v249_v16 }
 0x1b3   :  { %v440_v57 = vpack.c.bf16 %v430_v49, %v430_v49 }
 0x1b4   :  { %v441_v48 = vpack.c.bf16 %v413_v47, %v394_v46 }
 0x1b5   :  { %v880_v63 = vunpack.c.l.b16 %v440_v57 }
 0x1b6   :  { %v450_v52 = vunpack.c.l.b16 %v441_v48  ;;  %v453_v53 = vunpack.c.h.b16 %v441_v48 }
 0x1b8   :  { %v431_v54 = vpop.f32.mrf.mxu2  ;;  %v454_v55 = vpack.c.b16 %v453_v53, %v452_v51  ;;  %v451_v56 = vpack.c.b16 %v450_v52, %v449_v50 }
 0x1b9   :  { %v432_v58 = vadd.f32 %v431_v54, %v250_v42  ;;  %v396_v59 = vpop.f32.mrf.mxu0  ;;  %v415_v60 = vpop.f32.mrf.mxu1 }
 0x1ba   :  { %502 = vrot.lane.b32.xlu1 %v454_v55, %s5710_s0  ;;  %478 = vrot.lane.b32.xlu2 %v454_v55, %s5713_s1  ;;  %v460_v61 = vsel %vm455_vm13, %v454_v55, 0  ;;  %v397_v1 = vadd.f32 %v396_v59, %v248_v38  ;;  %v416_v2 = vadd.f32 %v415_v60, %v249_v16 }
 0x1bb   :  { %v442_v62 = vpack.c.bf16 %v432_v58, %v432_v58  ;;  %476 = vrot.lane.b32.xlu0 %v451_v56, %s5713_s1  ;;  %469 = vmatpush.bf16.xpose.msra.mxu3 %v460_v61 }
 0x1bc   :  { %v443_v7 = vpack.c.bf16 %v416_v2, %v397_v1 }
 0x1bd   :  { %v881_v0 = vunpack.c.l.b16 %v442_v62 }
 0x1be   :  { %v553_v13 = vunpack.c.h.b16 %v443_v7  ;;  %v550_v28 = vunpack.c.l.b16 %v443_v7 }
 0x1bf   :  { %v6042_v3 = vpack.c.b16 %v881_v0, %v880_v63 }
 0x1c0   :  { %v434_v4 = vpop.f32.mrf.mxu2 }
 0x1c1   :  { %894 = vmatpush.bf16.msrb.mxu0 %v6042_v3  ;;  %v398_v5 = vpop.f32.mrf.mxu0  ;;  %v417_v6 = vpop.f32.mrf.mxu1  ;;  %v435_v12 = vadd.f32 %v434_v4, %v250_v42 }
 0x1c2   :  { %v399_v8 = vadd.f32 %v398_v5, %v248_v38  ;;  %v418_v9 = vadd.f32 %v417_v6, %v249_v16  ;;  %500 = vrot.lane.b32.xlu2 %v451_v56, %s5710_s0  ;;  %4344 = vmatmul.msk.bf16.vlgmr.msra.gmra.mxu3 %vm455_vm13, %v451_v56 }
 0x1c3   :  { %526 = vrot.lane.b32.xlu0 %v454_v55, %s5714_s22  ;;  %v444_v17 = vpack.c.bf16 %v435_v12, %v435_v12 }
 0x1c4   :  { %v445_v10 = vpack.c.bf16 %v418_v9, %v399_v8 }
 0x1c5   :  { %v1015_v25 = vunpack.c.l.b16 %v444_v17 }
 0x1c6   :  { %v554_v14 = vunpack.c.h.b16 %v445_v10  ;;  %v551_v23 = vunpack.c.l.b16 %v445_v10 }
 0x1c8   :  { %v436_v15 = vpop.f32.mrf.mxu2  ;;  %v555_v18 = vpack.c.b16 %v554_v14, %v553_v13  ;;  %v552_v30 = vpack.c.b16 %v551_v23, %v550_v28 }
 0x1c9   :  { %v437_v19 = vadd.f32 %v436_v15, %v250_v42  ;;  %v208_v42 = vsub.f32 1.0, %v207_v40 }
 0x1ca   :  { %524 = vrot.lane.b32.xlu2 %v451_v56, %s5714_s22  ;;  %602 = vrot.lane.b32.xlu1 %v555_v18, %s5710_s0  ;;  %v560_v20 = vsel %vm455_vm13, %v555_v18, 0 }
 0x1cb   :  { %v446_v24 = vpack.c.bf16 %v437_v19, %v437_v19  ;;  %626 = vrot.lane.b32.xlu0 %v555_v18, %s5714_s22  ;;  %569 = vmatpush.bf16.xpose.msrb.mxu2 %v560_v20  ;;  %v209_v46 = vmul.f32 -10000.0, %v208_v42 }
 0x1cd   :  { %v1016_v27 = vunpack.c.l.b16 %v446_v24  ;;  %v6070_v48 = vperm.slane %v209_v46, 0  ;;  %v6086_v60 = vperm.slane %v209_v46, 1 }
 0x1cf   :  { %v6052_v29 = vpack.c.b16 %v1016_v27, %v1015_v25 }
 0x1d1   :  { %1029 = vmatpush.bf16.msra.mxu0 %v6052_v29 }
 0x1d2   :  { %624 = vrot.lane.b32.xlu1 %v552_v30, %s5714_s22  ;;  %600 = vrot.lane.b32.xlu2 %v552_v30, %s5710_s0 }
 0x1d3   :  { %578 = vrot.lane.b32.xlu0 %v555_v18, %s5713_s1  ;;  %4348 = vmatmul.msk.bf16.vlgmr.msrb.gmra.mxu2 %vm455_vm13, %v552_v30 }
 0x1da   :  { %576 = vrot.lane.b32.xlu2 %v552_v30, %s5713_s1 }
 0x214   :  { %v479_v31 = vpop.permute.xlu2 %478 }
 0x215   :  { %v484_v32 = vsel %vm455_vm13, %v479_v31, 0 }
 0x216   :  { %493 = vmatpush.bf16.xpose.msrb.mxu3 %v484_v32 }
 0x21c   :  { %v501_v26 = vpop.permute.xlu2 %500 }
 0x224   :  { %v525_v39 = vpop.permute.xlu2 %524 }
 0x22c   :  { %v503_v35 = vpop.permute.xlu1 %502  ;;  %v601_v47 = vpop.permute.xlu2 %600 }
 0x22d   :  { %v508_v36 = vsel %vm455_vm13, %v503_v35, 0  ;;  %v477_v37 = vpop.permute.xlu0 %476 }
 0x22e   :  { %4345 = vmatmul.msk.bf16.vlgmr.msrb.gmra.mxu3 %vm455_vm13, %v477_v37 }
 0x22f   :  { %517 = vmatpush.bf16.xpose.msra.mxu3 %v508_v36 }
 0x234   :  { %v577_v55 = vpop.permute.xlu2 %576 }
 0x235   :  { %v527_v38 = vpop.permute.xlu0 %526 }
 0x236   :  { %v532_v16 = vsel %vm455_vm13, %v527_v38, 0 }
 0x237   :  { %541 = vmatpush.bf16.xpose.msrb.mxu3 %v532_v16 }
 0x23c   :  { %v603_v41 = vpop.permute.xlu1 %602 }
 0x23d   :  { %v608_v43 = vsel %vm455_vm13, %v603_v41, 0  ;;  %v627_v44 = vpop.permute.xlu0 %626 }
 0x23e   :  { %v632_v45 = vsel %vm455_vm13, %v627_v44, 0  ;;  %4346 = vmatmul.msk.bf16.vlgmr.msra.gmra.mxu3 %vm455_vm13, %v501_v26  ;;  %617 = vmatpush.bf16.xpose.msra.mxu2 %v608_v43 }
 0x23f   :  { %641 = vmatpush.bf16.xpose.msra.mxu3 %v632_v45 }
 0x244   :  { %v625_v1 = vpop.permute.xlu1 %624 }
 0x245   :  { %v579_v49 = vpop.permute.xlu0 %578  ;;  %v471_v50 = vpop.f32.mrf.mxu3  ;;  %4350 = vmatmul.msk.bf16.vlgmr.msra.gmra.mxu2 %vm455_vm13, %v601_v47 }
 0x246   :  { %v648_v51 = vmul.f32 0.17677669, %v471_v50  ;;  %v584_v52 = vsel %vm455_vm13, %v579_v49, 0 }
 0x247   :  { %593 = vmatpush.bf16.xpose.msrb.mxu1 %v584_v52 }
 0x248   :  { %v6075_v53 = vadd.f32 %v648_v51, %v6070_v48 }
 0x24a   :  { %v681_v54 = vsel %vm680_vm14, %v6075_v53, -inf }
 0x24b   :  { %682 = vmax.xlane.f32.xlu1 %v681_v54 }
 0x24d   :  { %v473_v56 = vpop.f32.mrf.mxu3 }
 0x24e   :  { %v649_v57 = vmul.f32 0.17677669, %v473_v56  ;;  %4347 = vmatmul.msk.bf16.vlgmr.msrb.gmra.mxu3 %vm455_vm13, %v525_v39  ;;  %4349 = vmatmul.msk.bf16.vlgmr.msrb.gmra.mxu1 %vm455_vm13, %v577_v55 }
 0x250   :  { %v6082_v58 = vadd.f32 %v649_v57, %v6070_v48 }
 0x252   :  { %v684_v59 = vsel %vm680_vm14, %v6082_v58, -inf }
 0x253   :  { %685 = vmax.xlane.f32.xlu0 %v684_v59 }
 0x256   :  { %v571_v61 = vpop.f32.mrf.mxu2 }
 0x257   :  { %v656_v62 = vmul.f32 0.17677669, %v571_v61 }
 0x259   :  { %v6089_v63 = vadd.f32 %v656_v62, %v6086_v60 }
 0x25b   :  { %v705_v0 = vsel %vm680_vm14, %v6089_v63, -inf }
 0x25c   :  { %706 = vmax.xlane.f32.xlu2 %v705_v0 }
 0x25e   :  { %v573_v2 = vpop.f32.mrf.mxu2  ;;  %4351 = vmatmul.msk.bf16.vlgmr.msra.gmra.mxu3 %vm455_vm13, %v625_v1 }
 0x25f   :  { %v657_v4 = vmul.f32 0.17677669, %v573_v2 }
 0x261   :  { %v6095_v5 = vadd.f32 %v657_v4, %v6086_v60 }
 0x263   :  { %v708_v6 = vsel %vm680_vm14, %v6095_v5, -inf }
 0x264   :  { %709 = vmax.xlane.f32.xlu1 %v708_v6 }
 0x2b1   :  { %v495_v7 = vpop.f32.mrf.mxu3 }
 0x2b2   :  { %v650_v8 = vmul.f32 0.17677669, %v495_v7 }
 0x2b4   :  { %v6100_v9 = vadd.f32 %v650_v8, %v6070_v48 }
 0x2b6   :  { %v687_v10 = vsel %vm680_vm14, %v6100_v9, -inf }
 0x2b7   :  { %688 = vmax.xlane.f32.xlu0 %v687_v10 }
 0x2b9   :  { %v497_v12 = vpop.f32.mrf.mxu3 }
 0x2ba   :  { %v651_v13 = vmul.f32 0.17677669, %v497_v12 }
 0x2bc   :  { %v6105_v14 = vadd.f32 %v651_v13, %v6070_v48 }
 0x2be   :  { %v690_v15 = vsel %vm680_vm14, %v6105_v14, -inf  ;;  %v6165_v4 = vpop.xlane.xlu1 %682 }
 0x2bf   :  { %691 = vmax.xlane.f32.xlu2 %v690_v15 }
 0x2c1   :  { %v519_v18 = vpop.f32.mrf.mxu3 }
 0x2c2   :  { %v652_v17 = vmul.f32 0.17677669, %v519_v18 }
 0x2c4   :  { %v6110_v19 = vadd.f32 %v652_v17, %v6070_v48 }
 0x2c6   :  { %v693_v20 = vsel %vm680_vm14, %v6110_v19, -inf  ;;  %v6163_v2 = vpop.xlane.xlu0 %685 }
 0x2c7   :  { %694 = vmax.xlane.f32.xlu1 %v693_v20 }
 0x2c8   :  { %v619_v24 = vpop.f32.mrf.mxu2 }
 0x2c9   :  { %v521_v23 = vpop.f32.mrf.mxu3  ;;  %v660_v25 = vmul.f32 0.17677669, %v619_v24 }
 0x2ca   :  { %v653_v35 = vmul.f32 0.17677669, %v521_v23 }
 0x2cb   :  { %v595_v27 = vpop.f32.mrf.mxu1  ;;  %v6115_v28 = vadd.f32 %v660_v25, %v6086_v60 }
 0x2cc   :  { %v658_v30 = vmul.f32 0.17677669, %v595_v27  ;;  %v6125_v16 = vadd.f32 %v653_v35, %v6070_v48 }
 0x2cd   :  { %v717_v31 = vsel %vm680_vm14, %v6115_v28, -inf }
 0x2ce   :  { %v6120_v32 = vadd.f32 %v658_v30, %v6086_v60  ;;  %v696_v40 = vsel %vm680_vm14, %v6125_v16, -inf }
 0x2cf   :  { %718 = vmax.xlane.f32.xlu1 %v717_v31  ;;  %v6167_v6 = vpop.xlane.xlu2 %706 }
 0x2d0   :  { %v711_v36 = vsel %vm680_vm14, %v6120_v32, -inf  ;;  %v621_v52 = vpop.f32.mrf.mxu2 }
 0x2d1   :  { %v543_v37 = vpop.f32.mrf.mxu3  ;;  %712 = vmax.xlane.f32.xlu0 %v711_v36  ;;  %v661_v54 = vmul.f32 0.17677669, %v621_v52 }
 0x2d2   :  { %v654_v55 = vmul.f32 0.17677669, %v543_v37 }
 0x2d3   :  { %v597_v26 = vpop.f32.mrf.mxu1  ;;  %v6149_v56 = vadd.f32 %v661_v54, %v6086_v60 }
 0x2d4   :  { %v659_v38 = vmul.f32 0.17677669, %v597_v26  ;;  %v6152_v57 = vadd.f32 %v654_v55, %v6070_v48 }
 0x2d5   :  { %v720_v59 = vsel %vm680_vm14, %v6149_v56, -inf }
 0x2d6   :  { %v6128_v39 = vadd.f32 %v659_v38, %v6086_v60  ;;  %v699_v62 = vsel %vm680_vm14, %v6152_v57, -inf }
 0x2d7   :  { %v6170_v12 = vpop.xlane.xlu1 %709 }
 0x2d8   :  { %v714_v41 = vsel %vm680_vm14, %v6128_v39, -inf }
 0x2d9   :  { %v545_v42 = vpop.f32.mrf.mxu3  ;;  %697 = vmax.xlane.f32.xlu0 %v696_v40  ;;  %715 = vmax.xlane.f32.xlu2 %v714_v41 }
 0x2da   :  { %v655_v43 = vmul.f32 0.17677669, %v545_v42 }
 0x2dc   :  { %v6135_v44 = vadd.f32 %v655_v43, %v6070_v48 }
 0x2de   :  { %v702_v45 = vsel %vm680_vm14, %v6135_v44, -inf }
 0x2df   :  { %703 = vmax.xlane.f32.xlu1 %v702_v45 }
 0x2e1   :  { %v643_v46 = vpop.f32.mrf.mxu3 }
 0x2e2   :  { %v662_v61 = vmul.f32 0.17677669, %v643_v46 }
 0x2e4   :  { %v6159_v0 = vadd.f32 %v662_v61, %v6086_v60 }
 0x2e6   :  { %v723_v1 = vsel %vm680_vm14, %v6159_v0, -inf }
 0x2e9   :  { %v645_v47 = vpop.f32.mrf.mxu3 }
 0x2ea   :  { %v663_v49 = vmul.f32 0.17677669, %v645_v47 }
 0x2ec   :  { %v6140_v50 = vadd.f32 %v663_v49, %v6086_v60 }
 0x2ed   :  { %931 = vrot.lane.b32.xlu0 %v6042_v3, %s5710_s0 }
 0x2ee   :  { %v726_v51 = vsel %vm680_vm14, %v6140_v50, -inf }
 0x2ef   :  { %727 = vmax.xlane.f32.xlu1 %v726_v51 }
 0x2f1   :  { %956 = vrot.lane.b32.xlu2 %v6042_v3, %s5714_s22 }
 0x317   :  { %721 = vmax.xlane.f32.xlu0 %v720_v59 }
 0x31a   :  { %700 = vmax.xlane.f32.xlu2 %v699_v62 }
 0x322   :  { %724 = vmax.xlane.f32.xlu2 %v723_v1 }
 0x32a   :  { %v689_v7 = vpop.xlane.xlu0 %688 }
 0x32b   :  { %v731_v8 = vsub.f32 %v6100_v9, %v689_v7 }
 0x32d   :  { %v749_v10 = vmul.f32 1.442695, %v731_v8 }
 0x32f   :  { %5432 = vpow2.f32 %v749_v10 }
 0x332   :  { %v692_v13 = vpop.xlane.xlu2 %691 }
 0x333   :  { %v732_v15 = vsub.f32 %v6105_v14, %v692_v13 }
 0x335   :  { %v6173_v18 = vpop.eup %5432  ;;  %v751_v17 = vmul.f32 1.442695, %v732_v15 }
 0x336   :  { %v783_v20 = vsel %vm680_vm14, %v6173_v18, 0.0 }
 0x337   :  { %5434 = vpow2.f32 %v751_v17  ;;  %784 = vadd.xlane.f32.xlu1 %v783_v20 }
 0x33a   :  { %v695_v24 = vpop.xlane.xlu1 %694 }
 0x33b   :  { %v733_v23 = vsub.f32 %v6110_v19, %v695_v24 }
 0x33d   :  { %v6178_v25 = vpop.eup %5434  ;;  %v753_v9 = vmul.f32 1.442695, %v733_v23 }
 0x33e   :  { %v786_v27 = vsel %vm680_vm14, %v6178_v25, 0.0 }
 0x33f   :  { %5436 = vpow2.f32 %v753_v9  ;;  %787 = vadd.xlane.f32.xlu0 %v786_v27 }
 0x342   :  { %v719_v14 = vpop.xlane.xlu1 %718 }
 0x343   :  { %v741_v30 = vsub.f32 %v6115_v28, %v719_v14 }
 0x344   :  { %v713_v31 = vpop.xlane.xlu0 %712 }
 0x345   :  { %v6183_v35 = vpop.eup %5436  ;;  %v769_v36 = vmul.f32 1.442695, %v741_v30  ;;  %v739_v55 = vsub.f32 %v6120_v32, %v713_v31 }
 0x346   :  { %v789_v37 = vsel %vm680_vm14, %v6183_v35, 0.0 }
 0x347   :  { %5438 = vpow2.f32 %v769_v36  ;;  %790 = vadd.xlane.f32.xlu2 %v789_v37  ;;  %v765_v8 = vmul.f32 1.442695, %v739_v55 }
 0x34c   :  { %v716_v19 = vpop.xlane.xlu2 %715  ;;  %v698_v26 = vpop.xlane.xlu0 %697 }
 0x34d   :  { %v6187_v38 = vpop.eup %5438  ;;  %v734_v40 = vsub.f32 %v6125_v16, %v698_v26  ;;  %v740_v62 = vsub.f32 %v6128_v39, %v716_v19 }
 0x34e   :  { %v813_v41 = vsel %vm680_vm14, %v6187_v38, 0.0 }
 0x34f   :  { %v755_v42 = vmul.f32 1.442695, %v734_v40  ;;  %814 = vadd.xlane.f32.xlu1 %v813_v41  ;;  %v767_v10 = vmul.f32 1.442695, %v740_v62 }
 0x351   :  { %5440 = vpow2.f32 %v755_v42 }
 0x352   :  { %v704_v28 = vpop.xlane.xlu1 %703 }
 0x353   :  { %v736_v43 = vsub.f32 %v6135_v44, %v704_v28 }
 0x354   :  { %v957_v45 = vpop.permute.xlu2 %956 }
 0x355   :  { %v759_v46 = vmul.f32 1.442695, %v736_v43  ;;  %969 = vmatpush.bf16.msrb.mxu3 %v957_v45  ;;  %v737_v43 = vsub.f32 %v6089_v63, %v6167_v6 }
 0x357   :  { %5442 = vpow2.f32 %v759_v46  ;;  %v6193_v47 = vpop.eup %5440 }
 0x358   :  { %v792_v49 = vsel %vm680_vm14, %v6193_v47, 0.0 }
 0x359   :  { %793 = vadd.xlane.f32.xlu1 %v792_v49 }
 0x35d   :  { %v6197_v16 = vpop.eup %5442 }
 0x35e   :  { %v798_v51 = vsel %vm680_vm14, %v6197_v16, 0.0 }
 0x35f   :  { %799 = vadd.xlane.f32.xlu2 %v798_v51  ;;  %v932_v52 = vpop.permute.xlu0 %931 }
 0x360   :  { %944 = vmatpush.bf16.msrb.mxu2 %v932_v52  ;;  %v761_v52 = vmul.f32 1.442695, %v737_v43 }
 0x362   :  { %v728_v36 = vpop.xlane.xlu1 %727 }
 0x363   :  { %v744_v46 = vsub.f32 %v6140_v50, %v728_v36 }
 0x377   :  { %906 = vrot.lane.b32.xlu2 %v6042_v3, %s5713_s1 }
 0x38a   :  { %v722_v44 = vpop.xlane.xlu0 %721 }
 0x38b   :  { %v742_v54 = vsub.f32 %v6149_v56, %v722_v44  ;;  %v730_v56 = vsub.f32 %v6082_v58, %v6163_v2  ;;  %v738_v58 = vsub.f32 %v6095_v5, %v6170_v12 }
 0x38d   :  { %v771_v59 = vmul.f32 1.442695, %v742_v54  ;;  %v701_v61 = vpop.xlane.xlu2 %700  ;;  %v747_v20 = vmul.f32 1.442695, %v730_v56  ;;  %v763_v14 = vmul.f32 1.442695, %v738_v58 }
 0x38e   :  { %v735_v1 = vsub.f32 %v6152_v57, %v701_v61 }
 0x38f   :  { %5444 = vpow2.f32 %v771_v59  ;;  %v775_v59 = vmul.f32 1.442695, %v744_v46 }
 0x390   :  { %v757_v7 = vmul.f32 1.442695, %v735_v1 }
 0x392   :  { %5446 = vpow2.f32 %v757_v7 }
 0x393   :  { %5448 = vpow2.f32 %v765_v8 }
 0x394   :  { %5450 = vpow2.f32 %v767_v10 }
 0x395   :  { %v6207_v13 = vpop.eup %5444  ;;  %v725_v3 = vpop.xlane.xlu2 %724 }
 0x396   :  { %v743_v32 = vsub.f32 %v6159_v0, %v725_v3  ;;  %v816_v39 = vsel %vm680_vm14, %v6207_v13, 0.0 }
 0x397   :  { %817 = vadd.xlane.f32.xlu1 %v816_v39 }
 0x398   :  { %v6214_v57 = vpop.eup %5446  ;;  %v773_v15 = vmul.f32 1.442695, %v743_v32 }
 0x399   :  { %v795_v17 = vsel %vm680_vm14, %v6214_v57, 0.0  ;;  %v6218_v24 = vpop.eup %5448 }
 0x39a   :  { %5452 = vpow2.f32 %v773_v15  ;;  %796 = vadd.xlane.f32.xlu0 %v795_v17  ;;  %v6220_v23 = vpop.eup %5450  ;;  %v807_v0 = vsel %vm680_vm14, %v6218_v24, 0.0 }
 0x39b   :  { %5454 = vpow2.f32 %v747_v20  ;;  %v810_v2 = vsel %vm680_vm14, %v6220_v23, 0.0  ;;  %v729_v20 = vsub.f32 %v6075_v53, %v6165_v4 }
 0x39c   :  { %5456 = vpow2.f32 %v763_v14 }
 0x39d   :  { %v745_v14 = vmul.f32 1.442695, %v729_v20 }
 0x39f   :  { %808 = vadd.xlane.f32.xlu1 %v807_v0 }
 0x3a0   :  { %v6228_v9 = vpop.eup %5452  ;;  %811 = vadd.xlane.f32.xlu2 %v810_v2 }
 0x3a1   :  { %v819_v27 = vsel %vm680_vm14, %v6228_v9, 0.0  ;;  %v6232_v30 = vpop.eup %5454 }
 0x3a2   :  { %820 = vadd.xlane.f32.xlu0 %v819_v27  ;;  %v780_v5 = vsel %vm680_vm14, %v6232_v30, 0.0  ;;  %v6236_v12 = vpop.eup %5456 }
 0x3a3   :  { %v804_v31 = vsel %vm680_vm14, %v6236_v12, 0.0 }
 0x3a8   :  { %781 = vadd.xlane.f32.xlu2 %v780_v5 }
 0x3aa   :  { %v785_v37 = vpop.xlane.xlu1 %784 }
 0x3b0   :  { %805 = vadd.xlane.f32.xlu2 %v804_v31 }
 0x3b2   :  { %v788_v19 = vpop.xlane.xlu0 %787 }
 0x3b3   :  { %5458 = vrcp.f32 %v788_v19 }
 0x3b6   :  { %1091 = vrot.lane.b32.xlu0 %v6052_v29, %s5714_s22 }
 0x3b8   :  { %1066 = vrot.lane.b32.xlu1 %v6052_v29, %s5710_s0 }
 0x3b9   :  { %v5459_v41 = vpop.eup %5458 }
 0x3ba   :  { %v791_v26 = vpop.xlane.xlu2 %790  ;;  %v844_v49 = vmul.f32 %v5459_v41, %v6178_v25 }
 0x3bb   :  { %5460 = vrcp.f32 %v791_v26 }
 0x3bc   :  { %5462 = vrcp.f32 %v785_v37  ;;  %v860_v61 = vpack.c.bf16 %v844_v49, %v844_v49 }
 0x3be   :  { %v904_v7 = vunpack.c.l.b16 %v860_v61 }
 0x3c1   :  { %v5461_v28 = vpop.eup %5460 }
 0x3c2   :  { %v815_v40 = vpop.xlane.xlu1 %814  ;;  %v5463_v45 = vpop.eup %5462  ;;  %v845_v51 = vmul.f32 %v5461_v28, %v6183_v35 }
 0x3c3   :  { %v843_v44 = vmul.f32 %v5463_v45, %v6173_v18 }
 0x3c4   :  { %v861_v62 = vpack.c.bf16 %v845_v51, %v845_v51 }
 0x3c5   :  { %v859_v63 = vpack.c.bf16 %v843_v44, %v843_v44 }
 0x3c6   :  { %v928_v50 = vunpack.c.l.b16 %v861_v62 }
 0x3c7   :  { %v903_v25 = vunpack.c.l.b16 %v859_v63 }
 0x3c9   :  { %v905_v18 = vpack.c.b16 %v904_v7, %v903_v25 }
 0x3cc   :  { %v794_v42 = vpop.xlane.xlu1 %793 }
 0x3cd   :  { %5464 = vrcp.f32 %v794_v42 }
 0x3ce   :  { %5466 = vpow2.f32 %v761_v52 }
 0x3cf   :  { %5468 = vpow2.f32 %v775_v59 }
 0x3d2   :  { %v800_v54 = vpop.xlane.xlu2 %799 }
 0x3d3   :  { %v5465_v55 = vpop.eup %5464  ;;  %5470 = vrcp.f32 %v800_v54 }
 0x3d4   :  { %v846_v1 = vmul.f32 %v5465_v55, %v6193_v47  ;;  %v6251_v3 = vpop.eup %5466 }
 0x3d5   :  { %v5469_v56 = vpop.eup %5468  ;;  %v801_v47 = vsel %vm680_vm14, %v6251_v3, 0.0 }
 0x3d6   :  { %v862_v6 = vpack.c.bf16 %v846_v1, %v846_v1  ;;  %v822_v32 = vsel %vm680_vm14, %v5469_v56, 0.0 }
 0x3d8   :  { %v929_v8 = vunpack.c.l.b16 %v862_v6 }
 0x3d9   :  { %v5471_v15 = vpop.eup %5470 }
 0x3da   :  { %v907_v10 = vpop.permute.xlu2 %906  ;;  %v930_v35 = vpack.c.b16 %v929_v8, %v928_v50  ;;  %v848_v17 = vmul.f32 %v5471_v15, %v6197_v16 }
 0x3db   :  { %919 = vmatpush.bf16.msra.mxu1 %v907_v10 }
 0x3dc   :  { %4354 = vmatmul.msk.bf16.vlgmr.msrb.gmra.mxu2 %vm680_vm14, %v930_v35  ;;  %v864_v2 = vpack.c.bf16 %v848_v17, %v848_v17 }
 0x3de   :  { %4353 = vmatmul.msk.bf16.vlgmr.msra.gmra.mxu1 %vm680_vm14, %v905_v18  ;;  %v954_v31 = vunpack.c.l.b16 %v864_v2 }
 0x3e0   :  { %802 = vadd.xlane.f32.xlu0 %v801_v47 }
 0x3e2   :  { %823 = vadd.xlane.f32.xlu1 %v822_v32 }
 0x3fb   :  { %1041 = vrot.lane.b32.xlu1 %v6052_v29, %s5713_s1 }
 0x40a   :  { %v818_v0 = vpop.xlane.xlu1 %817 }
 0x40d   :  { %v797_v39 = vpop.xlane.xlu0 %796 }
 0x40e   :  { %5472 = vrcp.f32 %v797_v39 }
 0x40f   :  { %5474 = vrcp.f32 %v818_v0 }
 0x410   :  { %5476 = vrcp.f32 %v815_v40 }
 0x411   :  { %5478 = vpow2.f32 %v745_v14 }
 0x412   :  { %v809_v41 = vpop.xlane.xlu1 %808 }
 0x414   :  { %v5473_v58 = vpop.eup %5472 }
 0x415   :  { %v847_v27 = vmul.f32 %v5473_v58, %v6214_v57  ;;  %v5475_v37 = vpop.eup %5474  ;;  %v821_v53 = vpop.xlane.xlu0 %820 }
 0x416   :  { %v5477_v16 = vpop.eup %5476  ;;  %v854_v19 = vmul.f32 %v5475_v37, %v6207_v13  ;;  %5480 = vrcp.f32 %v821_v53 }
 0x417   :  { %v863_v5 = vpack.c.bf16 %v847_v27, %v847_v27  ;;  %v5479_v4 = vpop.eup %5478  ;;  %v853_v26 = vmul.f32 %v5477_v16, %v6187_v38  ;;  %v812_v38 = vpop.xlane.xlu2 %811 }
 0x418   :  { %v870_v57 = vpack.c.bf16 %v854_v19, %v854_v19  ;;  %v777_v42 = vsel %vm680_vm14, %v5479_v4, 0.0 }
 0x419   :  { %v953_v29 = vunpack.c.l.b16 %v863_v5  ;;  %v869_v40 = vpack.c.bf16 %v853_v26, %v853_v26 }
 0x41a   :  { %v1064_v28 = vunpack.c.l.b16 %v870_v57 }
 0x41b   :  { %v955_v36 = vpack.c.b16 %v954_v31, %v953_v29  ;;  %v1063_v45 = vunpack.c.l.b16 %v869_v40 }
 0x41c   :  { %v5481_v51 = vpop.eup %5480 }
 0x41d   :  { %4355 = vmatmul.msk.bf16.vlgmr.msrb.gmra.mxu3 %vm680_vm14, %v955_v36  ;;  %v1065_v49 = vpack.c.b16 %v1064_v28, %v1063_v45  ;;  %v855_v52 = vmul.f32 %v5481_v51, %v6228_v9 }
 0x41f   :  { %v871_v55 = vpack.c.bf16 %v855_v52, %v855_v52 }
 0x421   :  { %v1088_v6 = vunpack.c.l.b16 %v871_v55  ;;  %v5165_v55 = vld [vmem:[%s7125_s6 + $0x28] sm:$0xff] }
 0x425   :  { %778 = vadd.xlane.f32.xlu1 %v777_v42 }
 0x428   :  { %v1092_v43 = vpop.permute.xlu0 %1091 }
 0x429   :  { %1104 = vmatpush.bf16.msra.mxu3 %v1092_v43 }
 0x42a   :  { %v1067_v46 = vpop.permute.xlu1 %1066 }
 0x42b   :  { %1079 = vmatpush.bf16.msra.mxu2 %v1067_v46 }
 0x42e   :  { %4358 = vmatmul.msk.bf16.vlgmr.msra.gmra.mxu2 %vm680_vm14, %v1065_v49 }
 0x453   :  { %v803_v0 = vpop.xlane.xlu0 %802 }
 0x455   :  { %v824_v13 = vpop.xlane.xlu1 %823 }
 0x456   :  { %5482 = vrcp.f32 %v824_v13 }
 0x457   :  { %5484 = vrcp.f32 %v809_v41 }
 0x458   :  { %5486 = vrcp.f32 %v812_v38 }
 0x45b   :  { %v921_v44 = vpop.f32.mrf.mxu1 }
 0x45c   :  { %v5483_v54 = vpop.eup %5482 }
 0x45d   :  { %v856_v59 = vmul.f32 %v5483_v54, %v5469_v56  ;;  %v5485_v61 = vpop.eup %5484  ;;  %v5166_v54 = vld [vmem:[%s7125_s6 + $0x30] sm:$0xff] }
 0x45e   :  { %v5487_v1 = vpop.eup %5486  ;;  %v851_v50 = vmul.f32 %v5485_v61, %v6218_v24  ;;  %v5163_v61 = vld [vmem:[%s7125_s6 + $0x18] sm:$0xff] }
 0x45f   :  { %v872_v62 = vpack.c.bf16 %v856_v59, %v856_v59  ;;  %v946_v63 = vpop.f32.mrf.mxu2  ;;  %v852_v8 = vmul.f32 %v5487_v1, %v6220_v23  ;;  %v782_v23 = vpop.xlane.xlu2 %781  ;;  %v5164_v59 = vld [vmem:[%s7125_s6 + $0x20] sm:$0xff]  ;;  %v5161_v1 = vld [vmem:[%s7125_s6 + $0x8] sm:$0xff] }
 0x460   :  { %v867_v9 = vpack.c.bf16 %v851_v50, %v851_v50  ;;  %5488 = vrcp.f32 %v782_v23 }
 0x461   :  { %v1089_v7 = vunpack.c.l.b16 %v872_v62  ;;  %v868_v18 = vpack.c.bf16 %v852_v8, %v852_v8  ;;  %v5162_v62 = vld [vmem:[%s7125_s6 + $0x10] sm:$0xff] }
 0x462   :  { %v1038_v32 = vunpack.c.l.b16 %v867_v9 }
 0x463   :  { %v1090_v25 = vpack.c.b16 %v1089_v7, %v1088_v6  ;;  %v923_v10 = vpop.f32.mrf.mxu1  ;;  %v1039_v39 = vunpack.c.l.b16 %v868_v18 }
 0x464   :  { %v5345_v35 = vpack.i.bf16 %v923_v10, %v921_v44 }
 0x465   :  { %4359 = vmatmul.msk.bf16.vlgmr.msra.gmra.mxu3 %vm680_vm14, %v1090_v25  ;;  %v1040_v24 = vpack.c.b16 %v1039_v39, %v1038_v32 }
 0x466   :  { %5346 = vrot.lane.b32.xlu2 %v5345_v35, %s5714_s22  ;;  %v5489_v20 = vpop.eup %5488 }
 0x467   :  { %v948_v56 = vpop.f32.mrf.mxu2  ;;  %v842_v58 = vmul.f32 %v5489_v20, %v6232_v30  ;;  %v806_v14 = vpop.xlane.xlu2 %805 }
 0x468   :  { %v5350_v47 = vpack.i.bf16 %v948_v56, %v946_v63  ;;  %v5160_v63 = vld [vmem:[%s7125_s6] sm:$0xff] }
 0x469   :  { %v858_v27 = vpack.c.bf16 %v842_v58, %v842_v58 }
 0x46a   :  { %5351 = vrot.lane.b32.xlu1 %v5350_v47, %s5710_s0 }
 0x46b   :  { %v876_v36 = vunpack.c.l.b16 %v858_v27 }
 0x46d   :  { %v1042_v15 = vpop.permute.xlu1 %1041 }
 0x46e   :  { %1054 = vmatpush.bf16.msrb.mxu1 %v1042_v15 }
 0x471   :  { %4357 = vmatmul.msk.bf16.vlgmr.msrb.gmra.mxu1 %vm680_vm14, %v1040_v24 }
 0x498   :  { %v779_v17 = vpop.xlane.xlu1 %778 }
 0x499   :  { %5490 = vrcp.f32 %v779_v17 }
 0x49a   :  { %5492 = vrcp.f32 %v803_v0 }
 0x49b   :  { %5494 = vrcp.f32 %v806_v14 }
 0x49f   :  { %v5491_v2 = vpop.eup %5490 }
 0x4a0   :  { %v841_v5 = vmul.f32 %v5491_v2, %v5479_v4  ;;  %v971_v31 = vpop.f32.mrf.mxu3  ;;  %v5493_v19 = vpop.eup %5492 }
 0x4a1   :  { %v5495_v26 = vpop.eup %5494  ;;  %v849_v30 = vmul.f32 %v5493_v19, %v6251_v3  ;;  %v5167_v3 = vld [vmem:[%s7125_s6 + $0x38] sm:$0xff] }
 0x4a2   :  { %v857_v29 = vpack.c.bf16 %v841_v5, %v841_v5  ;;  %v850_v57 = vmul.f32 %v5495_v26, %v6236_v12 }
 0x4a3   :  { %v865_v4 = vpack.c.bf16 %v849_v30, %v849_v30 }
 0x4a4   :  { %v875_v37 = vunpack.c.l.b16 %v857_v29  ;;  %v866_v42 = vpack.c.bf16 %v850_v57, %v850_v57 }
 0x4a5   :  { %v1010_v28 = vunpack.c.l.b16 %v865_v4 }
 0x4a6   :  { %v877_v16 = vpack.c.b16 %v876_v36, %v875_v37  ;;  %v1011_v43 = vunpack.c.l.b16 %v866_v42  ;;  %v5407_v42 = vld [vmem:[%s7126_s7] ss:$0 sm:$0xff] }
 0x4a8   :  { %4352 = vmatmul.msk.bf16.vlgmr.msrb.gmra.mxu0 %vm680_vm14, %v877_v16  ;;  %v973_v53 = vpop.f32.mrf.mxu3  ;;  %v1012_v45 = vpack.c.b16 %v1011_v43, %v1010_v28 }
 0x4a9   :  { %v5360_v41 = vpack.i.bf16 %v973_v53, %v971_v31  ;;  %1211 = vmatpush.bf16.msrb.mxu0 %v5167_v3 }
 0x4ab   :  { %5361 = vrot.lane.b32.xlu2 %v5360_v41, %s5713_s1 }
 0x4ad   :  { %1212 = vmatpush.bf16.msrb.mxu0 %v5166_v54 }
 0x4b1   :  { %v1081_v40 = vpop.f32.mrf.mxu2  ;;  %1213 = vmatpush.bf16.msrb.mxu0 %v5165_v55 }
 0x4b5   :  { %1214 = vmatpush.bf16.msrb.mxu0 %v5164_v59 }
 0x4b8   :  { %4356 = vmatmul.msk.bf16.vlgmr.msra.gmra.mxu0 %vm680_vm14, %v1012_v45 }
 0x4b9   :  { %v1083_v46 = vpop.f32.mrf.mxu2  ;;  %1215 = vmatpush.bf16.msrb.mxu0 %v5163_v61 }
 0x4ba   :  { %v5365_v49 = vpack.i.bf16 %v1083_v46, %v1081_v40 }
 0x4bc   :  { %5366 = vrot.lane.b32.xlu2 %v5365_v49, %s5710_s0 }
 0x4bd   :  { %1216 = vmatpush.bf16.msrb.mxu0 %v5162_v62 }
 0x4c0   :  { %v5347_v6 = vpop.permute.xlu2 %5346 }
 0x4c1   :  { %1217 = vmatpush.bf16.msrb.mxu0 %v5161_v1  ;;  %v5348_v50 = vunpack.i.l.bf16 %v5347_v6  ;;  %v5349_v9 = vunpack.i.h.bf16 %v5347_v6 }
 0x4c5   :  { %1218 = vmatpush.bf16.msrb.mxu0 %v5160_v63 }
 0x4dc   :  { %v5352_v8 = vpop.permute.xlu1 %5351 }
 0x4dd   :  { %v5353_v10 = vunpack.i.l.bf16 %v5352_v8  ;;  %v5354_v18 = vunpack.i.h.bf16 %v5352_v8 }
 0x4e8   :  { %v1106_v13 = vpop.f32.mrf.mxu3 }
 0x4ee   :  { %v1056_v51 = vpop.f32.mrf.mxu1 }
 0x4f0   :  { %v1108_v12 = vpop.f32.mrf.mxu3 }
 0x4f1   :  { %v5370_v38 = vpack.i.bf16 %v1108_v12, %v1106_v13 }
 0x4f3   :  { %5371 = vrot.lane.b32.xlu2 %v5370_v38, %s5713_s1 }
 0x4f6   :  { %v1058_v52 = vpop.f32.mrf.mxu1 }
 0x4f7   :  { %v5355_v44 = vpack.i.bf16 %v1058_v52, %v1056_v51 }
 0x4f9   :  { %5356 = vrot.lane.b32.xlu0 %v5355_v44, %s5714_s22 }
 0x505   :  { %v5362_v35 = vpop.permute.xlu2 %5361 }
 0x506   :  { %v5364_v32 = vunpack.i.h.bf16 %v5362_v35  ;;  %v5363_v39 = vunpack.i.l.bf16 %v5362_v35  ;;  %v5196_v35 = vld [vmem:[#allocation3 + $0xe4] sm:$0xf] }
 0x516   :  { %v5367_v58 = vpop.permute.xlu2 %5366 }
 0x517   :  { %v5369_v31 = vunpack.i.h.bf16 %v5367_v58  ;;  %v5368_v29 = vunpack.i.l.bf16 %v5367_v58  ;;  %v5192_v58 = vld [vmem:[#allocation3 + $0xc4] sm:$0xf] }
 0x525   :  { %v896_v7 = vpop.f32.mrf.mxu0 }
 0x526   :  { %v1000_v25 = vsel %vm455_vm13, %v896_v7, %v5348_v50 }
 0x527   :  { %v1003_v56 = vsel %vm1002_vm15, %v1000_v25, %v5353_v10  ;;  %v4506_v25 = vld [vmem:[#allocation3 + $0xe0] sm:$0xf]  ;;  %v5198_v10 = vld [vmem:[#allocation3 + $0xec] sm:$0xf0] }
 0x528   :  { %v1006_v23 = vsel %vm1005_vm0, %v1003_v56, %v5363_v39  ;;  %v4514_v56 = vld [vmem:[#allocation3 + $0xe8] sm:$0xf] }
 0x52d   :  { %v898_v47 = vpop.f32.mrf.mxu0 }
 0x52e   :  { %v1001_v15 = vsel %vm455_vm13, %v898_v47, %v5349_v9  ;;  %v4507_v9 = vor.u32 %v5198_v10, %v4506_v25  ;;  %v5199_v47 = vld [vmem:[#allocation3 + $0xf4] sm:$0xf0]  ;;  %v5181_v25 = vld [vmem:[#allocation3 + $0x6c] sm:$0xf]  ;;  %v4452_v10 = vld [vmem:[#allocation3 + $0x78] sm:$0xf0] }
 0x52f   :  { %v1004_v24 = vsel %vm1002_vm15, %v1001_v15, %v5354_v18  ;;  %v4508_v18 = vld [vmem:[#allocation3 + $0xf0] sm:$0xf0]  ;;  %v4515_v39 = vor.u32 %v5199_v47, %v4514_v56  ;;  %v5197_v15 = vld [vmem:[#allocation3 + $0xec] sm:$0xf]  ;;  %v5176_v56 = vld [vmem:[#allocation3 + $0x44] sm:$0xf] }
 0x530   :  { %v1007_v17 = vsel %vm1005_vm0, %v1004_v24, %v5364_v32  ;;  %v4511_v32 = vor.u32 %v5196_v35, %v4508_v18  ;;  %v4516_v24 = vld [vmem:[#allocation3 + $0xf8] sm:$0xf0]  ;;  %1534 = vmatpush.bf16.msra.mxu1 %v4507_v9  ;;  %v4455_v35 = vor.u32 %v5181_v25, %v4452_v10  ;;  %v4426_v9 = vld [vmem:[#allocation3 + $0x40] sm:$0xf]  ;;  %v5178_v18 = vld [vmem:[#allocation3 + $0x4c] sm:$0xf0] }
 0x531   :  { %v1141_v20 = vpack.c.bf16 %v1007_v17, %v1006_v23  ;;  %v4519_v23 = vor.u32 %v5197_v15, %v4516_v24  ;;  %1572 = vmatpush.bf16.msrb.mxu3 %v4515_v39  ;;  %v4490_v17 = vld [vmem:[#allocation3 + $0xc0] sm:$0xf]  ;;  %v4427_v47 = vor.u32 %v5178_v18, %v4426_v9  ;;  %v4434_v39 = vld [vmem:[#allocation3 + $0x48] sm:$0xf]  ;;  %v5179_v15 = vld [vmem:[#allocation3 + $0x54] sm:$0xf0] }
 0x532   :  { %1553 = vmatpush.bf16.msrb.mxu2 %v4511_v32  ;;  %v4428_v32 = vld [vmem:[#allocation3 + $0x50] sm:$0xf0]  ;;  %v5408_v10 = vld [vmem:[%s7127_s8] ss:$0 sm:$0xff] }
 0x533   :  { %1219 = vmatmul.bf16.vlgmr.msrb.gmra.mxu0 %v1141_v20  ;;  %v5194_v20 = vld [vmem:[#allocation3 + $0xcc] sm:$0xf0]  ;;  %v4431_v24 = vor.u32 %v5176_v56, %v4428_v32 }
 0x534   :  { %1591 = vmatpush.bf16.msra.mxu0 %v4519_v23  ;;  %v4435_v23 = vor.u32 %v5179_v15, %v4434_v39 }
 0x535   :  { %v1031_v0 = vpop.f32.mrf.mxu0 }
 0x53d   :  { %v1033_v36 = vpop.f32.mrf.mxu0 }
 0x54d   :  { %v5372_v2 = vpop.permute.xlu2 %5371 }
 0x54e   :  { %v5374_v37 = vunpack.i.h.bf16 %v5372_v2  ;;  %v5373_v16 = vunpack.i.l.bf16 %v5372_v2  ;;  %v4492_v2 = vld [vmem:[#allocation3 + $0xd0] sm:$0xf0] }
 0x56b   :  { %v5357_v27 = vpop.permute.xlu0 %5356 }
 0x56c   :  { %v5359_v14 = vunpack.i.h.bf16 %v5357_v27  ;;  %v5358_v5 = vunpack.i.l.bf16 %v5357_v27  ;;  %v4498_v27 = vld [vmem:[#allocation3 + $0xc8] sm:$0xf] }
 0x56e   :  { %v1136_v19 = vsel %vm455_vm13, %v1033_v36, %v5359_v14  ;;  %v1135_v53 = vsel %vm455_vm13, %v1031_v0, %v5358_v5  ;;  %v4491_v0 = vor.u32 %v5194_v20, %v4490_v17  ;;  %v5195_v14 = vld [vmem:[#allocation3 + $0xd4] sm:$0xf0]  ;;  %v4495_v5 = vor.u32 %v5192_v58, %v4492_v2  ;;  %v4500_v36 = vld [vmem:[#allocation3 + $0xd8] sm:$0xf0]  ;;  %v5177_v17 = vld [vmem:[#allocation3 + $0x4c] sm:$0xf] }
 0x56f   :  { %v1137_v26 = vsel %vm1002_vm15, %v1135_v53, %v5368_v29  ;;  %v1138_v41 = vsel %vm1002_vm15, %v1136_v19, %v5369_v31  ;;  %v4499_v31 = vor.u32 %v5195_v14, %v4498_v27  ;;  %v5193_v29 = vld [vmem:[#allocation3 + $0xcc] sm:$0xf]  ;;  %v5190_v19 = vld [vmem:[#allocation3 + $0xac] sm:$0xf0]  ;;  %v5188_v53 = vld [vmem:[#allocation3 + $0xa4] sm:$0xf] }
 0x570   :  { %v1139_v30 = vsel %vm1005_vm0, %v1137_v26, %v5373_v16  ;;  %v1140_v57 = vsel %vm1005_vm0, %v1138_v41, %v5374_v37  ;;  %1535 = vmatpush.bf16.msra.mxu1 %v4491_v0  ;;  %v4503_v37 = vor.u32 %v5193_v29, %v4500_v36  ;;  %1554 = vmatpush.bf16.msrb.mxu2 %v4495_v5  ;;  %v4474_v16 = vld [vmem:[#allocation3 + $0xa0] sm:$0xf]  ;;  %v4476_v41 = vld [vmem:[#allocation3 + $0xb0] sm:$0xf0]  ;;  %v4436_v20 = vld [vmem:[#allocation3 + $0x58] sm:$0xf0] }
 0x571   :  { %v1142_v4 = vpack.c.bf16 %v1140_v57, %v1139_v30  ;;  %1573 = vmatpush.bf16.msrb.mxu3 %v4499_v31  ;;  %v4475_v26 = vor.u32 %v5190_v19, %v4474_v16  ;;  %v4482_v30 = vld [vmem:[#allocation3 + $0xa8] sm:$0xf]  ;;  %v5191_v57 = vld [vmem:[#allocation3 + $0xb4] sm:$0xf0]  ;;  %v4439_v58 = vor.u32 %v5177_v17, %v4436_v20  ;;  %v4410_v0 = vld [vmem:[#allocation3 + $0x20] sm:$0xf] }
 0x572   :  { %1592 = vmatpush.bf16.msra.mxu0 %v4503_v37  ;;  %v5174_v2 = vld [vmem:[#allocation3 + $0x2c] sm:$0xf0]  ;;  %v5172_v27 = vld [vmem:[#allocation3 + $0x24] sm:$0xf]  ;;  %v4412_v5 = vld [vmem:[#allocation3 + $0x30] sm:$0xf0] }
 0x573   :  { %1224 = vmatmul.bf16.gmra.mxu0 %v1142_v4  ;;  %v4479_v4 = vor.u32 %v5188_v53, %v4476_v41  ;;  %v4411_v14 = vor.u32 %v5174_v2, %v4410_v0  ;;  %v4418_v31 = vld [vmem:[#allocation3 + $0x28] sm:$0xf]  ;;  %v5175_v29 = vld [vmem:[#allocation3 + $0x34] sm:$0xf0]  ;;  %v4415_v37 = vor.u32 %v5172_v27, %v4412_v5  ;;  %v5173_v19 = vld [vmem:[#allocation3 + $0x2c] sm:$0xf] }
 0x574   :  { %1536 = vmatpush.bf16.msra.mxu1 %v4475_v26  ;;  %v4419_v16 = vor.u32 %v5175_v29, %v4418_v31  ;;  %v4420_v53 = vld [vmem:[#allocation3 + $0x38] sm:$0xf0]  ;;  %v4394_v26 = vld [vmem:[#allocation3] sm:$0xf] }
 0x575   :  { %1555 = vmatpush.bf16.msrb.mxu2 %v4479_v4  ;;  %v5168_v4 = vld [vmem:[#allocation3 + $0x4] sm:$0xf] }
 0x5b0   :  { %v1220_v40 = vpop.f32.mrf.mxu0 }
 0x5b1   :  { %v1221_v28 = vadd.f32 %v5407_v42, %v1220_v40  ;;  %v5189_v40 = vld [vmem:[#allocation3 + $0xac] sm:$0xf] }
 0x5b3   :  { %v1230_v43 = vadd.f32 %v1221_v28, %v6021_v21  ;;  %v4484_v28 = vld [vmem:[#allocation3 + $0xb8] sm:$0xf0] }
 0x5b5   :  { %1236 = vadd.xlane.f32.xlu1 %v1230_v43 }
 0x5b8   :  { %v1222_v45 = vpop.f32.mrf.mxu0 }
 0x5b9   :  { %v1223_v46 = vadd.f32 %v5407_v42, %v1222_v45  ;;  %v4458_v45 = vld [vmem:[#allocation3 + $0x80] sm:$0xf] }
 0x5bb   :  { %v1231_v49 = vadd.f32 %v1223_v46, %v6023_v22  ;;  %v5186_v46 = vld [vmem:[#allocation3 + $0x8c] sm:$0xf0] }
 0x5bd   :  { %1238 = vadd.xlane.f32.xlu2 %v1231_v49 }
 0x5f0   :  { %v1225_v3 = vpop.f32.mrf.mxu0 }
 0x5f1   :  { %v1226_v13 = vadd.f32 %v5407_v42, %v1225_v3  ;;  %v4459_v3 = vor.u32 %v5186_v46, %v4458_v45  ;;  %v5171_v45 = vld [vmem:[#allocation3 + $0x14] sm:$0xf0]  ;;  %v5169_v46 = vld [vmem:[#allocation3 + $0xc] sm:$0xf] }
 0x5f3   :  { %v1232_v51 = vadd.f32 %v1226_v13, %v6031_v34  ;;  %v4460_v13 = vld [vmem:[#allocation3 + $0x90] sm:$0xf0]  ;;  %1537 = vmatpush.bf16.msra.mxu1 %v4459_v3 }
 0x5f5   :  { %1240 = vadd.xlane.f32.xlu0 %v1232_v51 }
 0x5f8   :  { %v1227_v12 = vpop.f32.mrf.mxu0 }
 0x5f9   :  { %v1228_v38 = vadd.f32 %v5407_v42, %v1227_v12  ;;  %v4483_v42 = vor.u32 %v5191_v57, %v4482_v30  ;;  %v5187_v12 = vld [vmem:[#allocation3 + $0x94] sm:$0xf0]  ;;  %v4423_v30 = vor.u32 %v5173_v19, %v4420_v53  ;;  %v5170_v57 = vld [vmem:[#allocation3 + $0xc] sm:$0xf0] }
 0x5fb   :  { %v1233_v52 = vadd.f32 %v1228_v38, %v6029_v33  ;;  %1574 = vmatpush.bf16.msrb.mxu3 %v4483_v42  ;;  %v4396_v42 = vld [vmem:[#allocation3 + $0x10] sm:$0xf0] }
 0x5fd   :  { %1242 = vadd.xlane.f32.xlu1 %v1233_v52 }
 0x628   :  { %v1237_v44 = vpop.xlane.xlu1 %1236 }
 0x629   :  { %v1244_v54 = vmul.f32 %v1237_v44, %v5843_v11  ;;  %v5185_v44 = vld [vmem:[#allocation3 + $0x8c] sm:$0xf] }
 0x62b   :  { %v6329_v21 = vsub.f32 %v1230_v43, %v1244_v54  ;;  %v4487_v43 = vor.u32 %v5189_v40, %v4484_v28  ;;  %v4468_v54 = vld [vmem:[#allocation3 + $0x98] sm:$0xf0]  ;;  %v4395_v40 = vor.u32 %v5170_v57, %v4394_v26  ;;  %v4399_v28 = vor.u32 %v5168_v4, %v4396_v42 }
 0x62d   :  { %v1252_v55 = vmul.f32 %v6329_v21, %v6329_v21  ;;  %1593 = vmatpush.bf16.msra.mxu0 %v4487_v43  ;;  %v4402_v43 = vld [vmem:[#allocation3 + $0x8] sm:$0xf] }
 0x62e   :  { %v4403_v3 = vor.u32 %v5171_v45, %v4402_v43  ;;  %v5231_v45 = vld [vmem:[#allocation5 + $0xf8] sm:$0xff] }
 0x62f   :  { %1256 = vadd.xlane.f32.xlu2 %v1252_v55  ;;  %v4471_v55 = vor.u32 %v5185_v44, %v4468_v54 }
 0x630   :  { %v1239_v22 = vpop.xlane.xlu2 %1238 }
 0x631   :  { %v1245_v59 = vmul.f32 %v1239_v22, %v5843_v11  ;;  %v4442_v22 = vld [vmem:[#allocation3 + $0x60] sm:$0xf]  ;;  %1594 = vmatpush.bf16.msra.mxu0 %v4471_v55 }
 0x633   :  { %v6334_v61 = vsub.f32 %v1231_v49, %v1245_v59  ;;  %v5184_v49 = vld [vmem:[#allocation3 + $0x84] sm:$0xf]  ;;  %v5182_v59 = vld [vmem:[#allocation3 + $0x6c] sm:$0xf0] }
 0x634   :  { %v4463_v38 = vor.u32 %v5184_v49, %v4460_v13  ;;  %v4404_v13 = vld [vmem:[#allocation3 + $0x18] sm:$0xf0] }
 0x635   :  { %v1253_v34 = vmul.f32 %v6334_v61, %v6334_v61  ;;  %1595 = vmatpush.bf16.msra.mxu0 %v4455_v35 }
 0x636   :  { %1556 = vmatpush.bf16.msrb.mxu2 %v4463_v38 }
 0x637   :  { %1258 = vadd.xlane.f32.xlu0 %v1253_v34  ;;  %v5180_v34 = vld [vmem:[#allocation3 + $0x64] sm:$0xf] }
 0x639   :  { %1596 = vmatpush.bf16.msra.mxu0 %v4439_v58 }
 0x63d   :  { %1597 = vmatpush.bf16.msra.mxu0 %v4423_v30 }
 0x668   :  { %v1241_v33 = vpop.xlane.xlu0 %1240 }
 0x669   :  { %v1246_v62 = vmul.f32 %v1241_v33, %v5843_v11  ;;  %v4443_v33 = vor.u32 %v5182_v59, %v4442_v22 }
 0x66b   :  { %v6339_v1 = vsub.f32 %v1232_v51, %v1246_v62  ;;  %v4466_v51 = vld [vmem:[#allocation3 + $0x88] sm:$0xf]  ;;  %v4444_v62 = vld [vmem:[#allocation3 + $0x70] sm:$0xf0]  ;;  %1538 = vmatpush.bf16.msra.mxu1 %v4443_v33 }
 0x66d   :  { %v1254_v63 = vmul.f32 %v6339_v1, %v6339_v1 }
 0x66f   :  { %1260 = vadd.xlane.f32.xlu1 %v1254_v63  ;;  %v4450_v63 = vld [vmem:[#allocation3 + $0x68] sm:$0xf]  ;;  %1539 = vmatpush.bf16.msra.mxu1 %v4427_v47  ;;  %v5409_v47 = vld [vmem:[%s7128_s9] ss:$0 sm:$0xff] }
 0x670   :  { %v1243_v6 = vpop.xlane.xlu1 %1242 }
 0x671   :  { %v1247_v7 = vmul.f32 %v1243_v6, %v5843_v11  ;;  %v5183_v6 = vld [vmem:[#allocation3 + $0x74] sm:$0xf0] }
 0x673   :  { %v6344_v50 = vsub.f32 %v1233_v52, %v1247_v7  ;;  %v4467_v52 = vor.u32 %v5187_v12, %v4466_v51  ;;  %v4447_v7 = vor.u32 %v5180_v34, %v4444_v62  ;;  %1540 = vmatpush.bf16.msra.mxu1 %v4411_v14  ;;  %v4407_v51 = vor.u32 %v5169_v46, %v4404_v13  ;;  %v5206_v46 = vld [vmem:[#allocation5 + $0x30] sm:$0xff]  ;;  %v5205_v13 = vld [vmem:[#allocation5 + $0x28] sm:$0xff] }
 0x675   :  { %v1255_v8 = vmul.f32 %v6344_v50, %v6344_v50  ;;  %1575 = vmatpush.bf16.msrb.mxu3 %v4467_v52  ;;  %1557 = vmatpush.bf16.msrb.mxu2 %v4447_v7 }
 0x676   :  { %1598 = vmatpush.bf16.msra.mxu0 %v4407_v51  ;;  %v5229_v51 = vld [vmem:[#allocation5 + $0xe8] sm:$0xff] }
 0x677   :  { %1262 = vadd.xlane.f32.xlu2 %v1255_v8  ;;  %v4451_v8 = vor.u32 %v5183_v6, %v4450_v63  ;;  %1541 = vmatpush.bf16.msra.mxu1 %v4395_v40 }
 0x679   :  { %1576 = vmatpush.bf16.msrb.mxu3 %v4451_v8  ;;  %1558 = vmatpush.bf16.msrb.mxu2 %v4431_v24 }
 0x67a   :  { %2079 = vmatpush.bf16.msrb.mxu0 %v5231_v45 }
 0x67d   :  { %1577 = vmatpush.bf16.msrb.mxu3 %v4435_v23  ;;  %1559 = vmatpush.bf16.msrb.mxu2 %v4415_v37 }
 0x681   :  { %1578 = vmatpush.bf16.msrb.mxu3 %v4419_v16  ;;  %1560 = vmatpush.bf16.msrb.mxu2 %v4399_v28 }
 0x685   :  { %1579 = vmatpush.bf16.msrb.mxu3 %v4403_v3  ;;  %v5215_v3 = vld [vmem:[#allocation5 + $0x78] sm:$0xff] }
 0x686   :  { %2041 = vmatpush.bf16.msra.mxu2 %v5215_v3 }
 0x6a2   :  { %v1257_v36 = vpop.xlane.xlu2 %1256 }
 0x6a3   :  { %v1264_v41 = vmul.f32 %v1257_v36, %v5843_v11 }
 0x6a5   :  { %v1268_v49 = vadd.f32 1e-12, %v1264_v41 }
 0x6a7   :  { %5496 = vrsqrt.f32 %v1268_v49  ;;  %vm1278_vm2 = vweird.f32 %v1268_v49 }
 0x6aa   :  { %v1259_v12 = vpop.xlane.xlu0 %1258 }
 0x6ab   :  { %v1265_v38 = vmul.f32 %v1259_v12, %v5843_v11  ;;  %v5214_v12 = vld [vmem:[#allocation5 + $0x70] sm:$0xff] }
 0x6ac   :  { %2042 = vmatpush.bf16.msra.mxu2 %v5214_v12 }
 0x6ad   :  { %v5497_v52 = vpop.eup %5496  ;;  %v1269_v44 = vadd.f32 1e-12, %v1265_v38  ;;  %v5222_v38 = vld [vmem:[#allocation5 + $0xb0] sm:$0xff] }
 0x6ae   :  { %v1273_v54 = vmul.f32 %v5497_v52, %v1268_v49  ;;  %vm1279_vm1 = vweird.f32 %v5497_v52  ;;  %v5230_v49 = vld [vmem:[#allocation5 + $0xf0] sm:$0xff] }
 0x6af   :  { %5498 = vrsqrt.f32 %v1269_v44  ;;  %vm1280_vm3 = vmor %vm1278_vm2, %vm1279_vm1  ;;  %vm1288_vm5 = vweird.f32 %v1269_v44  ;;  %2080 = vmatpush.bf16.msrb.mxu0 %v5230_v49 }
 0x6b0   :  { %v1274_v55 = vmul.f32 %v5497_v52, %v1273_v54  ;;  %v5213_v54 = vld [vmem:[#allocation5 + $0x68] sm:$0xff] }
 0x6b1   :  { %2043 = vmatpush.bf16.msra.mxu2 %v5213_v54 }
 0x6b2   :  { %v1275_v22 = vmul.f32 0.5, %v1274_v55  ;;  %v5221_v55 = vld [vmem:[#allocation5 + $0xa8] sm:$0xff] }
 0x6b3   :  { %2081 = vmatpush.bf16.msrb.mxu0 %v5229_v51 }
 0x6b4   :  { %v1276_v59 = vsub.f32 1.5, %v1275_v22  ;;  %v5203_v22 = vld [vmem:[#allocation5 + $0x18] sm:$0xff] }
 0x6b5   :  { %v5499_v34 = vpop.eup %5498 }
 0x6b6   :  { %v1277_v33 = vmul.f32 %v5497_v52, %v1276_v59  ;;  %v1283_v62 = vmul.f32 %v5499_v34, %v1269_v44  ;;  %vm1289_vm4 = vweird.f32 %v5499_v34  ;;  %v5228_v44 = vld [vmem:[#allocation5 + $0xe0] sm:$0xff]  ;;  %v5227_v59 = vld [vmem:[#allocation5 + $0xd8] sm:$0xff] }
 0x6b7   :  { %vm1290_vm6 = vmor %vm1288_vm5, %vm1289_vm4  ;;  %2082 = vmatpush.bf16.msrb.mxu0 %v5228_v44 }
 0x6b8   :  { %v1284_v63 = vmul.f32 %v5499_v34, %v1283_v62  ;;  %v1281_v6 = vsel %vm1280_vm3, %v5497_v52, %v1277_v33  ;;  %v5204_v52 = vld [vmem:[#allocation5 + $0x20] sm:$0xff]  ;;  %v5202_v62 = vld [vmem:[#allocation5 + $0x10] sm:$0xff] }
 0x6b9   :  { %v1312_v25 = vmul.f32 %v1281_v6, %v6329_v21  ;;  %v5220_v33 = vld [vmem:[#allocation5 + $0xa0] sm:$0xff]  ;;  %v5211_v6 = vld [vmem:[#allocation5 + $0x58] sm:$0xff] }
 0x6ba   :  { %v1285_v7 = vmul.f32 0.5, %v1284_v63  ;;  %v5226_v63 = vld [vmem:[#allocation5 + $0xd0] sm:$0xff] }
 0x6bb   :  { %v1319_v56 = vmul.f32 %v5408_v10, %v1312_v25  ;;  %2083 = vmatpush.bf16.msrb.mxu0 %v5227_v59  ;;  %v5225_v25 = vld [vmem:[#allocation5 + $0xc8] sm:$0xff] }
 0x6bc   :  { %v1286_v8 = vsub.f32 1.5, %v1285_v7  ;;  %v5219_v7 = vld [vmem:[#allocation5 + $0x98] sm:$0xff] }
 0x6bd   :  { %v6358_v39 = vadd.f32 %v5409_v47, %v1319_v56  ;;  %v5224_v56 = vld [vmem:[#allocation5 + $0xc0] sm:$0xff] }
 0x6be   :  { %v1287_v35 = vmul.f32 %v5499_v34, %v1286_v8  ;;  %v5201_v8 = vld [vmem:[#allocation5 + $0x8] sm:$0xff] }
 0x6bf   :  { %2084 = vmatpush.bf16.msrb.mxu0 %v5226_v63 }
 0x6c0   :  { %v1291_v9 = vsel %vm1290_vm6, %v5499_v34, %v1287_v35  ;;  %v5212_v34 = vld [vmem:[#allocation5 + $0x60] sm:$0xff]  ;;  %v5210_v35 = vld [vmem:[#allocation5 + $0x50] sm:$0xff] }
 0x6c1   :  { %v1313_v18 = vmul.f32 %v1291_v9, %v6334_v61  ;;  %2044 = vmatpush.bf16.msra.mxu2 %v5212_v34  ;;  %v5218_v9 = vld [vmem:[#allocation5 + $0x90] sm:$0xff] }
 0x6c3   :  { %v1320_v32 = vmul.f32 %v5408_v10, %v1313_v18  ;;  %2085 = vmatpush.bf16.msrb.mxu0 %v5225_v25  ;;  %v5200_v18 = vld [vmem:[#allocation5] sm:$0xff] }
 0x6c5   :  { %v6360_v15 = vadd.f32 %v5409_v47, %v1320_v32  ;;  %2045 = vmatpush.bf16.msra.mxu2 %v5211_v6 }
 0x6c7   :  { %v1330_v21 = vpack.c.bf16 %v6360_v15, %v6358_v39  ;;  %2086 = vmatpush.bf16.msrb.mxu0 %v5224_v56 }
 0x6c9   :  { %1542 = vmatmul.bf16.vlgmr.msra.gmra.mxu1 %v1330_v21  ;;  %1561 = vmatmul.bf16.vlgmr.msrb.gmra.mxu2 %v1330_v21 }
 0x6ca   :  { %1580 = vmatmul.bf16.vlgmr.msrb.gmra.mxu3 %v1330_v21  ;;  %1599 = vmatmul.bf16.vlgmr.msra.gmra.mxu0 %v1330_v21  ;;  %v5209_v21 = vld [vmem:[#allocation5 + $0x48] sm:$0xff] }
 0x6cb   :  { %2046 = vmatpush.bf16.msra.mxu2 %v5210_v35 }
 0x6cf   :  { %2047 = vmatpush.bf16.msra.mxu2 %v5209_v21 }
 0x6e2   :  { %v1261_v24 = vpop.xlane.xlu1 %1260 }
 0x6e3   :  { %v1266_v61 = vmul.f32 %v1261_v24, %v5843_v11  ;;  %v5217_v24 = vld [vmem:[#allocation5 + $0x88] sm:$0xff] }
 0x6e5   :  { %v1270_v23 = vadd.f32 1e-12, %v1266_v61 }
 0x6e7   :  { %5500 = vrsqrt.f32 %v1270_v23  ;;  %vm1298_vm8 = vweird.f32 %v1270_v23 }
 0x6ea   :  { %v1263_v17 = vpop.xlane.xlu2 %1262 }
 0x6eb   :  { %v1267_v20 = vmul.f32 %v1263_v17, %v5843_v11 }
 0x6ed   :  { %v5501_v58 = vpop.eup %5500  ;;  %v1271_v0 = vadd.f32 1e-12, %v1267_v20 }
 0x6ee   :  { %v1293_v2 = vmul.f32 %v5501_v58, %v1270_v23  ;;  %vm1299_vm7 = vweird.f32 %v5501_v58 }
 0x6ef   :  { %5502 = vrsqrt.f32 %v1271_v0  ;;  %vm1300_vm9 = vmor %vm1298_vm8, %vm1299_vm7  ;;  %vm1308_vm11 = vweird.f32 %v1271_v0 }
 0x6f0   :  { %v1294_v27 = vmul.f32 %v5501_v58, %v1293_v2  ;;  %v5208_v2 = vld [vmem:[#allocation5 + $0x40] sm:$0xff] }
 0x6f1   :  { %2048 = vmatpush.bf16.msra.mxu2 %v5208_v2 }
 0x6f2   :  { %v1295_v14 = vmul.f32 0.5, %v1294_v27  ;;  %v5216_v27 = vld [vmem:[#allocation5 + $0x80] sm:$0xff] }
 0x6f4   :  { %v1296_v5 = vsub.f32 1.5, %v1295_v14 }
 0x6f5   :  { %v5503_v31 = vpop.eup %5502 }
 0x6f6   :  { %v1297_v29 = vmul.f32 %v5501_v58, %v1296_v5  ;;  %v1303_v36 = vmul.f32 %v5503_v31, %v1271_v0  ;;  %vm1309_vm10 = vweird.f32 %v5503_v31 }
 0x6f7   :  { %vm1310_vm12 = vmor %vm1308_vm11, %vm1309_vm10 }
 0x6f8   :  { %v1301_v37 = vsel %vm1300_vm9, %v5501_v58, %v1297_v29  ;;  %v1304_v16 = vmul.f32 %v5503_v31, %v1303_v36 }
 0x6f9   :  { %v1314_v19 = vmul.f32 %v1301_v37, %v6339_v1  ;;  %v5207_v1 = vld [vmem:[#allocation5 + $0x38] sm:$0xff] }
 0x6fa   :  { %v1305_v53 = vmul.f32 0.5, %v1304_v16  ;;  %2022 = vmatpush.bf16.msrb.mxu1 %v5207_v1 }
 0x6fb   :  { %v1321_v26 = vmul.f32 %v5408_v10, %v1314_v19 }
 0x6fc   :  { %v1306_v41 = vsub.f32 1.5, %v1305_v53 }
 0x6fd   :  { %v6367_v30 = vadd.f32 %v5409_v47, %v1321_v26 }
 0x6fe   :  { %v1307_v57 = vmul.f32 %v5503_v31, %v1306_v41  ;;  %2023 = vmatpush.bf16.msrb.mxu1 %v5206_v46 }
 0x700   :  { %v1311_v4 = vsel %vm1310_vm12, %v5503_v31, %v1307_v57 }
 0x701   :  { %v1315_v42 = vmul.f32 %v1311_v4, %v6344_v50  ;;  %v5223_v50 = vld [vmem:[#allocation5 + $0xb8] sm:$0xff] }
 0x702   :  { %2060 = vmatpush.bf16.msra.mxu3 %v5223_v50  ;;  %2024 = vmatpush.bf16.msrb.mxu1 %v5205_v13 }
 0x703   :  { %v1322_v40 = vmul.f32 %v5408_v10, %v1315_v42  ;;  %v1364_v10 = vld [vmem:[%s7130_s11] sm:$0xf] }
 0x704   :  { %v6379_v32 = vperm.slane %v1364_v10, 3  ;;  %v6388_v0 = vperm.slane %v1364_v10, 1  ;;  %v6391_v5 = vperm.slane %v1364_v10, 2 }
 0x705   :  { %v6370_v28 = vadd.f32 %v5409_v47, %v1322_v40  ;;  %v6377_v47 = vperm.slane %v1364_v10, 0 }
 0x706   :  { %2061 = vmatpush.bf16.msra.mxu3 %v5222_v38  ;;  %2025 = vmatpush.bf16.msrb.mxu1 %v5204_v52 }
 0x707   :  { %v1331_v43 = vpack.c.bf16 %v6370_v28, %v6367_v30 }
 0x709   :  { %1547 = vmatmul.bf16.gmra.mxu1 %v1331_v43  ;;  %1566 = vmatmul.bf16.gmra.mxu2 %v1331_v43 }
 0x70a   :  { %1585 = vmatmul.bf16.gmra.mxu3 %v1331_v43  ;;  %1604 = vmatmul.bf16.gmra.mxu0 %v1331_v43 }
 0x70b   :  { %2062 = vmatpush.bf16.msra.mxu3 %v5221_v55  ;;  %2026 = vmatpush.bf16.msrb.mxu1 %v5203_v22 }
 0x70f   :  { %2063 = vmatpush.bf16.msra.mxu3 %v5220_v33  ;;  %2027 = vmatpush.bf16.msrb.mxu1 %v5202_v62 }
 0x713   :  { %2064 = vmatpush.bf16.msra.mxu3 %v5219_v7  ;;  %2028 = vmatpush.bf16.msrb.mxu1 %v5201_v8 }
 0x717   :  { %2065 = vmatpush.bf16.msra.mxu3 %v5218_v9  ;;  %2029 = vmatpush.bf16.msrb.mxu1 %v5200_v18 }
 0x71b   :  { %2066 = vmatpush.bf16.msra.mxu3 %v5217_v24 }
 0x71f   :  { %2067 = vmatpush.bf16.msra.mxu3 %v5216_v27 }
 0x746   :  { %v1543_v61 = vpop.f32.mrf.mxu1 }
 0x747   :  { %v6382_v23 = vadd.f32 %v1543_v61, %v6377_v47  ;;  %v1600_v17 = vpop.f32.mrf.mxu0 }
 0x748   :  { %v6385_v20 = vadd.f32 %v1600_v17, %v6379_v32 }
 0x749   :  { %v1626_v58 = vmul.f32 0.044715, %v6382_v23 }
 0x74a   :  { %v1629_v14 = vmul.f32 0.044715, %v6385_v20 }
 0x74b   :  { %v1642_v31 = vmul.f32 %v1626_v58, %v6382_v23 }
 0x74c   :  { %v1645_v29 = vmul.f32 %v1629_v14, %v6385_v20  ;;  %v1562_v36 = vpop.f32.mrf.mxu2 }
 0x74d   :  { %v1658_v37 = vmul.f32 %v1642_v31, %v6382_v23  ;;  %v6397_v16 = vadd.f32 %v1562_v36, %v6388_v0  ;;  %v1581_v19 = vpop.f32.mrf.mxu3 }
 0x74e   :  { %v1661_v53 = vmul.f32 %v1645_v29, %v6385_v20  ;;  %v6401_v26 = vadd.f32 %v1581_v19, %v6391_v5  ;;  %v1545_v41 = vpop.f32.mrf.mxu1 }
 0x74f   :  { %v1674_v57 = vadd.f32 %v1658_v37, %v6382_v23  ;;  %v1627_v4 = vmul.f32 0.044715, %v6397_v16  ;;  %v1546_v42 = vadd.f32 %v1545_v41, %v6377_v47  ;;  %v1602_v40 = vpop.f32.mrf.mxu0 }
 0x750   :  { %v1677_v43 = vadd.f32 %v1661_v53, %v6385_v20  ;;  %v1628_v1 = vmul.f32 0.044715, %v6401_v26  ;;  %v1603_v45 = vadd.f32 %v1602_v40, %v6379_v32  ;;  %v1610_v53 = vmul.f32 0.5, %v6382_v23 }
 0x751   :  { %v1643_v46 = vmul.f32 %v1627_v4, %v6397_v16  ;;  %v1630_v49 = vmul.f32 0.044715, %v1546_v42  ;;  %v1690_v13 = vmul.f32 0.7978846, %v1674_v57  ;;  %v1614_v41 = vmul.f32 0.5, %v1546_v42 }
 0x752   :  { %v1644_v3 = vmul.f32 %v1628_v1, %v6401_v26  ;;  %v1633_v50 = vmul.f32 0.044715, %v1603_v45  ;;  %v1693_v38 = vmul.f32 0.7978846, %v1677_v43  ;;  %v1613_v40 = vmul.f32 0.5, %v6385_v20 }
 0x753   :  { %v1659_v51 = vmul.f32 %v1643_v46, %v6397_v16  ;;  %v1646_v12 = vmul.f32 %v1630_v49, %v1546_v42  ;;  %5504 = vtanh.f32 %v1690_v13  ;;  %v1617_v43 = vmul.f32 0.5, %v1603_v45 }
 0x754   :  { %v1660_v52 = vmul.f32 %v1644_v3, %v6401_v26  ;;  %v1649_v44 = vmul.f32 %v1633_v50, %v1603_v45  ;;  %v1564_v54 = vpop.f32.mrf.mxu2  ;;  %5506 = vtanh.f32 %v1693_v38  ;;  %v1611_v23 = vmul.f32 0.5, %v6397_v16 }
 0x755   :  { %v1675_v55 = vadd.f32 %v1659_v51, %v6397_v16  ;;  %v1662_v22 = vmul.f32 %v1646_v12, %v1546_v42  ;;  %v1565_v59 = vadd.f32 %v1564_v54, %v6388_v0  ;;  %v1583_v34 = vpop.f32.mrf.mxu3  ;;  %v1612_v20 = vmul.f32 0.5, %v6401_v26 }
 0x756   :  { %v1676_v33 = vadd.f32 %v1660_v52, %v6401_v26  ;;  %v1665_v62 = vmul.f32 %v1649_v44, %v1603_v45  ;;  %v1584_v63 = vadd.f32 %v1583_v34, %v6391_v5 }
 0x757   :  { %v1631_v6 = vmul.f32 0.044715, %v1565_v59  ;;  %v1678_v7 = vadd.f32 %v1662_v22, %v1546_v42  ;;  %v1691_v10 = vmul.f32 0.7978846, %v1675_v55  ;;  %v1615_v42 = vmul.f32 0.5, %v1565_v59 }
 0x758   :  { %v1632_v8 = vmul.f32 0.044715, %v1584_v63  ;;  %v1681_v25 = vadd.f32 %v1665_v62, %v1603_v45  ;;  %v1692_v18 = vmul.f32 0.7978846, %v1676_v33  ;;  %v1616_v45 = vmul.f32 0.5, %v1584_v63 }
 0x759   :  { %v1647_v35 = vmul.f32 %v1631_v6, %v1565_v59  ;;  %v1694_v9 = vmul.f32 0.7978846, %v1678_v7  ;;  %v5505_v17 = vpop.eup %5504 }
 0x75a   :  { %v1648_v56 = vmul.f32 %v1632_v8, %v1584_v63  ;;  %v1697_v21 = vmul.f32 0.7978846, %v1681_v25  ;;  %v5507_v2 = vpop.eup %5506  ;;  %v1722_v31 = vadd.f32 1.0, %v5505_v17 }
 0x75b   :  { %v1663_v24 = vmul.f32 %v1647_v35, %v1565_v59  ;;  %5508 = vtanh.f32 %v1694_v9  ;;  %v1725_v37 = vadd.f32 1.0, %v5507_v2 }
 0x75c   :  { %v1664_v61 = vmul.f32 %v1648_v56, %v1584_v63  ;;  %5510 = vtanh.f32 %v1697_v21  ;;  %v1738_v49 = vmul.f32 %v1722_v31, %v1610_v53 }
 0x75d   :  { %v1679_v58 = vadd.f32 %v1663_v24, %v1565_v59  ;;  %5512 = vtanh.f32 %v1691_v10  ;;  %v1741_v50 = vmul.f32 %v1725_v37, %v1613_v40 }
 0x75e   :  { %v1680_v27 = vadd.f32 %v1664_v61, %v1584_v63  ;;  %5514 = vtanh.f32 %v1692_v18 }
 0x75f   :  { %v1695_v14 = vmul.f32 0.7978846, %v1679_v58 }
 0x760   :  { %v1696_v29 = vmul.f32 0.7978846, %v1680_v27 }
 0x761   :  { %v5509_v36 = vpop.eup %5508  ;;  %5516 = vtanh.f32 %v1695_v14 }
 0x762   :  { %v5511_v19 = vpop.eup %5510  ;;  %v1726_v57 = vadd.f32 1.0, %v5509_v36  ;;  %5518 = vtanh.f32 %v1696_v29 }
 0x763   :  { %v5513_v4 = vpop.eup %5512  ;;  %v1729_v1 = vadd.f32 1.0, %v5511_v19 }
 0x764   :  { %v5515_v46 = vpop.eup %5514  ;;  %v1742_v3 = vmul.f32 %v1726_v57, %v1614_v41  ;;  %v1723_v12 = vadd.f32 1.0, %v5513_v4 }
 0x765   :  { %v1745_v13 = vmul.f32 %v1729_v1, %v1617_v43  ;;  %v1724_v44 = vadd.f32 1.0, %v5515_v46 }
 0x766   :  { %v1754_v51 = vpack.c.bf16 %v1742_v3, %v1738_v49  ;;  %v1739_v34 = vmul.f32 %v1723_v12, %v1611_v23 }
 0x767   :  { %v5517_v38 = vpop.eup %5516  ;;  %v1757_v52 = vpack.c.bf16 %v1745_v13, %v1741_v50  ;;  %v1740_v62 = vmul.f32 %v1724_v44, %v1612_v20 }
 0x768   :  { %v5519_v54 = vpop.eup %5518  ;;  %2030 = vmatmul.bf16.vlgmr.msrb.gmra.mxu1 %v1754_v51  ;;  %v1727_v55 = vadd.f32 1.0, %v5517_v38 }
 0x769   :  { %2087 = vmatmul.bf16.vlgmr.msrb.gmra.mxu0 %v1757_v52  ;;  %v1728_v22 = vadd.f32 1.0, %v5519_v54 }
 0x76a   :  { %v1743_v33 = vmul.f32 %v1727_v55, %v1615_v42 }
 0x76b   :  { %v1744_v6 = vmul.f32 %v1728_v22, %v1616_v45 }
 0x76c   :  { %v1755_v7 = vpack.c.bf16 %v1743_v33, %v1739_v34 }
 0x76d   :  { %v1756_v8 = vpack.c.bf16 %v1744_v6, %v1740_v62 }
 0x76e   :  { %2049 = vmatmul.bf16.vlgmr.msra.gmra.mxu2 %v1755_v7 }
 0x76f   :  { %2068 = vmatmul.bf16.vlgmr.msra.gmra.mxu3 %v1756_v8 }
 0x786   :  { %v1548_v25 = vpop.f32.mrf.mxu1 }
 0x787   :  { %v6422_v10 = vadd.f32 %v1548_v25, %v6377_v47  ;;  %v1605_v16 = vpop.f32.mrf.mxu0 }
 0x788   :  { %v6425_v59 = vadd.f32 %v1605_v16, %v6379_v32 }
 0x789   :  { %v1634_v26 = vmul.f32 0.044715, %v6422_v10 }
 0x78a   :  { %v1637_v63 = vmul.f32 0.044715, %v6425_v59 }
 0x78b   :  { %v1650_v35 = vmul.f32 %v1634_v26, %v6422_v10 }
 0x78c   :  { %v1567_v9 = vpop.f32.mrf.mxu2  ;;  %v1653_v18 = vmul.f32 %v1637_v63, %v6425_v59 }
 0x78d   :  { %v6432_v56 = vadd.f32 %v1567_v9, %v6388_v0  ;;  %v1586_v21 = vpop.f32.mrf.mxu3  ;;  %v1666_v24 = vmul.f32 %v1650_v35, %v6422_v10  ;;  %v1618_v9 = vmul.f32 0.5, %v6422_v10 }
 0x78e   :  { %v6436_v61 = vadd.f32 %v1586_v21, %v6391_v5  ;;  %v1550_v17 = vpop.f32.mrf.mxu1  ;;  %v1669_v58 = vmul.f32 %v1653_v18, %v6425_v59 }
 0x78f   :  { %v1635_v2 = vmul.f32 0.044715, %v6432_v56  ;;  %v1551_v27 = vadd.f32 %v1550_v17, %v6377_v47  ;;  %v1607_v14 = vpop.f32.mrf.mxu0  ;;  %v1682_v31 = vadd.f32 %v1666_v24, %v6422_v10  ;;  %v1621_v17 = vmul.f32 0.5, %v6425_v59 }
 0x790   :  { %v1636_v29 = vmul.f32 0.044715, %v6436_v61  ;;  %v1608_v36 = vadd.f32 %v1607_v14, %v6379_v32  ;;  %v1685_v37 = vadd.f32 %v1669_v58, %v6425_v59  ;;  %v1619_v10 = vmul.f32 0.5, %v6432_v56 }
 0x791   :  { %v1638_v19 = vmul.f32 0.044715, %v1551_v27  ;;  %v1651_v53 = vmul.f32 %v1635_v2, %v6432_v56  ;;  %v1698_v40 = vmul.f32 0.7978846, %v1682_v31  ;;  %v1622_v18 = vmul.f32 0.5, %v1551_v27 }
 0x792   :  { %v1641_v41 = vmul.f32 0.044715, %v1608_v36  ;;  %v1652_v57 = vmul.f32 %v1636_v29, %v6436_v61  ;;  %v1701_v46 = vmul.f32 0.7978846, %v1685_v37  ;;  %v1625_v58 = vmul.f32 0.5, %v1608_v36 }
 0x793   :  { %v1654_v4 = vmul.f32 %v1638_v19, %v1551_v27  ;;  %v1667_v43 = vmul.f32 %v1651_v53, %v6432_v56  ;;  %5520 = vtanh.f32 %v1698_v40  ;;  %v1620_v59 = vmul.f32 0.5, %v6436_v61 }
 0x794   :  { %v1569_v47 = vpop.f32.mrf.mxu2  ;;  %v1657_v1 = vmul.f32 %v1641_v41, %v1608_v36  ;;  %v1668_v49 = vmul.f32 %v1652_v57, %v6436_v61  ;;  %5522 = vtanh.f32 %v1701_v46 }
 0x795   :  { %v1570_v3 = vadd.f32 %v1569_v47, %v6388_v0  ;;  %v1588_v32 = vpop.f32.mrf.mxu3  ;;  %v1670_v50 = vmul.f32 %v1654_v4, %v1551_v27  ;;  %v1683_v13 = vadd.f32 %v1667_v43, %v6432_v56  ;;  %v5410_v56 = vld [vmem:[%s7132_s13] ss:$0 sm:$0xff] }
 0x796   :  { %v1589_v51 = vadd.f32 %v1588_v32, %v6391_v5  ;;  %v1673_v12 = vmul.f32 %v1657_v1, %v1608_v36  ;;  %v1684_v38 = vadd.f32 %v1668_v49, %v6436_v61 }
 0x797   :  { %v1686_v52 = vadd.f32 %v1670_v50, %v1551_v27  ;;  %v1639_v44 = vmul.f32 0.044715, %v1570_v3  ;;  %v1699_v20 = vmul.f32 0.7978846, %v1683_v13  ;;  %v1623_v27 = vmul.f32 0.5, %v1570_v3 }
 0x798   :  { %v1689_v54 = vadd.f32 %v1673_v12, %v1608_v36  ;;  %v1640_v23 = vmul.f32 0.044715, %v1589_v51  ;;  %v1700_v22 = vmul.f32 0.7978846, %v1684_v38  ;;  %v1624_v36 = vmul.f32 0.5, %v1589_v51 }
 0x799   :  { %v1702_v42 = vmul.f32 0.7978846, %v1686_v52  ;;  %v1655_v55 = vmul.f32 %v1639_v44, %v1570_v3  ;;  %v5521_v5 = vpop.eup %5520 }
 0x79a   :  { %v1705_v45 = vmul.f32 0.7978846, %v1689_v54  ;;  %v1656_v0 = vmul.f32 %v1640_v23, %v1589_v51  ;;  %v5523_v6 = vpop.eup %5522  ;;  %v1730_v25 = vadd.f32 1.0, %v5521_v5 }
 0x79b   :  { %5524 = vtanh.f32 %v1702_v42  ;;  %v1671_v34 = vmul.f32 %v1655_v55, %v1570_v3  ;;  %v1733_v63 = vadd.f32 1.0, %v5523_v6 }
 0x79c   :  { %5526 = vtanh.f32 %v1705_v45  ;;  %v1672_v33 = vmul.f32 %v1656_v0, %v1589_v51  ;;  %v1746_v31 = vmul.f32 %v1730_v25, %v1618_v9 }
 0x79d   :  { %v1687_v62 = vadd.f32 %v1671_v34, %v1570_v3  ;;  %5528 = vtanh.f32 %v1699_v20  ;;  %v1749_v37 = vmul.f32 %v1733_v63, %v1621_v17 }
 0x79e   :  { %v1688_v7 = vadd.f32 %v1672_v33, %v1589_v51  ;;  %5530 = vtanh.f32 %v1700_v22 }
 0x79f   :  { %v1703_v8 = vmul.f32 0.7978846, %v1687_v62 }
 0x7a0   :  { %v1704_v16 = vmul.f32 0.7978846, %v1688_v7 }
 0x7a1   :  { %v5525_v26 = vpop.eup %5524  ;;  %5532 = vtanh.f32 %v1703_v8 }
 0x7a2   :  { %v5527_v35 = vpop.eup %5526  ;;  %v1734_v21 = vadd.f32 1.0, %v5525_v26  ;;  %5534 = vtanh.f32 %v1704_v16 }
 0x7a3   :  { %v5529_v24 = vpop.eup %5528  ;;  %v1737_v2 = vadd.f32 1.0, %v5527_v35 }
 0x7a4   :  { %v5531_v14 = vpop.eup %5530  ;;  %v1750_v29 = vmul.f32 %v1734_v21, %v1622_v18  ;;  %v1731_v41 = vadd.f32 1.0, %v5529_v24 }
 0x7a5   :  { %v1753_v19 = vmul.f32 %v1737_v2, %v1625_v58  ;;  %v1732_v40 = vadd.f32 1.0, %v5531_v14 }
 0x7a6   :  { %v1758_v53 = vpack.c.bf16 %v1750_v29, %v1746_v31  ;;  %v1747_v46 = vmul.f32 %v1731_v41, %v1619_v10 }
 0x7a7   :  { %v5533_v57 = vpop.eup %5532  ;;  %v1761_v4 = vpack.c.bf16 %v1753_v19, %v1749_v37  ;;  %v1748_v32 = vmul.f32 %v1732_v40, %v1620_v59 }
 0x7a8   :  { %v5535_v43 = vpop.eup %5534  ;;  %2035 = vmatmul.bf16.gmra.mxu1 %v1758_v53  ;;  %v1735_v47 = vadd.f32 1.0, %v5533_v57 }
 0x7a9   :  { %2092 = vmatmul.bf16.gmra.mxu0 %v1761_v4  ;;  %v1736_v1 = vadd.f32 1.0, %v5535_v43 }
 0x7aa   :  { %v1751_v49 = vmul.f32 %v1735_v47, %v1623_v27 }
 0x7ab   :  { %v1752_v50 = vmul.f32 %v1736_v1, %v1624_v36  ;;  %v4767_v36 = vld [vmem:[%s7148_s28 + $0x168] sm:$0xf]  ;;  %v5254_v1 = vld [vmem:[%s7148_s28 + $0x170] sm:$0xf0] }
 0x7ac   :  { %v1759_v13 = vpack.c.bf16 %v1751_v49, %v1747_v46  ;;  %v5253_v46 = vld [vmem:[%s7148_s28 + $0x16c] sm:$0xf]  ;;  %v4768_v49 = vor.u32 %v5254_v1, %v4767_v36  ;;  %v4697_v1 = vld [vmem:[%s7148_s28 + $0xe4] sm:$0xf0] }
 0x7ad   :  { %v1760_v12 = vpack.c.bf16 %v1752_v50, %v1748_v32  ;;  %v4769_v32 = vld [vmem:[%s7148_s28 + $0x174] sm:$0xf0]  ;;  %v4775_v50 = vld [vmem:[%s7148_s28 + $0x170] sm:$0xf] }
 0x7ae   :  { %2054 = vmatmul.bf16.gmra.mxu2 %v1759_v13  ;;  %v5255_v13 = vld [vmem:[%s7148_s28 + $0x178] sm:$0xf0]  ;;  %2370 = vmatpush.bf16.msra.mxu1 %v4768_v49  ;;  %v5237_v49 = vld [vmem:[%s7148_s28 + $0xe8] sm:$0xf0] }
 0x7af   :  { %2073 = vmatmul.bf16.gmra.mxu3 %v1760_v12  ;;  %v4772_v12 = vor.u32 %v5253_v46, %v4769_v32  ;;  %v4703_v46 = vld [vmem:[%s7148_s28 + $0xe0] sm:$0xf] }
 0x7b1   :  { %2389 = vmatpush.bf16.msrb.mxu2 %v4772_v12  ;;  %v4683_v12 = vld [vmem:[%s7148_s28 + $0xc0] sm:$0xf] }
 0x7e5   :  { %v2031_v38 = vpop.f32.mrf.mxu1 }
 0x7e6   :  { %v2032_v3 = vadd.f32 %v5410_v56, %v2031_v38  ;;  %v2088_v61 = vpop.f32.mrf.mxu0  ;;  %v4776_v38 = vor.u32 %v5255_v13, %v4775_v50  ;;  %v4704_v13 = vor.u32 %v5237_v49, %v4703_v46 }
 0x7e8   :  { %2408 = vmatpush.bf16.msrb.mxu3 %v4776_v38  ;;  %v5233_v38 = vld [vmem:[%s7148_s28 + $0xc8] sm:$0xf0] }
 0x7ed   :  { %v2033_v23 = vpop.f32.mrf.mxu1 }
 0x7ee   :  { %v2034_v55 = vadd.f32 %v5410_v56, %v2033_v23  ;;  %v2090_v33 = vpop.f32.mrf.mxu0 }
 0x7f1   :  { %v2050_v52 = vpop.f32.mrf.mxu2 }
 0x7f2   :  { %v2051_v44 = vadd.f32 %v2050_v52, %v2032_v3  ;;  %v2069_v54 = vpop.f32.mrf.mxu3  ;;  %v5251_v3 = vld [vmem:[%s7148_s28 + $0x158] sm:$0xf0]  ;;  %v5250_v52 = vld [vmem:[%s7148_s28 + $0x154] sm:$0xf] }
 0x7f4   :  { %v2070_v51 = vadd.f32 %v2069_v54, %v2051_v44  ;;  %v4757_v54 = vld [vmem:[%s7148_s28 + $0x15c] sm:$0xf0] }
 0x7f5   :  { %v4760_v23 = vor.u32 %v5250_v52, %v4757_v54  ;;  %v4684_v52 = vor.u32 %v5233_v38, %v4683_v12  ;;  %v4691_v54 = vld [vmem:[%s7148_s28 + $0xc8] sm:$0xf] }
 0x7f6   :  { %v2089_v42 = vadd.f32 %v2088_v61, %v2070_v51  ;;  %v4763_v61 = vld [vmem:[%s7148_s28 + $0x158] sm:$0xf]  ;;  %v5252_v51 = vld [vmem:[%s7148_s28 + $0x160] sm:$0xf0] }
 0x7f7   :  { %2390 = vmatpush.bf16.msrb.mxu2 %v4760_v23 }
 0x7f8   :  { %v2098_v20 = vadd.f32 %v2089_v42, %v6358_v39  ;;  %v4764_v42 = vor.u32 %v5252_v51, %v4763_v61  ;;  %v5234_v61 = vld [vmem:[%s7148_s28 + $0xd0] sm:$0xf0] }
 0x7f9   :  { %v2052_v45 = vpop.f32.mrf.mxu2  ;;  %v4692_v23 = vor.u32 %v5234_v61, %v4691_v54 }
 0x7fa   :  { %v2053_v0 = vadd.f32 %v2052_v45, %v2034_v55  ;;  %2104 = vadd.xlane.f32.xlu0 %v2098_v20  ;;  %v2071_v22 = vpop.f32.mrf.mxu3  ;;  %2409 = vmatpush.bf16.msrb.mxu3 %v4764_v42  ;;  %v4743_v55 = vld [vmem:[%s7148_s28 + $0x138] sm:$0xf]  ;;  %v5247_v45 = vld [vmem:[%s7148_s28 + $0x13c] sm:$0xf] }
 0x7fc   :  { %v2072_v34 = vadd.f32 %v2071_v22, %v2053_v0  ;;  %v4745_v22 = vld [vmem:[%s7148_s28 + $0x144] sm:$0xf0] }
 0x7fe   :  { %v2091_v5 = vadd.f32 %v2090_v33, %v2072_v34  ;;  %v4751_v34 = vld [vmem:[%s7148_s28 + $0x140] sm:$0xf]  ;;  %v5249_v33 = vld [vmem:[%s7148_s28 + $0x148] sm:$0xf0] }
 0x800   :  { %v2099_v62 = vadd.f32 %v2091_v5, %v6360_v15  ;;  %v4748_v5 = vor.u32 %v5247_v45, %v4745_v22 }
 0x802   :  { %2106 = vadd.xlane.f32.xlu1 %v2099_v62  ;;  %2391 = vmatpush.bf16.msrb.mxu2 %v4748_v5 }
 0x825   :  { %v2036_v6 = vpop.f32.mrf.mxu1 }
 0x826   :  { %v2037_v7 = vadd.f32 %v5410_v56, %v2036_v6  ;;  %v2093_v26 = vpop.f32.mrf.mxu0  ;;  %v4731_v6 = vld [vmem:[%s7148_s28 + $0x120] sm:$0xf] }
 0x82d   :  { %v2038_v35 = vpop.f32.mrf.mxu1 }
 0x82e   :  { %v2039_v39 = vadd.f32 %v5410_v56, %v2038_v35  ;;  %v2095_v2 = vpop.f32.mrf.mxu0  ;;  %v4755_v56 = vld [vmem:[%s7148_s28 + $0x150] sm:$0xf] }
 0x82f   :  { %v4756_v44 = vor.u32 %v5251_v3, %v4755_v56  ;;  %v5232_v56 = vld [vmem:[%s7148_s28 + $0xc4] sm:$0xf] }
 0x831   :  { %v2055_v8 = vpop.f32.mrf.mxu2  ;;  %2371 = vmatpush.bf16.msra.mxu1 %v4756_v44  ;;  %v4685_v44 = vld [vmem:[%s7148_s28 + $0xcc] sm:$0xf0] }
 0x832   :  { %v2056_v25 = vadd.f32 %v2055_v8, %v2037_v7  ;;  %v2074_v16 = vpop.f32.mrf.mxu3  ;;  %v5245_v7 = vld [vmem:[%s7148_s28 + $0x128] sm:$0xf0]  ;;  %v5244_v8 = vld [vmem:[%s7148_s28 + $0x124] sm:$0xf]  ;;  %v4688_v51 = vor.u32 %v5232_v56, %v4685_v44 }
 0x833   :  { %v4680_v44 = vld [vmem:[%s7124_s5 + $0x3] sm:$0x7] }
 0x834   :  { %v2075_v63 = vadd.f32 %v2074_v16, %v2056_v25  ;;  %v4732_v25 = vor.u32 %v5245_v7, %v4731_v6  ;;  %v4733_v16 = vld [vmem:[%s7148_s28 + $0x12c] sm:$0xf0]  ;;  %v2237_v61 = vperm.slane %v4680_v44, 1 }
 0x835   :  { %v4736_v35 = vor.u32 %v5244_v8, %v4733_v16 }
 0x836   :  { %v2094_v9 = vadd.f32 %v2093_v26, %v2075_v63  ;;  %v4739_v26 = vld [vmem:[%s7148_s28 + $0x128] sm:$0xf]  ;;  %v5246_v63 = vld [vmem:[%s7148_s28 + $0x130] sm:$0xf0] }
 0x837   :  { %2392 = vmatpush.bf16.msrb.mxu2 %v4736_v35  ;;  %v5411_v35 = vld [vmem:[%s7133_s14] ss:$0 sm:$0xff] }
 0x838   :  { %v2100_v18 = vadd.f32 %v2094_v9, %v6367_v30  ;;  %v4740_v9 = vor.u32 %v5246_v63, %v4739_v26 }
 0x839   :  { %v2057_v21 = vpop.f32.mrf.mxu2 }
 0x83a   :  { %v2058_v24 = vadd.f32 %v2057_v21, %v2039_v39  ;;  %2108 = vadd.xlane.f32.xlu2 %v2100_v18  ;;  %v2076_v17 = vpop.f32.mrf.mxu3  ;;  %v4719_v39 = vld [vmem:[%s7148_s28 + $0x108] sm:$0xf]  ;;  %v5241_v21 = vld [vmem:[%s7148_s28 + $0x10c] sm:$0xf] }
 0x83c   :  { %v2077_v58 = vadd.f32 %v2076_v17, %v2058_v24  ;;  %v4721_v17 = vld [vmem:[%s7148_s28 + $0x114] sm:$0xf0] }
 0x83e   :  { %v2096_v15 = vadd.f32 %v2095_v2, %v2077_v58  ;;  %v4727_v58 = vld [vmem:[%s7148_s28 + $0x110] sm:$0xf]  ;;  %v5243_v2 = vld [vmem:[%s7148_s28 + $0x118] sm:$0xf0] }
 0x840   :  { %v2101_v14 = vadd.f32 %v2096_v15, %v6370_v28  ;;  %v4724_v15 = vor.u32 %v5241_v21, %v4721_v17 }
 0x842   :  { %2110 = vadd.xlane.f32.xlu0 %v2101_v14  ;;  %2393 = vmatpush.bf16.msrb.mxu2 %v4724_v15 }
 0x86d   :  { %v2105_v31 = vpop.xlane.xlu0 %2104 }
 0x86e   :  { %v2112_v29 = vmul.f32 %v2105_v31, %v5843_v11  ;;  %v4707_v31 = vld [vmem:[%s7148_s28 + $0xf0] sm:$0xf] }
 0x870   :  { %v6465_v37 = vsub.f32 %v2098_v20, %v2112_v29  ;;  %v5248_v20 = vld [vmem:[%s7148_s28 + $0x140] sm:$0xf0]  ;;  %v5239_v29 = vld [vmem:[%s7148_s28 + $0xf8] sm:$0xf0] }
 0x871   :  { %v4744_v0 = vor.u32 %v5248_v20, %v4743_v55 }
 0x872   :  { %v2120_v19 = vmul.f32 %v6465_v37, %v6465_v37 }
 0x873   :  { %2372 = vmatpush.bf16.msra.mxu1 %v4744_v0 }
 0x874   :  { %2124 = vadd.xlane.f32.xlu1 %v2120_v19  ;;  %v5238_v19 = vld [vmem:[%s7148_s28 + $0xf4] sm:$0xf] }
 0x875   :  { %v2107_v30 = vpop.xlane.xlu1 %2106 }
 0x876   :  { %v2113_v53 = vmul.f32 %v2107_v30, %v5843_v11  ;;  %v4708_v30 = vor.u32 %v5239_v29, %v4707_v31 }
 0x877   :  { %2373 = vmatpush.bf16.msra.mxu1 %v4732_v25 }
 0x878   :  { %v6470_v41 = vsub.f32 %v2099_v62, %v2113_v53  ;;  %v4752_v62 = vor.u32 %v5249_v33, %v4751_v34  ;;  %v4709_v53 = vld [vmem:[%s7148_s28 + $0xfc] sm:$0xf0] }
 0x87a   :  { %v2121_v57 = vmul.f32 %v6470_v41, %v6470_v41  ;;  %2410 = vmatpush.bf16.msrb.mxu3 %v4752_v62 }
 0x87c   :  { %2126 = vadd.xlane.f32.xlu2 %v2121_v57  ;;  %v4715_v57 = vld [vmem:[%s7148_s28 + $0xf8] sm:$0xf] }
 0x87e   :  { %2411 = vmatpush.bf16.msrb.mxu3 %v4740_v9 }
 0x8ad   :  { %v2109_v28 = vpop.xlane.xlu2 %2108 }
 0x8ae   :  { %v2114_v4 = vmul.f32 %v2109_v28, %v5843_v11  ;;  %v5240_v28 = vld [vmem:[%s7148_s28 + $0x100] sm:$0xf0] }
 0x8b0   :  { %v6475_v40 = vsub.f32 %v2100_v18, %v2114_v4  ;;  %v5242_v18 = vld [vmem:[%s7148_s28 + $0x110] sm:$0xf0]  ;;  %v4712_v4 = vor.u32 %v5238_v19, %v4709_v53 }
 0x8b1   :  { %v4720_v24 = vor.u32 %v5242_v18, %v4719_v39 }
 0x8b2   :  { %v2122_v43 = vmul.f32 %v6475_v40, %v6475_v40  ;;  %2394 = vmatpush.bf16.msrb.mxu2 %v4712_v4 }
 0x8b3   :  { %2374 = vmatpush.bf16.msra.mxu1 %v4720_v24  ;;  %v5412_v24 = vld [vmem:[%s7134_s15] ss:$0 sm:$0xff] }
 0x8b4   :  { %2128 = vadd.xlane.f32.xlu0 %v2122_v43  ;;  %v4716_v43 = vor.u32 %v5240_v28, %v4715_v57 }
 0x8b5   :  { %v2111_v10 = vpop.xlane.xlu0 %2110 }
 0x8b6   :  { %v2115_v27 = vmul.f32 %v2111_v10, %v5843_v11  ;;  %v4695_v10 = vld [vmem:[%s7148_s28 + $0xd8] sm:$0xf] }
 0x8b7   :  { %2375 = vmatpush.bf16.msra.mxu1 %v4708_v30 }
 0x8b8   :  { %v6480_v47 = vsub.f32 %v2101_v14, %v2115_v27  ;;  %v4728_v14 = vor.u32 %v5243_v2, %v4727_v58  ;;  %v5236_v27 = vld [vmem:[%s7148_s28 + $0xe0] sm:$0xf0] }
 0x8b9   :  { %v4696_v36 = vor.u32 %v5236_v27, %v4695_v10 }
 0x8ba   :  { %v2123_v59 = vmul.f32 %v6480_v47, %v6480_v47  ;;  %2412 = vmatpush.bf16.msrb.mxu3 %v4728_v14 }
 0x8bb   :  { %2376 = vmatpush.bf16.msra.mxu1 %v4696_v36 }
 0x8bc   :  { %2130 = vadd.xlane.f32.xlu1 %v2123_v59  ;;  %v5235_v59 = vld [vmem:[%s7148_s28 + $0xdc] sm:$0xf] }
 0x8bd   :  { %v4700_v50 = vor.u32 %v5235_v59, %v4697_v1 }
 0x8be   :  { %2413 = vmatpush.bf16.msrb.mxu3 %v4716_v43 }
 0x8bf   :  { %2395 = vmatpush.bf16.msrb.mxu2 %v4700_v50  ;;  %2377 = vmatpush.bf16.msra.mxu1 %v4684_v52 }
 0x8c2   :  { %2414 = vmatpush.bf16.msrb.mxu3 %v4704_v13 }
 0x8c3   :  { %2396 = vmatpush.bf16.msrb.mxu2 %v4688_v51  ;;  %v2236_v51 = vperm.slane %v4680_v44, 0 }
 0x8c6   :  { %2415 = vmatpush.bf16.msrb.mxu3 %v4692_v23 }
 0x8e7   :  { %v2125_v32 = vpop.xlane.xlu1 %2124 }
 0x8e8   :  { %v2132_v3 = vmul.f32 %v2125_v32, %v5843_v11 }
 0x8ea   :  { %v2136_v42 = vadd.f32 1e-12, %v2132_v3 }
 0x8ec   :  { %5536 = vrsqrt.f32 %v2136_v42  ;;  %vm2146_vm2 = vweird.f32 %v2136_v42 }
 0x8ef   :  { %v2127_v55 = vpop.xlane.xlu2 %2126 }
 0x8f0   :  { %v2133_v20 = vmul.f32 %v2127_v55, %v5843_v11 }
 0x8f2   :  { %v5537_v45 = vpop.eup %5536  ;;  %v2137_v0 = vadd.f32 1e-12, %v2133_v20 }
 0x8f3   :  { %v2141_v22 = vmul.f32 %v5537_v45, %v2136_v42  ;;  %vm2147_vm1 = vweird.f32 %v5537_v45 }
 0x8f4   :  { %5538 = vrsqrt.f32 %v2137_v0  ;;  %vm2148_vm3 = vmor %vm2146_vm2, %vm2147_vm1  ;;  %vm2156_vm5 = vweird.f32 %v2137_v0 }
 0x8f5   :  { %v2142_v34 = vmul.f32 %v5537_v45, %v2141_v22 }
 0x8f7   :  { %v2143_v33 = vmul.f32 0.5, %v2142_v34 }
 0x8f9   :  { %v2144_v5 = vsub.f32 1.5, %v2143_v33 }
 0x8fa   :  { %v5539_v62 = vpop.eup %5538 }
 0x8fb   :  { %v2145_v6 = vmul.f32 %v5537_v45, %v2144_v5  ;;  %v2151_v7 = vmul.f32 %v5539_v62, %v2137_v0  ;;  %vm2157_vm4 = vweird.f32 %v5539_v62 }
 0x8fc   :  { %vm2158_vm6 = vmor %vm2156_vm5, %vm2157_vm4 }
 0x8fd   :  { %v2152_v8 = vmul.f32 %v5539_v62, %v2151_v7  ;;  %v2149_v25 = vsel %vm2148_vm3, %v5537_v45, %v2145_v6 }
 0x8fe   :  { %v2180_v63 = vmul.f32 %v2149_v25, %v6465_v37 }
 0x8ff   :  { %v2153_v16 = vmul.f32 0.5, %v2152_v8 }
 0x900   :  { %v2187_v21 = vmul.f32 %v5411_v35, %v2180_v63 }
 0x901   :  { %v2154_v26 = vsub.f32 1.5, %v2153_v16 }
 0x902   :  { %v6638_v58 = vadd.f32 %v5412_v24, %v2187_v21 }
 0x903   :  { %v2155_v9 = vmul.f32 %v5539_v62, %v2154_v26 }
 0x905   :  { %v2159_v39 = vsel %vm2158_vm6, %v5539_v62, %v2155_v9 }
 0x906   :  { %v2181_v18 = vmul.f32 %v2159_v39, %v6470_v41 }
 0x908   :  { %v2188_v17 = vmul.f32 %v5411_v35, %v2181_v18  ;;  %v2238_v18 = vperm.slane %v4680_v44, 2 }
 0x90a   :  { %v6640_v2 = vadd.f32 %v5412_v24, %v2188_v17 }
 0x90c   :  { %v2198_v37 = vpack.c.bf16 %v6640_v2, %v6638_v58 }
 0x90e   :  { %2378 = vmatmul.bf16.vlgmr.msra.gmra.mxu1 %v2198_v37  ;;  %2397 = vmatmul.bf16.vlgmr.msrb.gmra.mxu2 %v2198_v37 }
 0x90f   :  { %2416 = vmatmul.bf16.vlgmr.msrb.gmra.mxu3 %v2198_v37 }
 0x927   :  { %v2129_v15 = vpop.xlane.xlu0 %2128 }
 0x928   :  { %v2134_v14 = vmul.f32 %v2129_v15, %v5843_v11 }
 0x92a   :  { %v2138_v41 = vadd.f32 1e-12, %v2134_v14 }
 0x92c   :  { %5540 = vrsqrt.f32 %v2138_v41  ;;  %vm2166_vm8 = vweird.f32 %v2138_v41 }
 0x92f   :  { %v2131_v31 = vpop.xlane.xlu1 %2130 }
 0x930   :  { %v2135_v29 = vmul.f32 %v2131_v31, %v5843_v11 }
 0x932   :  { %v5541_v19 = vpop.eup %5540  ;;  %v2139_v30 = vadd.f32 1e-12, %v2135_v29 }
 0x933   :  { %v2161_v53 = vmul.f32 %v5541_v19, %v2138_v41  ;;  %vm2167_vm7 = vweird.f32 %v5541_v19 }
 0x934   :  { %5542 = vrsqrt.f32 %v2139_v30  ;;  %vm2168_vm9 = vmor %vm2166_vm8, %vm2167_vm7  ;;  %vm2176_vm11 = vweird.f32 %v2139_v30 }
 0x935   :  { %v2162_v57 = vmul.f32 %v5541_v19, %v2161_v53 }
 0x937   :  { %v2163_v28 = vmul.f32 0.5, %v2162_v57 }
 0x939   :  { %v2164_v4 = vsub.f32 1.5, %v2163_v28 }
 0x93a   :  { %v5543_v43 = vpop.eup %5542 }
 0x93b   :  { %v2165_v10 = vmul.f32 %v5541_v19, %v2164_v4  ;;  %v2171_v27 = vmul.f32 %v5543_v43, %v2139_v30  ;;  %vm2177_vm10 = vweird.f32 %v5543_v43 }
 0x93c   :  { %vm2178_vm12 = vmor %vm2176_vm11, %vm2177_vm10 }
 0x93d   :  { %v2169_v59 = vsel %vm2168_vm9, %v5541_v19, %v2165_v10  ;;  %v2172_v36 = vmul.f32 %v5543_v43, %v2171_v27 }
 0x93e   :  { %v2182_v1 = vmul.f32 %v2169_v59, %v6475_v40 }
 0x93f   :  { %v2173_v46 = vmul.f32 0.5, %v2172_v36 }
 0x940   :  { %v2189_v49 = vmul.f32 %v5411_v35, %v2182_v1 }
 0x941   :  { %v2174_v32 = vsub.f32 1.5, %v2173_v46 }
 0x942   :  { %v6647_v50 = vadd.f32 %v5412_v24, %v2189_v49 }
 0x943   :  { %v2175_v13 = vmul.f32 %v5543_v43, %v2174_v32 }
 0x945   :  { %v2179_v12 = vsel %vm2178_vm12, %v5543_v43, %v2175_v13 }
 0x946   :  { %v2183_v38 = vmul.f32 %v2179_v12, %v6480_v47 }
 0x948   :  { %v2190_v56 = vmul.f32 %v5411_v35, %v2183_v38 }
 0x94a   :  { %v6650_v3 = vadd.f32 %v5412_v24, %v2190_v56 }
 0x94c   :  { %v2199_v52 = vpack.c.bf16 %v6650_v3, %v6647_v50 }
 0x94e   :  { %2383 = vmatmul.bf16.gmra.mxu1 %v2199_v52  ;;  %2402 = vmatmul.bf16.gmra.mxu2 %v2199_v52 }
 0x94f   :  { %2421 = vmatmul.bf16.gmra.mxu3 %v2199_v52 }
 0x98b   :  { %v2379_v40 = vpop.f32.mrf.mxu1 }
 0x98c   :  { %v2380_v47 = vadd.f32 %v2379_v40, %v2236_v51 }
 0x991   :  { %v2398_v54 = vpop.f32.mrf.mxu2 }
 0x992   :  { %v2399_v23 = vadd.f32 %v2398_v54, %v2237_v61  ;;  %v2417_v25 = vpop.f32.mrf.mxu3 }
 0x993   :  { %v2381_v42 = vpop.f32.mrf.mxu1  ;;  %v2418_v37 = vadd.f32 %v2417_v25, %v2238_v18 }
 0x994   :  { %v2427_v20 = vpack.c.bf16 %v2399_v23, %v2380_v47  ;;  %v2382_v45 = vadd.f32 %v2381_v42, %v2236_v51 }
 0x995   :  { %v2428_v19 = vpack.c.bf16 %v2418_v37, %v2418_v37 }
 0x996   :  { %v2437_v34 = vunpack.c.l.b16 %v2427_v20  ;;  %v2440_v33 = vunpack.c.h.b16 %v2427_v20 }
 0x997   :  { %v2866_v27 = vunpack.c.l.b16 %v2428_v19 }
 0x999   :  { %v2400_v55 = vpop.f32.mrf.mxu2 }
 0x99a   :  { %v2401_v0 = vadd.f32 %v2400_v55, %v2237_v61  ;;  %v2419_v16 = vpop.f32.mrf.mxu3 }
 0x99b   :  { %v2420_v24 = vadd.f32 %v2419_v16, %v2238_v18 }
 0x99c   :  { %v2429_v22 = vpack.c.bf16 %v2401_v0, %v2382_v45 }
 0x99d   :  { %v2430_v15 = vpack.c.bf16 %v2420_v24, %v2420_v24 }
 0x99e   :  { %v2438_v5 = vunpack.c.l.b16 %v2429_v22  ;;  %v2441_v62 = vunpack.c.h.b16 %v2429_v22 }
 0x99f   :  { %v2867_v53 = vunpack.c.l.b16 %v2430_v15 }
 0x9a0   :  { %v2439_v6 = vpack.c.b16 %v2438_v5, %v2437_v34  ;;  %v2442_v7 = vpack.c.b16 %v2441_v62, %v2440_v33 }
 0x9a1   :  { %v6665_v46 = vpack.c.b16 %v2867_v53, %v2866_v27 }
 0x9a2   :  { %2513 = vrot.lane.b32.xlu0 %v2442_v7, %s5714_s22  ;;  %2489 = vrot.lane.b32.xlu2 %v2442_v7, %s5710_s0  ;;  %v2447_v8 = vsel %vm455_vm13, %v2442_v7, 0 }
 0x9a3   :  { %2487 = vrot.lane.b32.xlu1 %v2439_v6, %s5710_s0  ;;  %2456 = vmatpush.bf16.xpose.msra.mxu0 %v2447_v8 }
 0x9aa   :  { %2465 = vrot.lane.b32.xlu0 %v2442_v7, %s5713_s1  ;;  %2511 = vrot.lane.b32.xlu2 %v2439_v6, %s5714_s22 }
 0x9ab   :  { %4777 = vmatmul.msk.bf16.vlgmr.msra.gmra.mxu0 %vm455_vm13, %v2439_v6 }
 0x9b2   :  { %2463 = vrot.lane.b32.xlu0 %v2439_v6, %s5713_s1 }
 0x9cb   :  { %v2384_v26 = vpop.f32.mrf.mxu1 }
 0x9cc   :  { %v2385_v35 = vadd.f32 %v2384_v26, %v2236_v51 }
 0x9d1   :  { %v2403_v63 = vpop.f32.mrf.mxu2 }
 0x9d2   :  { %v2404_v9 = vadd.f32 %v2403_v63, %v2237_v61  ;;  %v2422_v39 = vpop.f32.mrf.mxu3 }
 0x9d3   :  { %v2386_v17 = vpop.f32.mrf.mxu1  ;;  %v2423_v59 = vadd.f32 %v2422_v39, %v2238_v18 }
 0x9d4   :  { %v2431_v21 = vpack.c.bf16 %v2404_v9, %v2385_v35  ;;  %v2387_v41 = vadd.f32 %v2386_v17, %v2236_v51 }
 0x9d5   :  { %v2432_v13 = vpack.c.bf16 %v2423_v59, %v2423_v59 }
 0x9d6   :  { %v2537_v57 = vunpack.c.l.b16 %v2431_v21  ;;  %v2540_v28 = vunpack.c.h.b16 %v2431_v21 }
 0x9d7   :  { %v2999_v38 = vunpack.c.l.b16 %v2432_v13 }
 0x9d9   :  { %v2405_v14 = vpop.f32.mrf.mxu2 }
 0x9da   :  { %v2406_v31 = vadd.f32 %v2405_v14, %v2237_v61  ;;  %v2424_v29 = vpop.f32.mrf.mxu3 }
 0x9db   :  { %v2425_v10 = vadd.f32 %v2424_v29, %v2238_v18 }
 0x9dc   :  { %v2433_v30 = vpack.c.bf16 %v2406_v31, %v2387_v41 }
 0x9dd   :  { %v2434_v49 = vpack.c.bf16 %v2425_v10, %v2425_v10 }
 0x9de   :  { %v2538_v4 = vunpack.c.l.b16 %v2433_v30  ;;  %v2541_v43 = vunpack.c.h.b16 %v2433_v30 }
 0x9df   :  { %v3000_v12 = vunpack.c.l.b16 %v2434_v49 }
 0x9e0   :  { %v2539_v36 = vpack.c.b16 %v2538_v4, %v2537_v57  ;;  %v2542_v1 = vpack.c.b16 %v2541_v43, %v2540_v28 }
 0x9e1   :  { %v6672_v56 = vpack.c.b16 %v3000_v12, %v2999_v38 }
 0x9e2   :  { %2565 = vrot.lane.b32.xlu0 %v2542_v1, %s5713_s1  ;;  %2613 = vrot.lane.b32.xlu2 %v2542_v1, %s5714_s22  ;;  %v2547_v32 = vsel %vm455_vm13, %v2542_v1, 0 }
 0x9e3   :  { %2589 = vrot.lane.b32.xlu1 %v2542_v1, %s5710_s0  ;;  %2556 = vmatpush.bf16.xpose.msrb.mxu0 %v2547_v32 }
 0x9ea   :  { %2917 = vrot.lane.b32.xlu0 %v6665_v46, %s5710_s0  ;;  %2611 = vrot.lane.b32.xlu2 %v2539_v36, %s5714_s22 }
 0x9eb   :  { %2880 = vmatpush.bf16.msra.mxu0 %v6665_v46  ;;  %2587 = vrot.lane.b32.xlu1 %v2539_v36, %s5710_s0 }
 0x9ec   :  { %4781 = vmatmul.msk.bf16.vlgmr.msrb.gmra.mxu0 %vm455_vm13, %v2539_v36 }
 0x9ef   :  { %3013 = vmatpush.bf16.msrb.mxu0 %v6672_v56 }
 0x9f3   :  { %2563 = vrot.lane.b32.xlu1 %v2539_v36, %s5713_s1 }
 0x9fb   :  { %2942 = vrot.lane.b32.xlu1 %v6665_v46, %s5714_s22 }
 0x9fc   :  { %v2490_v52 = vpop.permute.xlu2 %2489 }
 0x9fd   :  { %v2495_v40 = vsel %vm455_vm13, %v2490_v52, 0 }
 0x9fe   :  { %2504 = vmatpush.bf16.xpose.msra.mxu2 %v2495_v40 }
 0xa04   :  { %v2512_v51 = vpop.permute.xlu2 %2511 }
 0xa14   :  { %v2514_v44 = vpop.permute.xlu0 %2513 }
 0xa15   :  { %v2488_v54 = vpop.permute.xlu1 %2487  ;;  %v2519_v61 = vsel %vm455_vm13, %v2514_v44, 0 }
 0xa16   :  { %4779 = vmatmul.msk.bf16.vlgmr.msra.gmra.mxu2 %vm455_vm13, %v2488_v54  ;;  %2528 = vmatpush.bf16.xpose.msra.mxu3 %v2519_v61 }
 0xa1c   :  { %v2466_v23 = vpop.permute.xlu0 %2465 }
 0xa1d   :  { %v2471_v42 = vsel %vm455_vm13, %v2466_v23, 0  ;;  %4780 = vmatmul.msk.bf16.vlgmr.msra.gmra.mxu3 %vm455_vm13, %v2512_v51 }
 0xa1e   :  { %2480 = vmatpush.bf16.xpose.msrb.mxu1 %v2471_v42 }
 0xa24   :  { %v2464_v47 = vpop.permute.xlu0 %2463 }
 0xa25   :  { %4778 = vmatmul.msk.bf16.vlgmr.msrb.gmra.mxu1 %vm455_vm13, %v2464_v47 }
 0xa28   :  { %v2458_v55 = vpop.f32.mrf.mxu0 }
 0xa29   :  { %v2635_v20 = vmul.f32 0.17677669, %v2458_v55 }
 0xa2b   :  { %v6690_v45 = vadd.f32 %v2635_v20, %v6070_v48 }
 0xa2d   :  { %v2667_v0 = vsel %vm680_vm14, %v6690_v45, -inf }
 0xa2e   :  { %2668 = vmax.xlane.f32.xlu2 %v2667_v0 }
 0xa30   :  { %v2460_v22 = vpop.f32.mrf.mxu0 }
 0xa31   :  { %v2636_v34 = vmul.f32 0.17677669, %v2460_v22 }
 0xa33   :  { %v6695_v33 = vadd.f32 %v2636_v34, %v6070_v48 }
 0xa35   :  { %v2670_v5 = vsel %vm680_vm14, %v6695_v33, -inf }
 0xa36   :  { %2671 = vmax.xlane.f32.xlu0 %v2670_v5 }
 0xa3c   :  { %v2614_v62 = vpop.permute.xlu2 %2613 }
 0xa3d   :  { %v2619_v6 = vsel %vm455_vm13, %v2614_v62, 0 }
 0xa3e   :  { %2628 = vmatpush.bf16.xpose.msrb.mxu3 %v2619_v6 }
 0xa44   :  { %v2612_v7 = vpop.permute.xlu2 %2611 }
 0xa45   :  { %4784 = vmatmul.msk.bf16.vlgmr.msrb.gmra.mxu3 %vm455_vm13, %v2612_v7 }
 0xa54   :  { %v2566_v8 = vpop.permute.xlu0 %2565 }
 0xa55   :  { %v2590_v25 = vpop.permute.xlu1 %2589  ;;  %v2571_v16 = vsel %vm455_vm13, %v2566_v8, 0 }
 0xa56   :  { %v2595_v26 = vsel %vm455_vm13, %v2590_v25, 0  ;;  %2580 = vmatpush.bf16.xpose.msra.mxu1 %v2571_v16 }
 0xa57   :  { %2604 = vmatpush.bf16.xpose.msrb.mxu2 %v2595_v26 }
 0xa5c   :  { %v2918_v63 = vpop.permute.xlu0 %2917 }
 0xa5d   :  { %v2588_v35 = vpop.permute.xlu1 %2587 }
 0xa5e   :  { %4783 = vmatmul.msk.bf16.vlgmr.msrb.gmra.mxu2 %vm455_vm13, %v2588_v35 }
 0xa5f   :  { %2930 = vmatpush.bf16.msra.mxu2 %v2918_v63 }
 0xa65   :  { %v2564_v9 = vpop.permute.xlu1 %2563 }
 0xa66   :  { %4782 = vmatmul.msk.bf16.vlgmr.msra.gmra.mxu1 %vm455_vm13, %v2564_v9 }
 0xa69   :  { %v2558_v39 = vpop.f32.mrf.mxu0 }
 0xa6a   :  { %v2643_v18 = vmul.f32 0.17677669, %v2558_v39 }
 0xa6c   :  { %v6706_v21 = vadd.f32 %v2643_v18, %v6086_v60 }
 0xa6d   :  { %v2943_v24 = vpop.permute.xlu1 %2942 }
 0xa6e   :  { %v2691_v17 = vsel %vm680_vm14, %v6706_v21, -inf  ;;  %2955 = vmatpush.bf16.msra.mxu3 %v2943_v24 }
 0xa6f   :  { %2692 = vmax.xlane.f32.xlu1 %v2691_v17 }
 0xa71   :  { %v2560_v37 = vpop.f32.mrf.mxu0 }
 0xa72   :  { %v2644_v15 = vmul.f32 0.17677669, %v2560_v37 }
 0xa74   :  { %v6711_v14 = vadd.f32 %v2644_v15, %v6086_v60 }
 0xa76   :  { %v2694_v41 = vsel %vm680_vm14, %v6711_v14, -inf }
 0xa77   :  { %2695 = vmax.xlane.f32.xlu2 %v2694_v41 }
 0xa99   :  { %v2506_v31 = vpop.f32.mrf.mxu2 }
 0xa9a   :  { %v2639_v29 = vmul.f32 0.17677669, %v2506_v31 }
 0xa9c   :  { %v6716_v19 = vadd.f32 %v2639_v29, %v6070_v48 }
 0xa9e   :  { %v2679_v30 = vsel %vm680_vm14, %v6716_v19, -inf }
 0xa9f   :  { %2680 = vmax.xlane.f32.xlu2 %v2679_v30 }
 0xaa0   :  { %v2530_v53 = vpop.f32.mrf.mxu3 }
 0xaa1   :  { %v2641_v57 = vmul.f32 0.17677669, %v2530_v53  ;;  %v2508_v10 = vpop.f32.mrf.mxu2  ;;  %v6775_v17 = vpop.xlane.xlu2 %2668 }
 0xaa2   :  { %v2482_v28 = vpop.f32.mrf.mxu1  ;;  %v2640_v36 = vmul.f32 0.17677669, %v2508_v10 }
 0xaa3   :  { %v2637_v4 = vmul.f32 0.17677669, %v2482_v28  ;;  %v6721_v43 = vadd.f32 %v2641_v57, %v6070_v48 }
 0xaa4   :  { %v6734_v52 = vadd.f32 %v2640_v36, %v6070_v48 }
 0xaa5   :  { %v2685_v27 = vsel %vm680_vm14, %v6721_v43, -inf  ;;  %v6726_v59 = vadd.f32 %v2637_v4, %v6070_v48 }
 0xaa6   :  { %2686 = vmax.xlane.f32.xlu1 %v2685_v27  ;;  %v2682_v54 = vsel %vm680_vm14, %v6734_v52, -inf }
 0xaa7   :  { %v2673_v1 = vsel %vm680_vm14, %v6726_v59, -inf }
 0xaa8   :  { %v2532_v49 = vpop.f32.mrf.mxu3  ;;  %2674 = vmax.xlane.f32.xlu0 %v2673_v1 }
 0xaa9   :  { %v2642_v32 = vmul.f32 0.17677669, %v2532_v49  ;;  %v6783_v41 = vpop.xlane.xlu0 %2671 }
 0xaaa   :  { %v2484_v13 = vpop.f32.mrf.mxu1 }
 0xaab   :  { %v2638_v12 = vmul.f32 0.17677669, %v2484_v13  ;;  %v6731_v38 = vadd.f32 %v2642_v32, %v6070_v48 }
 0xaad   :  { %v2688_v40 = vsel %vm680_vm14, %v6731_v38, -inf  ;;  %v6739_v44 = vadd.f32 %v2638_v12, %v6070_v48 }
 0xaae   :  { %2689 = vmax.xlane.f32.xlu2 %v2688_v40 }
 0xaaf   :  { %v2676_v61 = vsel %vm680_vm14, %v6739_v44, -inf }
 0xab0   :  { %2683 = vmax.xlane.f32.xlu0 %v2682_v54  ;;  %2677 = vmax.xlane.f32.xlu1 %v2676_v61 }
 0xac8   :  { %v2630_v51 = vpop.f32.mrf.mxu3 }
 0xac9   :  { %v2649_v23 = vmul.f32 0.17677669, %v2630_v51 }
 0xacb   :  { %v6746_v42 = vadd.f32 %v2649_v23, %v6086_v60 }
 0xacd   :  { %v2709_v47 = vsel %vm680_vm14, %v6746_v42, -inf }
 0xace   :  { %2710 = vmax.xlane.f32.xlu1 %v2709_v47 }
 0xad0   :  { %v2632_v20 = vpop.f32.mrf.mxu3 }
 0xad1   :  { %v2650_v5 = vmul.f32 0.17677669, %v2632_v20 }
 0xad3   :  { %v6761_v16 = vadd.f32 %v2650_v5, %v6086_v60 }
 0xad5   :  { %v2712_v9 = vsel %vm680_vm14, %v6761_v16, -inf }
 0xae1   :  { %v2606_v48 = vpop.f32.mrf.mxu2 }
 0xae2   :  { %v2647_v55 = vmul.f32 0.17677669, %v2606_v48  ;;  %v6781_v15 = vpop.xlane.xlu1 %2692 }
 0xae3   :  { %v2582_v0 = vpop.f32.mrf.mxu1 }
 0xae4   :  { %v2645_v22 = vmul.f32 0.17677669, %v2582_v0  ;;  %v6751_v34 = vadd.f32 %v2647_v55, %v6086_v60 }
 0xae6   :  { %v2703_v62 = vsel %vm680_vm14, %v6751_v34, -inf  ;;  %v6756_v6 = vadd.f32 %v2645_v22, %v6086_v60 }
 0xae7   :  { %2704 = vmax.xlane.f32.xlu2 %v2703_v62 }
 0xae8   :  { %v2697_v7 = vsel %vm680_vm14, %v6756_v6, -inf }
 0xae9   :  { %v2608_v8 = vpop.f32.mrf.mxu2  ;;  %2698 = vmax.xlane.f32.xlu0 %v2697_v7 }
 0xaea   :  { %v2648_v25 = vmul.f32 0.17677669, %v2608_v8  ;;  %v6779_v37 = vpop.xlane.xlu2 %2695 }
 0xaeb   :  { %v2584_v26 = vpop.f32.mrf.mxu1 }
 0xaec   :  { %v2646_v63 = vmul.f32 0.17677669, %v2584_v26  ;;  %v6764_v35 = vadd.f32 %v2648_v25, %v6086_v60 }
 0xaee   :  { %v6769_v39 = vadd.f32 %v2646_v63, %v6086_v60  ;;  %v2706_v18 = vsel %vm680_vm14, %v6764_v35, -inf }
 0xaef   :  { %2713 = vmax.xlane.f32.xlu2 %v2712_v9 }
 0xaf0   :  { %v2700_v24 = vsel %vm680_vm14, %v6769_v39, -inf }
 0xaf1   :  { %2707 = vmax.xlane.f32.xlu0 %v2706_v18  ;;  %2701 = vmax.xlane.f32.xlu1 %v2700_v24 }
 0xb07   :  { %2892 = vrot.lane.b32.xlu2 %v6665_v46, %s5713_s1 }
 0xb12   :  { %v2681_v60 = vpop.xlane.xlu2 %2680 }
 0xb13   :  { %v2719_v31 = vsub.f32 %v6716_v19, %v2681_v60 }
 0xb15   :  { %v2739_v29 = vmul.f32 1.442695, %v2719_v31 }
 0xb17   :  { %5544 = vpow2.f32 %v2739_v29 }
 0xb19   :  { %v2687_v30 = vpop.xlane.xlu1 %2686 }
 0xb1a   :  { %v2721_v53 = vsub.f32 %v6721_v43, %v2687_v30 }
 0xb1b   :  { %v2675_v57 = vpop.xlane.xlu0 %2674 }
 0xb1c   :  { %v2743_v28 = vmul.f32 1.442695, %v2721_v53  ;;  %v2717_v46 = vsub.f32 %v6726_v59, %v2675_v57 }
 0xb1d   :  { %v6787_v4 = vpop.eup %5544 }
 0xb1e   :  { %5546 = vpow2.f32 %v2743_v28  ;;  %v2775_v10 = vsel %vm680_vm14, %v6787_v4, 0.0  ;;  %v2735_v27 = vmul.f32 1.442695, %v2717_v46 }
 0xb1f   :  { %2776 = vadd.xlane.f32.xlu1 %v2775_v10 }
 0xb20   :  { %5548 = vpow2.f32 %v2735_v27  ;;  %v2716_v27 = vsub.f32 %v6695_v33, %v6783_v41 }
 0xb21   :  { %v2690_v36 = vpop.xlane.xlu2 %2689 }
 0xb22   :  { %v2722_v19 = vsub.f32 %v6731_v38, %v2690_v36 }
 0xb23   :  { %v2678_v1 = vpop.xlane.xlu1 %2677  ;;  %v2684_v49 = vpop.xlane.xlu0 %2683 }
 0xb24   :  { %v6793_v32 = vpop.eup %5546  ;;  %v2745_v43 = vmul.f32 1.442695, %v2722_v19  ;;  %v2718_v13 = vsub.f32 %v6739_v44, %v2678_v1  ;;  %v2720_v40 = vsub.f32 %v6734_v52, %v2684_v49  ;;  %v2733_v19 = vmul.f32 1.442695, %v2716_v27 }
 0xb25   :  { %v2781_v59 = vsel %vm680_vm14, %v6793_v32, 0.0 }
 0xb26   :  { %5550 = vpow2.f32 %v2745_v43  ;;  %v2737_v12 = vmul.f32 1.442695, %v2718_v13  ;;  %2782 = vadd.xlane.f32.xlu0 %v2781_v59  ;;  %v2741_v54 = vmul.f32 1.442695, %v2720_v40  ;;  %v6799_v61 = vpop.eup %5548  ;;  %v2715_v43 = vsub.f32 %v6690_v45, %v6775_v17 }
 0xb27   :  { %v2769_v44 = vsel %vm680_vm14, %v6799_v61, 0.0  ;;  %v2723_v17 = vsub.f32 %v6706_v21, %v6781_v15 }
 0xb28   :  { %5552 = vpow2.f32 %v2737_v12  ;;  %v2731_v13 = vmul.f32 1.442695, %v2715_v43 }
 0xb29   :  { %5554 = vpow2.f32 %v2741_v54  ;;  %v2747_v54 = vmul.f32 1.442695, %v2723_v17 }
 0xb2c   :  { %v6801_v38 = vpop.eup %5550 }
 0xb2d   :  { %v2784_v51 = vsel %vm680_vm14, %v6801_v38, 0.0 }
 0xb2e   :  { %v6805_v23 = vpop.eup %5552  ;;  %2785 = vadd.xlane.f32.xlu1 %v2784_v51 }
 0xb2f   :  { %v2772_v52 = vsel %vm680_vm14, %v6805_v23, 0.0  ;;  %v6811_v47 = vpop.eup %5554 }
 0xb30   :  { %2770 = vadd.xlane.f32.xlu2 %v2769_v44  ;;  %2773 = vadd.xlane.f32.xlu0 %v2772_v52  ;;  %v2778_v48 = vsel %vm680_vm14, %v6811_v47, 0.0 }
 0xb38   :  { %2779 = vadd.xlane.f32.xlu2 %v2778_v48 }
 0xb41   :  { %v2711_v55 = vpop.xlane.xlu1 %2710 }
 0xb42   :  { %v2729_v20 = vsub.f32 %v6746_v42, %v2711_v55 }
 0xb44   :  { %v2759_v0 = vmul.f32 1.442695, %v2729_v20 }
 0xb46   :  { %5556 = vpow2.f32 %v2759_v0 }
 0xb4c   :  { %v6816_v22 = vpop.eup %5556 }
 0xb4d   :  { %v2805_v5 = vsel %vm680_vm14, %v6816_v22, 0.0 }
 0xb4e   :  { %2806 = vadd.xlane.f32.xlu0 %v2805_v5 }
 0xb5a   :  { %v2705_v62 = vpop.xlane.xlu2 %2704 }
 0xb5b   :  { %v2727_v7 = vsub.f32 %v6751_v34, %v2705_v62 }
 0xb5c   :  { %v2699_v8 = vpop.xlane.xlu0 %2698 }
 0xb5d   :  { %v2755_v25 = vmul.f32 1.442695, %v2727_v7  ;;  %v2725_v26 = vsub.f32 %v6756_v6, %v2699_v8 }
 0xb5f   :  { %5558 = vpow2.f32 %v2755_v25  ;;  %v2751_v63 = vmul.f32 1.442695, %v2725_v26 }
 0xb61   :  { %5560 = vpow2.f32 %v2751_v63 }
 0xb62   :  { %v2714_v9 = vpop.xlane.xlu2 %2713  ;;  %3050 = vrot.lane.b32.xlu0 %v6672_v56, %s5710_s0 }
 0xb63   :  { %v2730_v6 = vsub.f32 %v6761_v16, %v2714_v9 }
 0xb64   :  { %v2708_v42 = vpop.xlane.xlu0 %2707  ;;  %v2702_v53 = vpop.xlane.xlu1 %2701 }
 0xb65   :  { %v6824_v18 = vpop.eup %5558  ;;  %v2728_v24 = vsub.f32 %v6764_v35, %v2708_v42  ;;  %v2761_v35 = vmul.f32 1.442695, %v2730_v6  ;;  %v2726_v28 = vsub.f32 %v6769_v39, %v2702_v53  ;;  %v2724_v39 = vsub.f32 %v6711_v14, %v6779_v37 }
 0xb66   :  { %v2799_v60 = vsel %vm680_vm14, %v6824_v18, 0.0 }
 0xb67   :  { %v6829_v34 = vpop.eup %5560  ;;  %v2757_v31 = vmul.f32 1.442695, %v2728_v24  ;;  %2800 = vadd.xlane.f32.xlu2 %v2799_v60  ;;  %v2753_v46 = vmul.f32 1.442695, %v2726_v28  ;;  %v2749_v33 = vmul.f32 1.442695, %v2724_v39 }
 0xb68   :  { %v2793_v29 = vsel %vm680_vm14, %v6829_v34, 0.0 }
 0xb69   :  { %2794 = vadd.xlane.f32.xlu1 %v2793_v29  ;;  %5562 = vpow2.f32 %v2757_v31 }
 0xb6a   :  { %v2893_v30 = vpop.permute.xlu2 %2892  ;;  %3025 = vrot.lane.b32.xlu0 %v6672_v56, %s5713_s1  ;;  %5564 = vpow2.f32 %v2761_v35 }
 0xb6b   :  { %2905 = vmatpush.bf16.msrb.mxu1 %v2893_v30  ;;  %5566 = vpow2.f32 %v2753_v46 }
 0xb6c   :  { %5568 = vpow2.f32 %v2733_v19 }
 0xb6d   :  { %5570 = vpow2.f32 %v2749_v33 }
 0xb6e   :  { %5572 = vpow2.f32 %v2731_v13 }
 0xb6f   :  { %v6836_v57 = vpop.eup %5562 }
 0xb70   :  { %v2802_v16 = vsel %vm680_vm14, %v6836_v57, 0.0  ;;  %v6841_v10 = vpop.eup %5564 }
 0xb71   :  { %2803 = vadd.xlane.f32.xlu2 %v2802_v16  ;;  %v2808_v36 = vsel %vm680_vm14, %v6841_v10, 0.0  ;;  %v6847_v1 = vpop.eup %5566 }
 0xb72   :  { %v2796_v49 = vsel %vm680_vm14, %v6847_v1, 0.0  ;;  %v6857_v41 = vpop.eup %5568 }
 0xb73   :  { %v2766_v59 = vsel %vm680_vm14, %v6857_v41, 0.0  ;;  %v6861_v14 = vpop.eup %5570 }
 0xb74   :  { %v6863_v37 = vpop.eup %5572  ;;  %v2790_v45 = vsel %vm680_vm14, %v6861_v14, 0.0 }
 0xb79   :  { %2809 = vadd.xlane.f32.xlu2 %v2808_v36 }
 0xb81   :  { %2797 = vadd.xlane.f32.xlu2 %v2796_v49 }
 0xb82   :  { %3075 = vrot.lane.b32.xlu1 %v6672_v56, %s5714_s22  ;;  %v2763_v56 = vsel %vm680_vm14, %v6863_v37, 0.0 }
 0xb89   :  { %2767 = vadd.xlane.f32.xlu2 %v2766_v59 }
 0xb91   :  { %2791 = vadd.xlane.f32.xlu2 %v2790_v45 }
 0xb92   :  { %v2777_v12 = vpop.xlane.xlu1 %2776 }
 0xb94   :  { %2764 = vadd.xlane.f32.xlu0 %v2763_v56 }
 0xb99   :  { %v2783_v40 = vpop.xlane.xlu0 %2782 }
 0xb9a   :  { %5574 = vrcp.f32 %v2783_v40 }
 0xb9b   :  { %5576 = vpow2.f32 %v2747_v54 }
 0xba0   :  { %v5575_v44 = vpop.eup %5574 }
 0xba1   :  { %v2786_v51 = vpop.xlane.xlu1 %2785  ;;  %v2833_v55 = vmul.f32 %v5575_v44, %v6793_v32  ;;  %v6872_v20 = vpop.eup %5576 }
 0xba2   :  { %5578 = vrcp.f32 %v2786_v51  ;;  %v2787_v26 = vsel %vm680_vm14, %v6872_v20, 0.0 }
 0xba3   :  { %v2771_v52 = vpop.xlane.xlu2 %2770  ;;  %v2774_v48 = vpop.xlane.xlu0 %2773  ;;  %v2849_v5 = vpack.c.bf16 %v2833_v55, %v2833_v55 }
 0xba4   :  { %5580 = vrcp.f32 %v2771_v52 }
 0xba5   :  { %5582 = vrcp.f32 %v2774_v48  ;;  %v2939_v9 = vunpack.c.l.b16 %v2849_v5 }
 0xba6   :  { %5584 = vrcp.f32 %v2777_v12 }
 0xba8   :  { %v5579_v0 = vpop.eup %5578 }
 0xba9   :  { %v2834_v21 = vmul.f32 %v5579_v0, %v6801_v38 }
 0xbaa   :  { %v5581_v15 = vpop.eup %5580 }
 0xbab   :  { %v5583_v62 = vpop.eup %5582  ;;  %v2850_v7 = vpack.c.bf16 %v2834_v21, %v2834_v21  ;;  %v2829_v8 = vmul.f32 %v5581_v15, %v6799_v61  ;;  %v2780_v25 = vpop.xlane.xlu2 %2779 }
 0xbac   :  { %v5585_v63 = vpop.eup %5584  ;;  %v2830_v32 = vmul.f32 %v5583_v62, %v6805_v23  ;;  %5586 = vrcp.f32 %v2780_v25  ;;  %2788 = vadd.xlane.f32.xlu1 %v2787_v26 }
 0xbad   :  { %v2940_v42 = vunpack.c.l.b16 %v2850_v7  ;;  %v2845_v24 = vpack.c.bf16 %v2829_v8, %v2829_v8  ;;  %v2831_v38 = vmul.f32 %v5585_v63, %v6787_v4 }
 0xbae   :  { %v2846_v60 = vpack.c.bf16 %v2830_v32, %v2830_v32 }
 0xbaf   :  { %v2941_v31 = vpack.c.b16 %v2940_v42, %v2939_v9  ;;  %v2889_v6 = vunpack.c.l.b16 %v2845_v24  ;;  %v2847_v35 = vpack.c.bf16 %v2831_v38, %v2831_v38 }
 0xbb0   :  { %v2890_v29 = vunpack.c.l.b16 %v2846_v60 }
 0xbb1   :  { %4788 = vmatmul.msk.bf16.vlgmr.msra.gmra.mxu3 %vm680_vm14, %v2941_v31  ;;  %v2914_v28 = vunpack.c.l.b16 %v2847_v35 }
 0xbb2   :  { %v5587_v61 = vpop.eup %5586  ;;  %v2891_v30 = vpack.c.b16 %v2890_v29, %v2889_v6 }
 0xbb3   :  { %v2832_v53 = vmul.f32 %v5587_v61, %v6811_v47 }
 0xbb4   :  { %4786 = vmatmul.msk.bf16.vlgmr.msrb.gmra.mxu1 %vm680_vm14, %v2891_v30 }
 0xbb5   :  { %v2848_v23 = vpack.c.bf16 %v2832_v53, %v2832_v53 }
 0xbb7   :  { %v2915_v16 = vunpack.c.l.b16 %v2848_v23 }
 0xbb9   :  { %v2916_v46 = vpack.c.b16 %v2915_v16, %v2914_v28 }
 0xbbb   :  { %4787 = vmatmul.msk.bf16.vlgmr.msra.gmra.mxu2 %vm680_vm14, %v2916_v46 }
 0xbc1   :  { %v2807_v27 = vpop.xlane.xlu0 %2806 }
 0xbd4   :  { %v3051_v4 = vpop.permute.xlu0 %3050 }
 0xbd5   :  { %3063 = vmatpush.bf16.msrb.mxu2 %v3051_v4 }
 0xbda   :  { %v2801_v19 = vpop.xlane.xlu2 %2800 }
 0xbdb   :  { %5588 = vrcp.f32 %v2801_v19 }
 0xbdc   :  { %v3026_v36 = vpop.permute.xlu0 %3025  ;;  %v2795_v33 = vpop.xlane.xlu1 %2794 }
 0xbdd   :  { %3038 = vmatpush.bf16.msra.mxu1 %v3026_v36 }
 0xbe1   :  { %v5589_v49 = vpop.eup %5588 }
 0xbe2   :  { %v2839_v47 = vmul.f32 %v5589_v49, %v6824_v18 }
 0xbe4   :  { %v2804_v39 = vpop.xlane.xlu2 %2803  ;;  %v2855_v13 = vpack.c.bf16 %v2839_v47, %v2839_v47 }
 0xbe5   :  { %5590 = vrcp.f32 %v2804_v39 }
 0xbe6   :  { %5592 = vrcp.f32 %v2807_v27  ;;  %v3047_v40 = vunpack.c.l.b16 %v2855_v13  ;;  %v5263_v13 = vld [vmem:[%s7125_s6 + $0x78] sm:$0xff] }
 0xbeb   :  { %v5591_v43 = vpop.eup %5590 }
 0xbec   :  { %v2840_v59 = vmul.f32 %v5591_v43, %v6836_v57  ;;  %v2810_v45 = vpop.xlane.xlu2 %2809  ;;  %v5593_v56 = vpop.eup %5592 }
 0xbed   :  { %5594 = vrcp.f32 %v2810_v45  ;;  %v2841_v12 = vmul.f32 %v5593_v56, %v6816_v22 }
 0xbee   :  { %v2856_v17 = vpack.c.bf16 %v2840_v59, %v2840_v59  ;;  %5596 = vrcp.f32 %v2795_v33 }
 0xbef   :  { %v2857_v48 = vpack.c.bf16 %v2841_v12, %v2841_v12 }
 0xbf0   :  { %v3048_v54 = vunpack.c.l.b16 %v2856_v17  ;;  %v5262_v17 = vld [vmem:[%s7125_s6 + $0x70] sm:$0xff] }
 0xbf1   :  { %v3072_v5 = vunpack.c.l.b16 %v2857_v48  ;;  %v5260_v48 = vld [vmem:[%s7125_s6 + $0x60] sm:$0xff] }
 0xbf2   :  { %v3049_v51 = vpack.c.b16 %v3048_v54, %v3047_v40  ;;  %v5261_v40 = vld [vmem:[%s7125_s6 + $0x68] sm:$0xff] }
 0xbf3   :  { %v5595_v44 = vpop.eup %5594 }
 0xbf4   :  { %v3076_v52 = vpop.permute.xlu1 %3075  ;;  %v2842_v18 = vmul.f32 %v5595_v44, %v6841_v10  ;;  %v2798_v55 = vpop.xlane.xlu2 %2797  ;;  %4791 = vmatmul.msk.bf16.vlgmr.msrb.gmra.mxu2 %vm680_vm14, %v3049_v51 }
 0xbf5   :  { %3088 = vmatpush.bf16.msrb.mxu3 %v3076_v52  ;;  %v5597_v57 = vpop.eup %5596  ;;  %5598 = vrcp.f32 %v2798_v55  ;;  %v5258_v55 = vld [vmem:[%s7125_s6 + $0x50] sm:$0xff] }
 0xbf6   :  { %v2858_v0 = vpack.c.bf16 %v2842_v18, %v2842_v18  ;;  %v2837_v21 = vmul.f32 %v5597_v57, %v6829_v34  ;;  %v5259_v18 = vld [vmem:[%s7125_s6 + $0x58] sm:$0xff]  ;;  %v5257_v57 = vld [vmem:[%s7125_s6 + $0x48] sm:$0xff] }
 0xbf8   :  { %v3073_v15 = vunpack.c.l.b16 %v2858_v0  ;;  %v2853_v7 = vpack.c.bf16 %v2837_v21, %v2837_v21  ;;  %v5256_v0 = vld [vmem:[%s7125_s6 + $0x40] sm:$0xff] }
 0xbfa   :  { %v3074_v22 = vpack.c.b16 %v3073_v15, %v3072_v5  ;;  %v3022_v26 = vunpack.c.l.b16 %v2853_v7 }
 0xbfb   :  { %v5599_v62 = vpop.eup %5598 }
 0xbfc   :  { %v2838_v8 = vmul.f32 %v5599_v62, %v6847_v1  ;;  %4792 = vmatmul.msk.bf16.vlgmr.msrb.gmra.mxu3 %vm680_vm14, %v3074_v22  ;;  %v2768_v10 = vpop.xlane.xlu2 %2767 }
 0xbfd   :  { %5600 = vrcp.f32 %v2768_v10 }
 0xbfe   :  { %v2854_v25 = vpack.c.bf16 %v2838_v8, %v2838_v8 }
 0xc00   :  { %v3023_v63 = vunpack.c.l.b16 %v2854_v25 }
 0xc02   :  { %v3024_v32 = vpack.c.b16 %v3023_v63, %v3022_v26 }
 0xc03   :  { %v5601_v42 = vpop.eup %5600 }
 0xc04   :  { %4790 = vmatmul.msk.bf16.vlgmr.msra.gmra.mxu1 %vm680_vm14, %v3024_v32  ;;  %v2828_v34 = vmul.f32 %v5601_v42, %v6857_v41  ;;  %v2792_v61 = vpop.xlane.xlu2 %2791 }
 0xc06   :  { %v2844_v60 = vpack.c.bf16 %v2828_v34, %v2828_v34 }
 0xc07   :  { %v2765_v9 = vpop.xlane.xlu0 %2764 }
 0xc08   :  { %5602 = vrcp.f32 %v2765_v9  ;;  %v2862_v31 = vunpack.c.l.b16 %v2844_v60 }
 0xc09   :  { %5604 = vrcp.f32 %v2792_v61 }
 0xc0e   :  { %v5603_v24 = vpop.eup %5602 }
 0xc0f   :  { %v2827_v38 = vmul.f32 %v5603_v24, %v6863_v37  ;;  %v5605_v35 = vpop.eup %5604 }
 0xc10   :  { %v2836_v53 = vmul.f32 %v5605_v35, %v6861_v14 }
 0xc11   :  { %v2843_v1 = vpack.c.bf16 %v2827_v38, %v2827_v38 }
 0xc12   :  { %v2852_v28 = vpack.c.bf16 %v2836_v53, %v2836_v53 }
 0xc13   :  { %v2861_v6 = vunpack.c.l.b16 %v2843_v1 }
 0xc14   :  { %v2995_v46 = vunpack.c.l.b16 %v2852_v28 }
 0xc15   :  { %v2863_v29 = vpack.c.b16 %v2862_v31, %v2861_v6 }
 0xc17   :  { %4785 = vmatmul.msk.bf16.vlgmr.msra.gmra.mxu0 %vm680_vm14, %v2863_v29 }
 0xc18   :  { %3197 = vmatpush.bf16.msra.mxu0 %v5263_v13 }
 0xc1c   :  { %3198 = vmatpush.bf16.msra.mxu0 %v5262_v17 }
 0xc1f   :  { %v2789_v30 = vpop.xlane.xlu1 %2788 }
 0xc20   :  { %5606 = vrcp.f32 %v2789_v30  ;;  %3199 = vmatpush.bf16.msra.mxu0 %v5261_v40 }
 0xc24   :  { %3200 = vmatpush.bf16.msra.mxu0 %v5260_v48 }
 0xc26   :  { %v5607_v23 = vpop.eup %5606 }
 0xc27   :  { %v2835_v41 = vmul.f32 %v5607_v23, %v6872_v20 }
 0xc28   :  { %3201 = vmatpush.bf16.msra.mxu0 %v5259_v18 }
 0xc29   :  { %v2851_v16 = vpack.c.bf16 %v2835_v41, %v2835_v41 }
 0xc2b   :  { %v2994_v37 = vunpack.c.l.b16 %v2851_v16 }
 0xc2c   :  { %3202 = vmatpush.bf16.msra.mxu0 %v5258_v55 }
 0xc2d   :  { %v2996_v27 = vpack.c.b16 %v2995_v46, %v2994_v37 }
 0xc2f   :  { %4789 = vmatmul.msk.bf16.vlgmr.msrb.gmra.mxu0 %vm680_vm14, %v2996_v27 }
 0xc30   :  { %3203 = vmatpush.bf16.msra.mxu0 %v5257_v57 }
 0xc31   :  { %v2907_v4 = vpop.f32.mrf.mxu1 }
 0xc34   :  { %v2957_v36 = vpop.f32.mrf.mxu3  ;;  %3204 = vmatpush.bf16.msra.mxu0 %v5256_v0 }
 0xc39   :  { %v2909_v19 = vpop.f32.mrf.mxu1 }
 0xc3a   :  { %v5375_v39 = vpack.i.bf16 %v2909_v19, %v2907_v4 }
 0xc3c   :  { %5376 = vrot.lane.b32.xlu2 %v5375_v39, %s5714_s22  ;;  %v2959_v47 = vpop.f32.mrf.mxu3  ;;  %v5413_v39 = vld [vmem:[%s7126_s7 + $0x1] ss:$0 sm:$0xff] }
 0xc3d   :  { %v5385_v43 = vpack.i.bf16 %v2959_v47, %v2957_v36 }
 0xc3e   :  { %v2932_v49 = vpop.f32.mrf.mxu2 }
 0xc44   :  { %5386 = vrot.lane.b32.xlu2 %v5385_v43, %s5713_s1 }
 0xc46   :  { %v2934_v14 = vpop.f32.mrf.mxu2 }
 0xc47   :  { %v5380_v33 = vpack.i.bf16 %v2934_v14, %v2932_v49 }
 0xc49   :  { %5381 = vrot.lane.b32.xlu0 %v5380_v33, %s5710_s0 }
 0xc77   :  { %v3065_v20 = vpop.f32.mrf.mxu2 }
 0xc7f   :  { %v3067_v59 = vpop.f32.mrf.mxu2  ;;  %v3090_v45 = vpop.f32.mrf.mxu3 }
 0xc80   :  { %v5395_v56 = vpack.i.bf16 %v3067_v59, %v3065_v20 }
 0xc81   :  { %v3040_v12 = vpop.f32.mrf.mxu1 }
 0xc82   :  { %5396 = vrot.lane.b32.xlu2 %v5395_v56, %s5710_s0 }
 0xc87   :  { %v3092_v54 = vpop.f32.mrf.mxu3 }
 0xc88   :  { %v5400_v51 = vpack.i.bf16 %v3092_v54, %v3090_v45 }
 0xc89   :  { %v3042_v44 = vpop.f32.mrf.mxu1 }
 0xc8a   :  { %v5390_v52 = vpack.i.bf16 %v3042_v44, %v3040_v12  ;;  %5401 = vrot.lane.b32.xlu2 %v5400_v51, %s5713_s1 }
 0xc8c   :  { %5391 = vrot.lane.b32.xlu1 %v5390_v52, %s5714_s22 }
 0xc94   :  { %v2882_v5 = vpop.f32.mrf.mxu0 }
 0xc96   :  { %v5377_v21 = vpop.permute.xlu2 %5376 }
 0xc97   :  { %v5378_v15 = vunpack.i.l.bf16 %v5377_v21  ;;  %v5379_v7 = vunpack.i.h.bf16 %v5377_v21 }
 0xc99   :  { %v2986_v26 = vsel %vm455_vm13, %v2882_v5, %v5378_v15  ;;  %v4959_v15 = vld [vmem:[#allocation3 + $0x1e0] sm:$0xf] }
 0xc9c   :  { %v2884_v22 = vpop.f32.mrf.mxu0 }
 0xc9d   :  { %v2987_v63 = vsel %vm455_vm13, %v2884_v22, %v5379_v7  ;;  %v5294_v22 = vld [vmem:[#allocation3 + $0x1ec] sm:$0xf0] }
 0xc9e   :  { %v5387_v62 = vpop.permute.xlu2 %5386  ;;  %v4960_v7 = vor.u32 %v5294_v22, %v4959_v15  ;;  %v4879_v22 = vld [vmem:[#allocation3 + $0x140] sm:$0xf] }
 0xc9f   :  { %v5389_v32 = vunpack.i.h.bf16 %v5387_v62  ;;  %v5388_v9 = vunpack.i.l.bf16 %v5387_v62  ;;  %v5292_v62 = vld [vmem:[#allocation3 + $0x1e4] sm:$0xf] }
 0xca0   :  { %3524 = vmatpush.bf16.msrb.mxu1 %v4960_v7  ;;  %v5272_v7 = vld [vmem:[#allocation3 + $0x144] sm:$0xf] }
 0xcac   :  { %v3015_v31 = vpop.f32.mrf.mxu0 }
 0xcb4   :  { %v3017_v35 = vpop.f32.mrf.mxu0 }
 0xcbb   :  { %v5382_v8 = vpop.permute.xlu0 %5381 }
 0xcbc   :  { %v5384_v25 = vunpack.i.h.bf16 %v5382_v8  ;;  %v5383_v10 = vunpack.i.l.bf16 %v5382_v8  ;;  %v4961_v8 = vld [vmem:[#allocation3 + $0x1f0] sm:$0xf0] }
 0xcbe   :  { %v2989_v42 = vsel %vm1002_vm15, %v2987_v63, %v5384_v25  ;;  %v2988_v34 = vsel %vm1002_vm15, %v2986_v26, %v5383_v10  ;;  %v4967_v25 = vld [vmem:[#allocation3 + $0x1e8] sm:$0xf]  ;;  %v5295_v10 = vld [vmem:[#allocation3 + $0x1f4] sm:$0xf0]  ;;  %v4964_v26 = vor.u32 %v5292_v62, %v4961_v8  ;;  %v5274_v62 = vld [vmem:[#allocation3 + $0x14c] sm:$0xf0] }
 0xcbf   :  { %v2991_v24 = vsel %vm1005_vm0, %v2989_v42, %v5389_v32  ;;  %v2990_v60 = vsel %vm1005_vm0, %v2988_v34, %v5388_v9  ;;  %v4968_v63 = vor.u32 %v5295_v10, %v4967_v25  ;;  %v5293_v32 = vld [vmem:[#allocation3 + $0x1ec] sm:$0xf]  ;;  %v4969_v9 = vld [vmem:[#allocation3 + $0x1f8] sm:$0xf0]  ;;  %v4943_v34 = vld [vmem:[#allocation3 + $0x1c0] sm:$0xf]  ;;  %v4880_v8 = vor.u32 %v5274_v62, %v4879_v22 }
 0xcc0   :  { %v3125_v38 = vpack.c.bf16 %v2991_v24, %v2990_v60  ;;  %v4972_v42 = vor.u32 %v5293_v32, %v4969_v9  ;;  %3543 = vmatpush.bf16.msra.mxu2 %v4964_v26  ;;  %v5290_v24 = vld [vmem:[#allocation3 + $0x1cc] sm:$0xf0]  ;;  %v5288_v60 = vld [vmem:[#allocation3 + $0x1c4] sm:$0xf]  ;;  %v4881_v25 = vld [vmem:[#allocation3 + $0x150] sm:$0xf0] }
 0xcc1   :  { %3562 = vmatpush.bf16.msra.mxu3 %v4968_v63  ;;  %v4887_v10 = vld [vmem:[#allocation3 + $0x148] sm:$0xf]  ;;  %v5275_v26 = vld [vmem:[#allocation3 + $0x154] sm:$0xf0]  ;;  %v4884_v63 = vor.u32 %v5272_v7, %v4881_v25  ;;  %v5273_v9 = vld [vmem:[#allocation3 + $0x14c] sm:$0xf] }
 0xcc2   :  { %3205 = vmatmul.bf16.vlgmr.msra.gmra.mxu0 %v3125_v38  ;;  %v4944_v38 = vor.u32 %v5290_v24, %v4943_v34  ;;  %v4888_v32 = vor.u32 %v5275_v26, %v4887_v10  ;;  %v4863_v24 = vld [vmem:[#allocation3 + $0x120] sm:$0xf] }
 0xcc3   :  { %3581 = vmatpush.bf16.msrb.mxu0 %v4972_v42  ;;  %v4889_v42 = vld [vmem:[#allocation3 + $0x158] sm:$0xf0] }
 0xcc4   :  { %3525 = vmatpush.bf16.msrb.mxu1 %v4944_v38  ;;  %v4892_v34 = vor.u32 %v5273_v9, %v4889_v42  ;;  %v5268_v38 = vld [vmem:[#allocation3 + $0x124] sm:$0xf] }
 0xcdc   :  { %v5397_v1 = vpop.permute.xlu2 %5396 }
 0xcdd   :  { %v5399_v53 = vunpack.i.h.bf16 %v5397_v1  ;;  %v5398_v23 = vunpack.i.l.bf16 %v5397_v1  ;;  %v4945_v1 = vld [vmem:[#allocation3 + $0x1d0] sm:$0xf0] }
 0xce4   :  { %v5402_v6 = vpop.permute.xlu2 %5401 }
 0xce5   :  { %v5404_v28 = vunpack.i.h.bf16 %v5402_v6  ;;  %v5403_v41 = vunpack.i.l.bf16 %v5402_v6  ;;  %v5291_v6 = vld [vmem:[#allocation3 + $0x1d4] sm:$0xf0] }
 0xcfe   :  { %v5392_v29 = vpop.permute.xlu1 %5391 }
 0xcff   :  { %v5394_v61 = vunpack.i.h.bf16 %v5392_v29  ;;  %v5393_v30 = vunpack.i.l.bf16 %v5392_v29  ;;  %v4948_v29 = vor.u32 %v5288_v60, %v4945_v1  ;;  %v5270_v60 = vld [vmem:[#allocation3 + $0x12c] sm:$0xf0] }
 0xd00   :  { %v4864_v1 = vor.u32 %v5270_v60, %v4863_v24 }
 0xd01   :  { %v3119_v16 = vsel %vm455_vm13, %v3015_v31, %v5393_v30  ;;  %v3120_v46 = vsel %vm455_vm13, %v3017_v35, %v5394_v61  ;;  %v4951_v31 = vld [vmem:[#allocation3 + $0x1c8] sm:$0xf]  ;;  %v5289_v30 = vld [vmem:[#allocation3 + $0x1cc] sm:$0xf]  ;;  %v4953_v35 = vld [vmem:[#allocation3 + $0x1d8] sm:$0xf0]  ;;  %3544 = vmatpush.bf16.msra.mxu2 %v4948_v29 }
 0xd02   :  { %v3121_v37 = vsel %vm1002_vm15, %v3119_v16, %v5398_v23  ;;  %v3122_v27 = vsel %vm1002_vm15, %v3120_v46, %v5399_v53  ;;  %v4952_v61 = vor.u32 %v5291_v6, %v4951_v31  ;;  %v4956_v53 = vor.u32 %v5289_v30, %v4953_v35  ;;  %v4927_v23 = vld [vmem:[#allocation3 + $0x1a0] sm:$0xf]  ;;  %v4929_v46 = vld [vmem:[#allocation3 + $0x1b0] sm:$0xf0]  ;;  %v4871_v6 = vld [vmem:[#allocation3 + $0x128] sm:$0xf] }
 0xd03   :  { %v3123_v4 = vsel %vm1005_vm0, %v3121_v37, %v5403_v41  ;;  %v3124_v36 = vsel %vm1005_vm0, %v3122_v27, %v5404_v28  ;;  %v5286_v28 = vld [vmem:[#allocation3 + $0x1ac] sm:$0xf0]  ;;  %v5284_v41 = vld [vmem:[#allocation3 + $0x1a4] sm:$0xf]  ;;  %v4935_v37 = vld [vmem:[#allocation3 + $0x1a8] sm:$0xf] }
 0xd04   :  { %v3126_v19 = vpack.c.bf16 %v3124_v36, %v3123_v4  ;;  %3563 = vmatpush.bf16.msra.mxu3 %v4952_v61  ;;  %3582 = vmatpush.bf16.msrb.mxu0 %v4956_v53  ;;  %v4928_v16 = vor.u32 %v5286_v28, %v4927_v23  ;;  %v5287_v27 = vld [vmem:[#allocation3 + $0x1b4] sm:$0xf0]  ;;  %v4932_v4 = vor.u32 %v5284_v41, %v4929_v46  ;;  %v4865_v31 = vld [vmem:[#allocation3 + $0x130] sm:$0xf0]  ;;  %v5269_v53 = vld [vmem:[#allocation3 + $0x12c] sm:$0xf] }
 0xd05   :  { %v4936_v36 = vor.u32 %v5287_v27, %v4935_v37  ;;  %v5271_v29 = vld [vmem:[#allocation3 + $0x134] sm:$0xf0]  ;;  %v4868_v30 = vor.u32 %v5268_v38, %v4865_v31  ;;  %v4873_v23 = vld [vmem:[#allocation3 + $0x138] sm:$0xf0]  ;;  %v5266_v46 = vld [vmem:[#allocation3 + $0x10c] sm:$0xf0] }
 0xd06   :  { %3210 = vmatmul.bf16.gmra.mxu0 %v3126_v19  ;;  %v5285_v19 = vld [vmem:[#allocation3 + $0x1ac] sm:$0xf]  ;;  %3526 = vmatpush.bf16.msrb.mxu1 %v4928_v16  ;;  %v4872_v35 = vor.u32 %v5271_v29, %v4871_v6  ;;  %v4876_v41 = vor.u32 %v5269_v53, %v4873_v23  ;;  %v4847_v16 = vld [vmem:[#allocation3 + $0x100] sm:$0xf]  ;;  %v5264_v37 = vld [vmem:[#allocation3 + $0x104] sm:$0xf] }
 0xd07   :  { %3545 = vmatpush.bf16.msra.mxu2 %v4932_v4  ;;  %v4848_v4 = vor.u32 %v5266_v46, %v4847_v16 }
 0xd08   :  { %3564 = vmatpush.bf16.msra.mxu3 %v4936_v36  ;;  %v4849_v36 = vld [vmem:[#allocation3 + $0x110] sm:$0xf0] }
 0xd3f   :  { %v3206_v49 = vpop.f32.mrf.mxu0 }
 0xd40   :  { %v3207_v47 = vadd.f32 %v5413_v39, %v3206_v49 }
 0xd42   :  { %v3216_v43 = vadd.f32 %v3207_v47, %v6638_v58  ;;  %v4911_v47 = vld [vmem:[#allocation3 + $0x180] sm:$0xf] }
 0xd44   :  { %3224 = vadd.xlane.f32.xlu0 %v3216_v43 }
 0xd47   :  { %v3208_v14 = vpop.f32.mrf.mxu0 }
 0xd48   :  { %v3209_v33 = vadd.f32 %v5413_v39, %v3208_v14  ;;  %v5280_v14 = vld [vmem:[#allocation3 + $0x184] sm:$0xf] }
 0xd4a   :  { %v3217_v20 = vadd.f32 %v3209_v33, %v6640_v2 }
 0xd4c   :  { %3226 = vadd.xlane.f32.xlu2 %v3217_v20 }
 0xd83   :  { %v3211_v13 = vpop.f32.mrf.mxu0 }
 0xd84   :  { %v3212_v59 = vadd.f32 %v5413_v39, %v3211_v13  ;;  %v4919_v13 = vld [vmem:[#allocation3 + $0x188] sm:$0xf] }
 0xd86   :  { %v3218_v45 = vadd.f32 %v3212_v59, %v6647_v50  ;;  %v5283_v59 = vld [vmem:[#allocation3 + $0x194] sm:$0xf0] }
 0xd88   :  { %3228 = vadd.xlane.f32.xlu1 %v3218_v45 }
 0xd8b   :  { %v3213_v56 = vpop.f32.mrf.mxu0 }
 0xd8c   :  { %v3214_v17 = vadd.f32 %v5413_v39, %v3213_v56  ;;  %v4937_v39 = vld [vmem:[#allocation3 + $0x1b8] sm:$0xf0]  ;;  %v4920_v56 = vor.u32 %v5283_v59, %v4919_v13 }
 0xd8d   :  { %v4940_v49 = vor.u32 %v5285_v19, %v4937_v39  ;;  %v4855_v19 = vld [vmem:[#allocation3 + $0x108] sm:$0xf]  ;;  %v4852_v39 = vor.u32 %v5264_v37, %v4849_v36  ;;  %v5303_v36 = vld [vmem:[#allocation5 + $0x138] sm:$0xff] }
 0xd8e   :  { %v3219_v12 = vadd.f32 %v3214_v17, %v6650_v3  ;;  %v5281_v17 = vld [vmem:[#allocation3 + $0x18c] sm:$0xf]  ;;  %3565 = vmatpush.bf16.msra.mxu3 %v4920_v56 }
 0xd8f   :  { %3583 = vmatpush.bf16.msrb.mxu0 %v4940_v49  ;;  %v5267_v49 = vld [vmem:[#allocation3 + $0x114] sm:$0xf0] }
 0xd90   :  { %3230 = vadd.xlane.f32.xlu0 %v3219_v12 }
 0xdb7   :  { %v3225_v40 = vpop.xlane.xlu0 %3224 }
 0xdb8   :  { %v3232_v54 = vmul.f32 %v3225_v40, %v5843_v11 }
 0xdba   :  { %v6949_v58 = vsub.f32 %v3216_v43, %v3232_v54  ;;  %v5282_v43 = vld [vmem:[#allocation3 + $0x18c] sm:$0xf0]  ;;  %v4895_v54 = vld [vmem:[#allocation3 + $0x160] sm:$0xf] }
 0xdbb   :  { %v4912_v33 = vor.u32 %v5282_v43, %v4911_v47  ;;  %v5265_v47 = vld [vmem:[#allocation3 + $0x10c] sm:$0xf]  ;;  %v4857_v43 = vld [vmem:[#allocation3 + $0x118] sm:$0xf0] }
 0xdbc   :  { %v3240_v51 = vmul.f32 %v6949_v58, %v6949_v58 }
 0xdbd   :  { %3527 = vmatpush.bf16.msrb.mxu1 %v4912_v33  ;;  %v4860_v33 = vor.u32 %v5265_v47, %v4857_v43  ;;  %v5301_v47 = vld [vmem:[#allocation5 + $0x128] sm:$0xff] }
 0xdbe   :  { %3244 = vadd.xlane.f32.xlu2 %v3240_v51  ;;  %v5278_v51 = vld [vmem:[#allocation3 + $0x16c] sm:$0xf0]  ;;  %v5325_v43 = vld [vmem:[#allocation5 + $0x1e8] sm:$0xff] }
 0xdbf   :  { %v3227_v2 = vpop.xlane.xlu2 %3226 }
 0xdc0   :  { %v3233_v44 = vmul.f32 %v3227_v2, %v5843_v11  ;;  %v5276_v2 = vld [vmem:[#allocation3 + $0x164] sm:$0xf] }
 0xdc2   :  { %v6954_v52 = vsub.f32 %v3217_v20, %v3233_v44  ;;  %v4913_v20 = vld [vmem:[#allocation3 + $0x190] sm:$0xf0]  ;;  %v4896_v44 = vor.u32 %v5278_v51, %v4895_v54 }
 0xdc4   :  { %v3241_v50 = vmul.f32 %v6954_v52, %v6954_v52  ;;  %3528 = vmatpush.bf16.msrb.mxu1 %v4896_v44 }
 0xdc6   :  { %3246 = vadd.xlane.f32.xlu0 %v3241_v50  ;;  %v4897_v50 = vld [vmem:[#allocation3 + $0x170] sm:$0xf0] }
 0xdc8   :  { %3529 = vmatpush.bf16.msrb.mxu1 %v4880_v8 }
 0xdcc   :  { %3530 = vmatpush.bf16.msrb.mxu1 %v4864_v1 }
 0xdd0   :  { %3531 = vmatpush.bf16.msrb.mxu1 %v4848_v4 }
 0xdd4   :  { %4014 = vmatpush.bf16.msra.mxu1 %v5303_v36 }
 0xdfb   :  { %v3229_v3 = vpop.xlane.xlu1 %3228 }
 0xdfc   :  { %v3234_v48 = vmul.f32 %v3229_v3, %v5843_v11  ;;  %v4903_v3 = vld [vmem:[#allocation3 + $0x168] sm:$0xf] }
 0xdfe   :  { %v6959_v18 = vsub.f32 %v3218_v45, %v3234_v48  ;;  %v4916_v45 = vor.u32 %v5280_v14, %v4913_v20  ;;  %v5279_v48 = vld [vmem:[#allocation3 + $0x174] sm:$0xf0]  ;;  %v4856_v14 = vor.u32 %v5267_v49, %v4855_v19 }
 0xdff   :  { %v5327_v19 = vld [vmem:[#allocation5 + $0x1f8] sm:$0xff] }
 0xe00   :  { %v3242_v55 = vmul.f32 %v6959_v18, %v6959_v18  ;;  %3546 = vmatpush.bf16.msra.mxu2 %v4916_v45  ;;  %v5319_v49 = vld [vmem:[#allocation5 + $0x1b8] sm:$0xff] }
 0xe02   :  { %3248 = vadd.xlane.f32.xlu1 %v3242_v55  ;;  %v4900_v55 = vor.u32 %v5276_v2, %v4897_v50 }
 0xe03   :  { %v3231_v57 = vpop.xlane.xlu0 %3230 }
 0xe04   :  { %v3235_v0 = vmul.f32 %v3231_v57, %v5843_v11  ;;  %v4904_v57 = vor.u32 %v5279_v48, %v4903_v3  ;;  %3547 = vmatpush.bf16.msra.mxu2 %v4900_v55  ;;  %v5414_v55 = vld [vmem:[%s7127_s8 + $0x1] ss:$0 sm:$0xff] }
 0xe06   :  { %v6964_v5 = vsub.f32 %v3219_v12, %v3235_v0  ;;  %v4921_v12 = vld [vmem:[#allocation3 + $0x198] sm:$0xf0]  ;;  %v5277_v0 = vld [vmem:[#allocation3 + $0x16c] sm:$0xf]  ;;  %3566 = vmatpush.bf16.msra.mxu3 %v4904_v57 }
 0xe07   :  { %v4924_v40 = vor.u32 %v5281_v17, %v4921_v12 }
 0xe08   :  { %v3243_v21 = vmul.f32 %v6964_v5, %v6964_v5  ;;  %3548 = vmatpush.bf16.msra.mxu2 %v4884_v63 }
 0xe09   :  { %3584 = vmatpush.bf16.msrb.mxu0 %v4924_v40 }
 0xe0a   :  { %3250 = vadd.xlane.f32.xlu2 %v3243_v21  ;;  %v4905_v21 = vld [vmem:[#allocation3 + $0x178] sm:$0xf0]  ;;  %3567 = vmatpush.bf16.msra.mxu3 %v4888_v32 }
 0xe0b   :  { %v4908_v15 = vor.u32 %v5277_v0, %v4905_v21 }
 0xe0c   :  { %3549 = vmatpush.bf16.msra.mxu2 %v4868_v30 }
 0xe0d   :  { %3585 = vmatpush.bf16.msrb.mxu0 %v4908_v15  ;;  %v5415_v15 = vld [vmem:[%s7128_s9 + $0x1] ss:$0 sm:$0xff] }
 0xe0e   :  { %3568 = vmatpush.bf16.msra.mxu3 %v4872_v35 }
 0xe10   :  { %3550 = vmatpush.bf16.msra.mxu2 %v4852_v39  ;;  %v5326_v39 = vld [vmem:[#allocation5 + $0x1f0] sm:$0xff] }
 0xe11   :  { %3586 = vmatpush.bf16.msrb.mxu0 %v4892_v34 }
 0xe12   :  { %3569 = vmatpush.bf16.msra.mxu3 %v4856_v14  ;;  %v5310_v14 = vld [vmem:[#allocation5 + $0x170] sm:$0xff] }
 0xe15   :  { %3587 = vmatpush.bf16.msrb.mxu0 %v4876_v41 }
 0xe16   :  { %4048 = vmatpush.bf16.msrb.mxu3 %v5319_v49 }
 0xe19   :  { %3588 = vmatpush.bf16.msrb.mxu0 %v4860_v33  ;;  %v5318_v33 = vld [vmem:[#allocation5 + $0x1b0] sm:$0xff] }
 0xe1a   :  { %4049 = vmatpush.bf16.msrb.mxu3 %v5318_v33 }
 0xe1d   :  { %4065 = vmatpush.bf16.msra.mxu0 %v5327_v19 }
 0xe21   :  { %4066 = vmatpush.bf16.msra.mxu0 %v5326_v39 }
 0xe25   :  { %4067 = vmatpush.bf16.msra.mxu0 %v5325_v43 }
 0xe31   :  { %v3245_v61 = vpop.xlane.xlu2 %3244 }
 0xe32   :  { %v3252_v28 = vmul.f32 %v3245_v61, %v5843_v11 }
 0xe34   :  { %v3256_v27 = vadd.f32 1e-12, %v3252_v28 }
 0xe36   :  { %5608 = vrsqrt.f32 %v3256_v27  ;;  %vm3266_vm14 = vweird.f32 %v3256_v27 }
 0xe39   :  { %v3247_v20 = vpop.xlane.xlu0 %3246 }
 0xe3a   :  { %v3253_v13 = vmul.f32 %v3247_v20, %v5843_v11  ;;  %v5300_v20 = vld [vmem:[#allocation5 + $0x120] sm:$0xff] }
 0xe3c   :  { %v5609_v59 = vpop.eup %5608  ;;  %v3257_v45 = vadd.f32 1e-12, %v3253_v13  ;;  %v5324_v13 = vld [vmem:[#allocation5 + $0x1e0] sm:$0xff] }
 0xe3d   :  { %v3261_v56 = vmul.f32 %v5609_v59, %v3256_v27  ;;  %vm3267_vm13 = vweird.f32 %v5609_v59  ;;  %4068 = vmatpush.bf16.msra.mxu0 %v5324_v13 }
 0xe3e   :  { %5610 = vrsqrt.f32 %v3257_v45  ;;  %vm3268_vm15 = vmor %vm3266_vm14, %vm3267_vm13  ;;  %vm3276_vm1 = vweird.f32 %v3257_v45 }
 0xe3f   :  { %v3262_v17 = vmul.f32 %v5609_v59, %v3261_v56  ;;  %v5299_v56 = vld [vmem:[#allocation5 + $0x118] sm:$0xff] }
 0xe41   :  { %v3263_v12 = vmul.f32 0.5, %v3262_v17  ;;  %v5323_v17 = vld [vmem:[#allocation5 + $0x1d8] sm:$0xff] }
 0xe42   :  { %4069 = vmatpush.bf16.msra.mxu0 %v5323_v17 }
 0xe43   :  { %v3264_v40 = vsub.f32 1.5, %v3263_v12  ;;  %v5308_v12 = vld [vmem:[#allocation5 + $0x160] sm:$0xff] }
 0xe44   :  { %v5611_v54 = vpop.eup %5610 }
 0xe45   :  { %v3265_v51 = vmul.f32 %v5609_v59, %v3264_v40  ;;  %v3271_v2 = vmul.f32 %v5611_v54, %v3257_v45  ;;  %vm3277_vm0 = vweird.f32 %v5611_v54  ;;  %v5317_v45 = vld [vmem:[#allocation5 + $0x1a8] sm:$0xff]  ;;  %v5316_v40 = vld [vmem:[#allocation5 + $0x1a0] sm:$0xff] }
 0xe46   :  { %vm3278_vm2 = vmor %vm3276_vm1, %vm3277_vm0  ;;  %4050 = vmatpush.bf16.msrb.mxu3 %v5317_v45  ;;  %vm4231_vm0 = vcmask 1041408   ;;  %vm4240_vm1 = vcmask 1024  }
 0xe47   :  { %v3272_v44 = vmul.f32 %v5611_v54, %v3271_v2  ;;  %v3269_v50 = vsel %vm3268_vm15, %v5609_v59, %v3265_v51  ;;  %v5309_v59 = vld [vmem:[#allocation5 + $0x168] sm:$0xff]  ;;  %v5322_v51 = vld [vmem:[#allocation5 + $0x1d0] sm:$0xff]  ;;  %v5307_v2 = vld [vmem:[#allocation5 + $0x158] sm:$0xff]  ;;  %vm4141_vm15 = vcmask 1040384  }
 0xe48   :  { %v3300_v57 = vmul.f32 %v3269_v50, %v6949_v58  ;;  %4070 = vmatpush.bf16.msra.mxu0 %v5322_v51  ;;  %v4844_v50 = vld [vmem:[%s7130_s11 + $0x4] sm:$0xf] }
 0xe49   :  { %v3273_v3 = vmul.f32 0.5, %v3272_v44  ;;  %v5315_v44 = vld [vmem:[#allocation5 + $0x198] sm:$0xff] }
 0xe4a   :  { %v3307_v22 = vmul.f32 %v5414_v55, %v3300_v57  ;;  %4051 = vmatpush.bf16.msrb.mxu3 %v5316_v40  ;;  %v5306_v57 = vld [vmem:[#allocation5 + $0x150] sm:$0xff] }
 0xe4b   :  { %v3274_v48 = vsub.f32 1.5, %v3273_v3  ;;  %v5297_v3 = vld [vmem:[#allocation5 + $0x108] sm:$0xff] }
 0xe4c   :  { %v6978_v8 = vadd.f32 %v5415_v15, %v3307_v22  ;;  %v5320_v22 = vld [vmem:[#allocation5 + $0x1c0] sm:$0xff] }
 0xe4d   :  { %v3275_v0 = vmul.f32 %v5611_v54, %v3274_v48  ;;  %v5321_v48 = vld [vmem:[#allocation5 + $0x1c8] sm:$0xff] }
 0xe4e   :  { %4052 = vmatpush.bf16.msrb.mxu3 %v5315_v44  ;;  %4071 = vmatpush.bf16.msra.mxu0 %v5321_v48 }
 0xe4f   :  { %v3279_v21 = vsel %vm3278_vm2, %v5611_v54, %v3275_v0  ;;  %v5298_v54 = vld [vmem:[#allocation5 + $0x110] sm:$0xff] }
 0xe50   :  { %v3301_v62 = vmul.f32 %v3279_v21, %v6954_v52  ;;  %v5314_v0 = vld [vmem:[#allocation5 + $0x190] sm:$0xff]  ;;  %v6993_v21 = vperm.slane %v4844_v50, 3 }
 0xe52   :  { %v3308_v7 = vmul.f32 %v5414_v55, %v3301_v62  ;;  %4053 = vmatpush.bf16.msrb.mxu3 %v5314_v0  ;;  %4072 = vmatpush.bf16.msra.mxu0 %v5320_v22 }
 0xe54   :  { %v3315_v25 = vadd.f32 %v5415_v15, %v3308_v7 }
 0xe56   :  { %v3318_v10 = vpack.c.bf16 %v3315_v25, %v6978_v8 }
 0xe58   :  { %3532 = vmatmul.bf16.vlgmr.msrb.gmra.mxu1 %v3318_v10  ;;  %3551 = vmatmul.bf16.vlgmr.msra.gmra.mxu2 %v3318_v10 }
 0xe59   :  { %3570 = vmatmul.bf16.vlgmr.msra.gmra.mxu3 %v3318_v10  ;;  %3589 = vmatmul.bf16.vlgmr.msrb.gmra.mxu0 %v3318_v10  ;;  %v5305_v10 = vld [vmem:[#allocation5 + $0x148] sm:$0xff] }
 0xe75   :  { %v3249_v58 = vpop.xlane.xlu1 %3248 }
 0xe76   :  { %v3254_v26 = vmul.f32 %v3249_v58, %v5843_v11  ;;  %v5313_v58 = vld [vmem:[#allocation5 + $0x188] sm:$0xff] }
 0xe77   :  { %4054 = vmatpush.bf16.msrb.mxu3 %v5313_v58 }
 0xe78   :  { %v3258_v63 = vadd.f32 1e-12, %v3254_v26 }
 0xe7a   :  { %5612 = vrsqrt.f32 %v3258_v63  ;;  %vm3286_vm4 = vweird.f32 %v3258_v63 }
 0xe7d   :  { %v3251_v32 = vpop.xlane.xlu2 %3250 }
 0xe7e   :  { %v3255_v9 = vmul.f32 %v3251_v32, %v5843_v11  ;;  %v7002_v32 = vperm.slane %v4844_v50, 1 }
 0xe80   :  { %v5613_v42 = vpop.eup %5612  ;;  %v3259_v52 = vadd.f32 1e-12, %v3255_v9  ;;  %v5304_v9 = vld [vmem:[#allocation5 + $0x140] sm:$0xff] }
 0xe81   :  { %v3281_v34 = vmul.f32 %v5613_v42, %v3258_v63  ;;  %vm3287_vm3 = vweird.f32 %v5613_v42 }
 0xe82   :  { %5614 = vrsqrt.f32 %v3259_v52  ;;  %vm3288_vm5 = vmor %vm3286_vm4, %vm3287_vm3  ;;  %vm3296_vm7 = vweird.f32 %v3259_v52 }
 0xe83   :  { %v3282_v24 = vmul.f32 %v5613_v42, %v3281_v34  ;;  %v7005_v34 = vperm.slane %v4844_v50, 2 }
 0xe85   :  { %v3283_v60 = vmul.f32 0.5, %v3282_v24 }
 0xe87   :  { %v3284_v38 = vsub.f32 1.5, %v3283_v60 }
 0xe88   :  { %v5615_v1 = vpop.eup %5614 }
 0xe89   :  { %v3285_v31 = vmul.f32 %v5613_v42, %v3284_v38  ;;  %v3291_v6 = vmul.f32 %v5615_v1, %v3259_v52  ;;  %vm3297_vm6 = vweird.f32 %v5615_v1 }
 0xe8a   :  { %vm3298_vm8 = vmor %vm3296_vm7, %vm3297_vm6 }
 0xe8b   :  { %v3292_v29 = vmul.f32 %v5615_v1, %v3291_v6  ;;  %v3289_v61 = vsel %vm3288_vm5, %v5613_v42, %v3285_v31  ;;  %v5312_v42 = vld [vmem:[#allocation5 + $0x180] sm:$0xff] }
 0xe8c   :  { %v3302_v53 = vmul.f32 %v3289_v61, %v6959_v18  ;;  %v5302_v18 = vld [vmem:[#allocation5 + $0x130] sm:$0xff]  ;;  %4055 = vmatpush.bf16.msrb.mxu3 %v5312_v42 }
 0xe8d   :  { %v3293_v30 = vmul.f32 0.5, %v3292_v29  ;;  %4015 = vmatpush.bf16.msra.mxu1 %v5302_v18 }
 0xe8e   :  { %v3309_v16 = vmul.f32 %v5414_v55, %v3302_v53 }
 0xe8f   :  { %v3294_v35 = vsub.f32 1.5, %v3293_v30 }
 0xe90   :  { %v6985_v37 = vadd.f32 %v5415_v15, %v3309_v16 }
 0xe91   :  { %v3295_v23 = vmul.f32 %v5615_v1, %v3294_v35  ;;  %4016 = vmatpush.bf16.msra.mxu1 %v5301_v47 }
 0xe93   :  { %v3299_v28 = vsel %vm3298_vm8, %v5615_v1, %v3295_v23 }
 0xe94   :  { %v3303_v41 = vmul.f32 %v3299_v28, %v6964_v5  ;;  %v5311_v5 = vld [vmem:[#allocation5 + $0x178] sm:$0xff] }
 0xe95   :  { %4031 = vmatpush.bf16.msrb.mxu2 %v5311_v5  ;;  %4017 = vmatpush.bf16.msra.mxu1 %v5300_v20 }
 0xe96   :  { %v3310_v46 = vmul.f32 %v5414_v55, %v3303_v41  ;;  %v6991_v55 = vperm.slane %v4844_v50, 0 }
 0xe98   :  { %v3317_v27 = vadd.f32 %v5415_v15, %v3310_v46  ;;  %v5296_v15 = vld [vmem:[#allocation5 + $0x100] sm:$0xff] }
 0xe99   :  { %4032 = vmatpush.bf16.msrb.mxu2 %v5310_v14  ;;  %4018 = vmatpush.bf16.msra.mxu1 %v5299_v56 }
 0xe9a   :  { %v3319_v4 = vpack.c.bf16 %v3317_v27, %v6985_v37 }
 0xe9c   :  { %3537 = vmatmul.bf16.gmra.mxu1 %v3319_v4  ;;  %3556 = vmatmul.bf16.gmra.mxu2 %v3319_v4 }
 0xe9d   :  { %3575 = vmatmul.bf16.gmra.mxu3 %v3319_v4  ;;  %3594 = vmatmul.bf16.gmra.mxu0 %v3319_v4 }
 0xe9e   :  { %4033 = vmatpush.bf16.msrb.mxu2 %v5309_v59  ;;  %4019 = vmatpush.bf16.msra.mxu1 %v5298_v54 }
 0xea2   :  { %4034 = vmatpush.bf16.msrb.mxu2 %v5308_v12  ;;  %4020 = vmatpush.bf16.msra.mxu1 %v5297_v3 }
 0xea6   :  { %4035 = vmatpush.bf16.msrb.mxu2 %v5307_v2  ;;  %4021 = vmatpush.bf16.msra.mxu1 %v5296_v15 }
 0xeaa   :  { %4036 = vmatpush.bf16.msrb.mxu2 %v5306_v57 }
 0xeae   :  { %4037 = vmatpush.bf16.msrb.mxu2 %v5305_v10 }
 0xeb2   :  { %4038 = vmatpush.bf16.msrb.mxu2 %v5304_v9 }
 0xed5   :  { %v3533_v62 = vpop.f32.mrf.mxu1 }
 0xed6   :  { %v6996_v7 = vadd.f32 %v3533_v62, %v6991_v55  ;;  %v3590_v25 = vpop.f32.mrf.mxu0 }
 0xed7   :  { %v6999_v26 = vadd.f32 %v3590_v25, %v6993_v21 }
 0xed8   :  { %v3616_v63 = vmul.f32 0.044715, %v6996_v7 }
 0xed9   :  { %v3619_v52 = vmul.f32 0.044715, %v6999_v26 }
 0xeda   :  { %v3632_v24 = vmul.f32 %v3616_v63, %v6996_v7 }
 0xedb   :  { %v3635_v60 = vmul.f32 %v3619_v52, %v6999_v26  ;;  %v3552_v38 = vpop.f32.mrf.mxu2 }
 0xedc   :  { %v3648_v1 = vmul.f32 %v3632_v24, %v6996_v7  ;;  %v7011_v31 = vadd.f32 %v3552_v38, %v7002_v32  ;;  %v3571_v6 = vpop.f32.mrf.mxu3 }
 0xedd   :  { %v3651_v29 = vmul.f32 %v3635_v60, %v6999_v26  ;;  %v7015_v61 = vadd.f32 %v3571_v6, %v7005_v34  ;;  %v3535_v30 = vpop.f32.mrf.mxu1  ;;  %v3600_v60 = vmul.f32 0.5, %v6996_v7 }
 0xede   :  { %v3664_v35 = vadd.f32 %v3648_v1, %v6996_v7  ;;  %v3617_v53 = vmul.f32 0.044715, %v7011_v31  ;;  %v3536_v23 = vadd.f32 %v3535_v30, %v6991_v55  ;;  %v3592_v28 = vpop.f32.mrf.mxu0  ;;  %v3601_v7 = vmul.f32 0.5, %v7011_v31 }
 0xedf   :  { %v3667_v41 = vadd.f32 %v3651_v29, %v6999_v26  ;;  %v3618_v16 = vmul.f32 0.044715, %v7015_v61  ;;  %v3593_v46 = vadd.f32 %v3592_v28, %v6993_v21  ;;  %v3603_v29 = vmul.f32 0.5, %v6999_v26 }
 0xee0   :  { %v3633_v27 = vmul.f32 %v3617_v53, %v7011_v31  ;;  %v3620_v4 = vmul.f32 0.044715, %v3536_v23  ;;  %v3680_v18 = vmul.f32 0.7978846, %v3664_v35  ;;  %v3604_v38 = vmul.f32 0.5, %v3536_v23 }
 0xee1   :  { %v3634_v36 = vmul.f32 %v3618_v16, %v7015_v61  ;;  %v3623_v19 = vmul.f32 0.044715, %v3593_v46  ;;  %v3683_v49 = vmul.f32 0.7978846, %v3667_v41  ;;  %v3607_v30 = vmul.f32 0.5, %v3593_v46 }
 0xee2   :  { %v3649_v39 = vmul.f32 %v3633_v27, %v7011_v31  ;;  %v3636_v5 = vmul.f32 %v3620_v4, %v3536_v23  ;;  %5616 = vtanh.f32 %v3680_v18  ;;  %v3602_v26 = vmul.f32 0.5, %v7015_v61 }
 0xee3   :  { %v3650_v47 = vmul.f32 %v3634_v36, %v7015_v61  ;;  %v3639_v43 = vmul.f32 %v3623_v19, %v3593_v46  ;;  %v3554_v14 = vpop.f32.mrf.mxu2  ;;  %5618 = vtanh.f32 %v3683_v49 }
 0xee4   :  { %v3665_v33 = vadd.f32 %v3649_v39, %v7011_v31  ;;  %v3652_v20 = vmul.f32 %v3636_v5, %v3536_v23  ;;  %v3555_v13 = vadd.f32 %v3554_v14, %v7002_v32  ;;  %v3573_v59 = vpop.f32.mrf.mxu3 }
 0xee5   :  { %v3666_v45 = vadd.f32 %v3650_v47, %v7015_v61  ;;  %v3655_v56 = vmul.f32 %v3639_v43, %v3593_v46  ;;  %v3574_v17 = vadd.f32 %v3573_v59, %v7005_v34 }
 0xee6   :  { %v3668_v12 = vadd.f32 %v3652_v20, %v3536_v23  ;;  %v3621_v40 = vmul.f32 0.044715, %v3555_v13  ;;  %v3681_v2 = vmul.f32 0.7978846, %v3665_v33  ;;  %v3605_v23 = vmul.f32 0.5, %v3555_v13 }
 0xee7   :  { %v3671_v54 = vadd.f32 %v3655_v56, %v3593_v46  ;;  %v3622_v51 = vmul.f32 0.044715, %v3574_v17  ;;  %v3682_v3 = vmul.f32 0.7978846, %v3666_v45  ;;  %v3606_v46 = vmul.f32 0.5, %v3574_v17 }
 0xee8   :  { %v3684_v44 = vmul.f32 0.7978846, %v3668_v12  ;;  %v3637_v50 = vmul.f32 %v3621_v40, %v3555_v13  ;;  %v5617_v22 = vpop.eup %5616 }
 0xee9   :  { %v3687_v48 = vmul.f32 0.7978846, %v3671_v54  ;;  %v3638_v57 = vmul.f32 %v3622_v51, %v3574_v17  ;;  %v5619_v25 = vpop.eup %5618  ;;  %v3712_v63 = vadd.f32 1.0, %v5617_v22 }
 0xeea   :  { %5620 = vtanh.f32 %v3684_v44  ;;  %v3653_v0 = vmul.f32 %v3637_v50, %v3555_v13  ;;  %v3715_v52 = vadd.f32 1.0, %v5619_v25 }
 0xeeb   :  { %5622 = vtanh.f32 %v3687_v48  ;;  %v3654_v15 = vmul.f32 %v3638_v57, %v3574_v17  ;;  %v3728_v28 = vmul.f32 %v3712_v63, %v3600_v60 }
 0xeec   :  { %5624 = vtanh.f32 %v3681_v2  ;;  %v3669_v62 = vadd.f32 %v3653_v0, %v3555_v13  ;;  %v3731_v16 = vmul.f32 %v3715_v52, %v3603_v29 }
 0xeed   :  { %5626 = vtanh.f32 %v3682_v3  ;;  %v3670_v10 = vadd.f32 %v3654_v15, %v3574_v17 }
 0xeee   :  { %v3685_v58 = vmul.f32 0.7978846, %v3669_v62 }
 0xeef   :  { %v3686_v9 = vmul.f32 0.7978846, %v3670_v10 }
 0xef0   :  { %v5621_v42 = vpop.eup %5620  ;;  %5628 = vtanh.f32 %v3685_v58 }
 0xef1   :  { %v5623_v24 = vpop.eup %5622  ;;  %v3716_v1 = vadd.f32 1.0, %v5621_v42  ;;  %5630 = vtanh.f32 %v3686_v9 }
 0xef2   :  { %v5625_v6 = vpop.eup %5624  ;;  %v3719_v35 = vadd.f32 1.0, %v5623_v24 }
 0xef3   :  { %v5627_v53 = vpop.eup %5626  ;;  %v3732_v41 = vmul.f32 %v3716_v1, %v3604_v38  ;;  %v3713_v4 = vadd.f32 1.0, %v5625_v6 }
 0xef4   :  { %v3735_v27 = vmul.f32 %v3719_v35, %v3607_v30  ;;  %v3714_v18 = vadd.f32 1.0, %v5627_v53 }
 0xef5   :  { %v3744_v36 = vpack.c.bf16 %v3732_v41, %v3728_v28  ;;  %v3729_v43 = vmul.f32 %v3713_v4, %v3601_v7 }
 0xef6   :  { %v5629_v19 = vpop.eup %5628  ;;  %v3747_v39 = vpack.c.bf16 %v3735_v27, %v3731_v16  ;;  %v3730_v33 = vmul.f32 %v3714_v18, %v3602_v26 }
 0xef7   :  { %v5631_v5 = vpop.eup %5630  ;;  %v3717_v49 = vadd.f32 1.0, %v5629_v19  ;;  %4022 = vmatmul.bf16.vlgmr.msra.gmra.mxu1 %v3744_v36 }
 0xef8   :  { %v3718_v47 = vadd.f32 1.0, %v5631_v5  ;;  %4073 = vmatmul.bf16.vlgmr.msra.gmra.mxu0 %v3747_v39 }
 0xef9   :  { %v3733_v14 = vmul.f32 %v3717_v49, %v3605_v23 }
 0xefa   :  { %v3734_v20 = vmul.f32 %v3718_v47, %v3606_v46 }
 0xefb   :  { %v3745_v59 = vpack.c.bf16 %v3733_v14, %v3729_v43 }
 0xefc   :  { %v3746_v45 = vpack.c.bf16 %v3734_v20, %v3730_v33 }
 0xefd   :  { %4039 = vmatmul.bf16.vlgmr.msrb.gmra.mxu2 %v3745_v59 }
 0xefe   :  { %4056 = vmatmul.bf16.vlgmr.msrb.gmra.mxu3 %v3746_v45 }
 0xf19   :  { %v3538_v56 = vpop.f32.mrf.mxu1 }
 0xf1a   :  { %v7036_v12 = vadd.f32 %v3538_v56, %v6991_v55  ;;  %v3595_v31 = vpop.f32.mrf.mxu0 }
 0xf1b   :  { %v7039_v13 = vadd.f32 %v3595_v31, %v6993_v21 }
 0xf1c   :  { %v3624_v61 = vmul.f32 0.044715, %v7036_v12  ;;  %v3608_v31 = vmul.f32 0.5, %v7036_v12 }
 0xf1d   :  { %v3627_v17 = vmul.f32 0.044715, %v7039_v13 }
 0xf1e   :  { %v3640_v40 = vmul.f32 %v3624_v61, %v7036_v12 }
 0xf1f   :  { %v3643_v54 = vmul.f32 %v3627_v17, %v7039_v13  ;;  %v3557_v51 = vpop.f32.mrf.mxu2 }
 0xf20   :  { %v7046_v2 = vadd.f32 %v3557_v51, %v7002_v32  ;;  %v3576_v44 = vpop.f32.mrf.mxu3  ;;  %v3656_v50 = vmul.f32 %v3640_v40, %v7036_v12 }
 0xf21   :  { %v7050_v3 = vadd.f32 %v3576_v44, %v7005_v34  ;;  %v3540_v48 = vpop.f32.mrf.mxu1  ;;  %v3659_v57 = vmul.f32 %v3643_v54, %v7039_v13  ;;  %v3611_v54 = vmul.f32 0.5, %v7039_v13 }
 0xf22   :  { %v3625_v0 = vmul.f32 0.044715, %v7046_v2  ;;  %v3541_v15 = vadd.f32 %v3540_v48, %v6991_v55  ;;  %v3597_v22 = vpop.f32.mrf.mxu0  ;;  %v3672_v62 = vadd.f32 %v3656_v50, %v7036_v12  ;;  %v3609_v12 = vmul.f32 0.5, %v7046_v2 }
 0xf23   :  { %v3626_v25 = vmul.f32 0.044715, %v7050_v3  ;;  %v3598_v10 = vadd.f32 %v3597_v22, %v6993_v21  ;;  %v3675_v58 = vadd.f32 %v3659_v57, %v7039_v13  ;;  %v3610_v13 = vmul.f32 0.5, %v7050_v3 }
 0xf24   :  { %v3641_v63 = vmul.f32 %v3625_v0, %v7046_v2  ;;  %v3628_v9 = vmul.f32 0.044715, %v3541_v15  ;;  %v3688_v60 = vmul.f32 0.7978846, %v3672_v62  ;;  %v3612_v61 = vmul.f32 0.5, %v3541_v15 }
 0xf25   :  { %v3642_v42 = vmul.f32 %v3626_v25, %v7050_v3  ;;  %v3631_v52 = vmul.f32 0.044715, %v3598_v10  ;;  %v3691_v6 = vmul.f32 0.7978846, %v3675_v58  ;;  %v3615_v51 = vmul.f32 0.5, %v3598_v10 }
 0xf26   :  { %v3644_v24 = vmul.f32 %v3628_v9, %v3541_v15  ;;  %v3657_v38 = vmul.f32 %v3641_v63, %v7046_v2  ;;  %5632 = vtanh.f32 %v3688_v60 }
 0xf27   :  { %v3647_v55 = vmul.f32 %v3631_v52, %v3598_v10  ;;  %v3559_v1 = vpop.f32.mrf.mxu2  ;;  %v3658_v29 = vmul.f32 %v3642_v42, %v7050_v3  ;;  %5634 = vtanh.f32 %v3691_v6 }
 0xf28   :  { %v3560_v30 = vadd.f32 %v3559_v1, %v7002_v32  ;;  %v3578_v21 = vpop.f32.mrf.mxu3  ;;  %v3660_v35 = vmul.f32 %v3644_v24, %v3541_v15  ;;  %v3673_v53 = vadd.f32 %v3657_v38, %v7046_v2  ;;  %v5416_v2 = vld [vmem:[%s7132_s13 + $0x1] ss:$0 sm:$0xff] }
 0xf29   :  { %v3579_v28 = vadd.f32 %v3578_v21, %v7005_v34  ;;  %v3663_v41 = vmul.f32 %v3647_v55, %v3598_v10  ;;  %v3674_v16 = vadd.f32 %v3658_v29, %v7050_v3 }
 0xf2a   :  { %v3629_v27 = vmul.f32 0.044715, %v3560_v30  ;;  %v3676_v4 = vadd.f32 %v3660_v35, %v3541_v15  ;;  %v3689_v5 = vmul.f32 0.7978846, %v3673_v53  ;;  %v3613_v15 = vmul.f32 0.5, %v3560_v30 }
 0xf2b   :  { %v3630_v36 = vmul.f32 0.044715, %v3579_v28  ;;  %v3679_v19 = vadd.f32 %v3663_v41, %v3598_v10  ;;  %v3690_v23 = vmul.f32 0.7978846, %v3674_v16  ;;  %v3614_v10 = vmul.f32 0.5, %v3579_v28 }
 0xf2c   :  { %v3645_v18 = vmul.f32 %v3629_v27, %v3560_v30  ;;  %v3692_v39 = vmul.f32 0.7978846, %v3676_v4  ;;  %v5633_v34 = vpop.eup %5632 }
 0xf2d   :  { %v3646_v7 = vmul.f32 %v3630_v36, %v3579_v28  ;;  %v3695_v32 = vmul.f32 0.7978846, %v3679_v19  ;;  %v5635_v47 = vpop.eup %5634  ;;  %v3720_v33 = vadd.f32 1.0, %v5633_v34 }
 0xf2e   :  { %5636 = vtanh.f32 %v3692_v39  ;;  %v3661_v49 = vmul.f32 %v3645_v18, %v3560_v30  ;;  %v3723_v45 = vadd.f32 1.0, %v5635_v47 }
 0xf2f   :  { %5638 = vtanh.f32 %v3695_v32  ;;  %v3662_v26 = vmul.f32 %v3646_v7, %v3579_v28  ;;  %v3736_v48 = vmul.f32 %v3720_v33, %v3608_v31 }
 0xf30   :  { %v3677_v46 = vadd.f32 %v3661_v49, %v3560_v30  ;;  %5640 = vtanh.f32 %v3689_v5  ;;  %v3739_v0 = vmul.f32 %v3723_v45, %v3611_v54 }
 0xf31   :  { %v3678_v43 = vadd.f32 %v3662_v26, %v3579_v28  ;;  %5642 = vtanh.f32 %v3690_v23 }
 0xf32   :  { %v3693_v14 = vmul.f32 0.7978846, %v3677_v46 }
 0xf33   :  { %v3694_v20 = vmul.f32 0.7978846, %v3678_v43 }
 0xf34   :  { %v5637_v59 = vpop.eup %5636  ;;  %5644 = vtanh.f32 %v3693_v14 }
 0xf35   :  { %v5639_v56 = vpop.eup %5638  ;;  %v3724_v17 = vadd.f32 1.0, %v5637_v59  ;;  %5646 = vtanh.f32 %v3694_v20 }
 0xf36   :  { %v5641_v40 = vpop.eup %5640  ;;  %v3727_v44 = vadd.f32 1.0, %v5639_v56 }
 0xf37   :  { %v5643_v50 = vpop.eup %5642  ;;  %v3740_v57 = vmul.f32 %v3724_v17, %v3612_v61  ;;  %v3721_v25 = vadd.f32 1.0, %v5641_v40  ;;  %v5335_v40 = vld [vmem:[%s7135_s16 + $0x38] sm:$0xff] }
 0xf38   :  { %v3743_v22 = vmul.f32 %v3727_v44, %v3615_v51  ;;  %v3722_v9 = vadd.f32 1.0, %v5643_v50  ;;  %4212 = vmatpush.bf16.msrb.mxu1 %v5335_v40  ;;  %v5333_v51 = vld [vmem:[%s7135_s16 + $0x28] sm:$0xff]  ;;  %v5332_v50 = vld [vmem:[%s7135_s16 + $0x20] sm:$0xff] }
 0xf39   :  { %v3748_v62 = vpack.c.bf16 %v3740_v57, %v3736_v48  ;;  %v3737_v60 = vmul.f32 %v3721_v25, %v3609_v12  ;;  %v5331_v57 = vld [vmem:[%s7135_s16 + $0x18] sm:$0xff]  ;;  %v5328_v25 = vld [vmem:[%s7135_s16] sm:$0xff] }
 0xf3a   :  { %v5645_v58 = vpop.eup %5644  ;;  %v3751_v63 = vpack.c.bf16 %v3743_v22, %v3739_v0  ;;  %v3738_v55 = vmul.f32 %v3722_v9, %v3610_v13  ;;  %v5330_v0 = vld [vmem:[%s7135_s16 + $0x10] sm:$0xff]  ;;  %v5329_v22 = vld [vmem:[%s7135_s16 + $0x8] sm:$0xff] }
 0xf3b   :  { %v5647_v42 = vpop.eup %5646  ;;  %4026 = vmatmul.bf16.gmra.mxu1 %v3748_v62  ;;  %v3725_v52 = vadd.f32 1.0, %v5645_v58 }
 0xf3c   :  { %4077 = vmatmul.bf16.gmra.mxu0 %v3751_v63  ;;  %v3726_v24 = vadd.f32 1.0, %v5647_v42 }
 0xf3d   :  { %v3741_v38 = vmul.f32 %v3725_v52, %v3613_v15 }
 0xf3e   :  { %v3742_v1 = vmul.f32 %v3726_v24, %v3614_v10 }
 0xf3f   :  { %v3749_v6 = vpack.c.bf16 %v3741_v38, %v3737_v60 }
 0xf40   :  { %v3750_v29 = vpack.c.bf16 %v3742_v1, %v3738_v55 }
 0xf41   :  { %4043 = vmatmul.bf16.gmra.mxu2 %v3749_v6 }
 0xf42   :  { %4060 = vmatmul.bf16.gmra.mxu3 %v3750_v29 }
 0xf74   :  { %v4023_v21 = vpop.f32.mrf.mxu1 }
 0xf75   :  { %v4074_v35 = vpop.f32.mrf.mxu0  ;;  %v4024_v41 = vadd.f32 %v5416_v2, %v4023_v21 }
 0xf7c   :  { %v4025_v30 = vpop.f32.mrf.mxu1 }
 0xf7d   :  { %v4076_v53 = vpop.f32.mrf.mxu0 }
 0xf80   :  { %v4040_v3 = vpop.f32.mrf.mxu2 }
 0xf81   :  { %v4041_v28 = vadd.f32 %v4040_v3, %v4024_v41  ;;  %v4057_v16 = vpop.f32.mrf.mxu3 }
 0xf83   :  { %v4058_v27 = vadd.f32 %v4057_v16, %v4041_v28 }
 0xf85   :  { %v4075_v4 = vadd.f32 %v4074_v35, %v4058_v27 }
 0xf87   :  { %v4082_v36 = vadd.f32 %v4075_v4, %v6978_v8  ;;  %v5419_v4 = vld [vmem:[%s7136_s17] ss:$0 sm:$0xff] }
 0xf88   :  { %v4042_v19 = vpop.f32.mrf.mxu2 }
 0xf89   :  { %v4059_v18 = vpop.f32.mrf.mxu3  ;;  %4088 = vadd.xlane.f32.xlu1 %v4082_v36 }
 0xf8a   :  { %v5420_v18 = vld [vmem:[%s7137_s18] ss:$0 sm:$0xff] }
 0xfb8   :  { %v4027_v39 = vpop.f32.mrf.mxu1 }
 0xfb9   :  { %v4078_v5 = vpop.f32.mrf.mxu0  ;;  %v4028_v23 = vadd.f32 %v5416_v2, %v4027_v39  ;;  %v5418_v2 = vld [vmem:[%s7134_s15 + $0x1] ss:$0 sm:$0xff] }
 0xfc0   :  { %v4029_v7 = vpop.f32.mrf.mxu1 }
 0xfc1   :  { %v4080_v32 = vpop.f32.mrf.mxu0 }
 0xfc4   :  { %v4044_v49 = vpop.f32.mrf.mxu2 }
 0xfc5   :  { %v4045_v26 = vadd.f32 %v4044_v49, %v4028_v23  ;;  %v4061_v34 = vpop.f32.mrf.mxu3  ;;  %v5421_v23 = vld [vmem:[#allocation2] ss:$0 sm:$0xff] }
 0xfc7   :  { %v4062_v46 = vadd.f32 %v4061_v34, %v4045_v26 }
 0xfc9   :  { %v4079_v47 = vadd.f32 %v4078_v5, %v4062_v46 }
 0xfcb   :  { %v4083_v43 = vadd.f32 %v4079_v47, %v6985_v37  ;;  %v5334_v37 = vld [vmem:[%s7135_s16 + $0x30] sm:$0xff] }
 0xfcc   :  { %v4046_v14 = vpop.f32.mrf.mxu2  ;;  %4213 = vmatpush.bf16.msrb.mxu1 %v5334_v37 }
 0xfcd   :  { %v4063_v33 = vpop.f32.mrf.mxu3  ;;  %4090 = vadd.xlane.f32.xlu0 %v4083_v43 }
 0xfd0   :  { %4214 = vmatpush.bf16.msrb.mxu1 %v5333_v51 }
 0xfd4   :  { %4215 = vmatpush.bf16.msrb.mxu1 %v5332_v50 }
 0xfd8   :  { %4216 = vmatpush.bf16.msrb.mxu1 %v5331_v57 }
 0xfdc   :  { %4217 = vmatpush.bf16.msrb.mxu1 %v5330_v0 }
 0xfe0   :  { %4218 = vmatpush.bf16.msrb.mxu1 %v5329_v22 }
 0xfe4   :  { %4219 = vmatpush.bf16.msrb.mxu1 %v5328_v25 }
 0xffc   :  { %v4089_v20 = vpop.xlane.xlu1 %4088 }
 0xffd   :  { %v4092_v8 = vmul.f32 %v4089_v20, %v5843_v11 }
 0xfff   :  { %v4094_v59 = vsub.f32 %v4082_v36, %v4092_v8 }
0x1001   :  { %v4096_v45 = vmul.f32 %v4094_v59, %v4094_v59 }
0x1003   :  { %4098 = vadd.xlane.f32.xlu0 %v4096_v45 }
0x1040   :  { %v4091_v56 = vpop.xlane.xlu0 %4090 }
0x1041   :  { %v4093_v31 = vmul.f32 %v4091_v56, %v5843_v11 }
0x1043   :  { %v4095_v61 = vsub.f32 %v4083_v43, %v4093_v31 }
0x1045   :  { %v4097_v17 = vmul.f32 %v4095_v61, %v4095_v61 }
0x1047   :  { %4100 = vadd.xlane.f32.xlu2 %v4097_v17 }
0x1076   :  { %v4099_v54 = vpop.xlane.xlu0 %4098 }
0x1077   :  { %v4102_v44 = vmul.f32 %v4099_v54, %v5843_v11 }
0x1079   :  { %v4104_v48 = vadd.f32 1e-12, %v4102_v44 }
0x107b   :  { %5648 = vrsqrt.f32 %v4104_v48  ;;  %vm4112_vm10 = vweird.f32 %v4104_v48 }
0x1081   :  { %v5649_v62 = vpop.eup %5648 }
0x1082   :  { %v4107_v58 = vmul.f32 %v5649_v62, %v4104_v48  ;;  %vm4113_vm9 = vweird.f32 %v5649_v62 }
0x1083   :  { %vm4114_vm11 = vmor %vm4112_vm10, %vm4113_vm9 }
0x1084   :  { %v4108_v42 = vmul.f32 %v5649_v62, %v4107_v58 }
0x1086   :  { %v4109_v15 = vmul.f32 0.5, %v4108_v42 }
0x1088   :  { %v4110_v52 = vsub.f32 1.5, %v4109_v15 }
0x108a   :  { %v4111_v24 = vmul.f32 %v5649_v62, %v4110_v52 }
0x108c   :  { %v4115_v55 = vsel %vm4114_vm11, %v5649_v62, %v4111_v24 }
0x108d   :  { %v4126_v29 = vmul.f32 %v4115_v55, %v4094_v59 }
0x10ba   :  { %v4101_v63 = vpop.xlane.xlu2 %4100 }
0x10bb   :  { %v4103_v9 = vmul.f32 %v4101_v63, %v5843_v11  ;;  %v5417_v11 = vld [vmem:[%s7133_s14 + $0x1] ss:$0 sm:$0xff] }
0x10bc   :  { %v4131_v30 = vmul.f32 %v5417_v11, %v4126_v29 }
0x10bd   :  { %v4105_v12 = vadd.f32 1e-12, %v4103_v9 }
0x10be   :  { %v4136_v3 = vadd.f32 %v5418_v2, %v4131_v30 }
0x10bf   :  { %5650 = vrsqrt.f32 %v4105_v12  ;;  %vm4122_vm13 = vweird.f32 %v4105_v12 }
0x10c5   :  { %v5651_v13 = vpop.eup %5650 }
0x10c6   :  { %v4117_v10 = vmul.f32 %v5651_v13, %v4105_v12  ;;  %vm4123_vm12 = vweird.f32 %v5651_v13 }
0x10c7   :  { %vm4124_vm14 = vmor %vm4122_vm13, %vm4123_vm12 }
0x10c8   :  { %v4118_v60 = vmul.f32 %v5651_v13, %v4117_v10 }
0x10ca   :  { %v4119_v38 = vmul.f32 0.5, %v4118_v60 }
0x10cc   :  { %v4120_v1 = vsub.f32 1.5, %v4119_v38 }
0x10ce   :  { %v4121_v6 = vmul.f32 %v5651_v13, %v4120_v1 }
0x10d0   :  { %v4125_v21 = vsel %vm4124_vm14, %v5651_v13, %v4121_v6 }
0x10d1   :  { %v4127_v35 = vmul.f32 %v4125_v21, %v4095_v61 }
0x10d3   :  { %v4132_v53 = vmul.f32 %v5417_v11, %v4127_v35 }
0x10d5   :  { %v4137_v41 = vadd.f32 %v5418_v2, %v4132_v53 }
0x10d7   :  { %v4139_v28 = vrot.slane %v4137_v41, 7 }
0x10d9   :  { %v4142_v16 = vsel %vm4141_vm15, %v4136_v3, %v4139_v28 }
0x10da   :  { %v4143_v27 = vpack.c.bf16 %v4142_v16, %v4142_v16 }
0x10dc   :  { %4220 = vmatmul.bf16.vlgmr.msrb.gmra.mxu1 %v4143_v27 }
0x1159   :  { %v4221_v36 = vpop.f32.mrf.mxu1 }
0x115a   :  { %v4222_v19 = vadd.f32 %v5419_v4, %v4221_v36 }
0x115c   :  { %5652 = vtanh.f32 %v4222_v19 }
0x1161   :  { %v4223_v39 = vpop.f32.mrf.mxu1 }
0x1162   :  { %v5653_v5 = vpop.eup %5652 }
0x1163   :  { %v4230_v7 = vmul.f32 %v5653_v5, %v5420_v18 }
0x1165   :  { %v4232_v32 = vsel %vm4231_vm0, %v4230_v7, 0.0 }
0x1166   :  { %4233 = vadd.xlane.f32.xlu1 %v4232_v32 }
0x11d9   :  { %v4234_v49 = vpop.xlane.xlu1 %4233 }
0x11da   :  { %v4239_v26 = vadd.f32 %v5421_v23, %v4234_v49 }
0x11dc   :  { %4241 = vst.msk [vmem:[%s7139_s20] sm:$0x3] %vm4240_vm1, %v4239_v26 }
0x11dd   :  { %4246 = vsyncpa [#allocation4], 1 }
0x11de   :  { %4247 = vsyncpa [#allocation6], 1 }

</bundles_post_ra>
